<compile_context>
chip_gen: v7x
topology: tpu7x:2x2x1
jax: 0.10.0
libtpu: 0.0.40
codegen_flags: <defaults>
</compile_context>

<pallas_src>
import functools

import jax
import jax.numpy as jnp
from jax.experimental import pallas as pl
from jax.experimental.pallas import tpu as pltpu

_VMEM_LIMIT_BYTES = 48 * 1024 * 1024  # above v5e(16)/v6e(32)/v7x(32) scoped defaults,
                                      # below v7x 64 MiB physical per-TC VMEM.


# ----------------------------------------------------------------------------
# Big streaming Linear (+ fused activation): one pallas_call, grid = (N tiles, K tiles).
# ----------------------------------------------------------------------------
def _linear_kernel(x_ref, w_ref, b_ref, o_ref, acc_ref, *, activation):
    k = pl.program_id(1)

    @pl.when(k == 0)
    def _():
        acc_ref[...] = jnp.zeros_like(acc_ref)

    w = w_ref[...]
    if w.dtype != jnp.float32:
        # Weights stream from HBM as bf16 (bandwidth win); compute/accumulate in f32.
        w = w.astype(jnp.float32)
    acc_ref[...] += jnp.dot(x_ref[...], w, preferred_element_type=jnp.float32)

    @pl.when(k == pl.num_programs(1) - 1)
    def _():
        y = acc_ref[...] + b_ref[...]
        if activation == "relu":
            y = jnp.maximum(y, 0.0)
        elif activation == "sigmoid":
            y = jax.nn.sigmoid(y)
        o_ref[...] = y.astype(o_ref.dtype)


def pallas_linear(x, w, b, activation="none", tk=4096, tn=512):
    """y = activation(x @ w + b) with x:(B,K), w:(K,N), b:(N,)."""
    B, K = x.shape
    K2, N = w.shape
    assert K == K2
    tk = min(tk, K)
    tn = min(tn, N)
    assert K % tk == 0 and N % tn == 0
    b2 = b.reshape(1, N)

    kernel = functools.partial(_linear_kernel, activation=activation)
    return pl.pallas_call(
        kernel,
        out_shape=jax.ShapeDtypeStruct((B, N), x.dtype),
        grid_spec=pltpu.PrefetchScalarGridSpec(
            num_scalar_prefetch=0,
            grid=(N // tn, K // tk),
            in_specs=[
                pl.BlockSpec((B, tk), lambda j, k: (0, k)),
                pl.BlockSpec((tk, tn), lambda j, k: (k, j)),
                pl.BlockSpec((1, tn), lambda j, k: (0, j)),
            ],
            out_specs=pl.BlockSpec((B, tn), lambda j, k: (0, j)),
            scratch_shapes=[pltpu.VMEM((B, tn), jnp.float32)],
        ),
        compiler_params=pltpu.CompilerParams(
            dimension_semantics=("parallel", "arbitrary"),
            vmem_limit_bytes=_VMEM_LIMIT_BYTES,
        ),
    )(x, w, b2)


# ----------------------------------------------------------------------------
# Fused middle layers: 1024 -> 512 -> latent -> 512 -> 1024, all VMEM-resident.
# Emits both z (latent) and the 1024-wide decoder hidden state in one launch.
# ----------------------------------------------------------------------------
def _middle_kernel(h_ref, w2_ref, b2_ref, w3_ref, b3_ref,
                   w4_ref, b4_ref, w5_ref, b5_ref, z_ref, h4_ref):
    h = h_ref[...]
    h2 = jnp.maximum(
        jnp.dot(h, w2_ref[...], preferred_element_type=jnp.float32) + b2_ref[...], 0.0)
    z = jnp.dot(h2, w3_ref[...], preferred_element_type=jnp.float32) + b3_ref[...]
    z_ref[...] = z.astype(z_ref.dtype)
    h3 = jnp.maximum(
        jnp.dot(z, w4_ref[...], preferred_element_type=jnp.float32) + b4_ref[...], 0.0)
    h4 = jnp.maximum(
        jnp.dot(h3, w5_ref[...], preferred_element_type=jnp.float32) + b5_ref[...], 0.0)
    h4_ref[...] = h4.astype(h4_ref.dtype)


def pallas_middle(h, enc1, enc2, dec0, dec1):
    """h:(B,1024) -> (z:(B,latent), h4:(B,1024)) for the four small layers."""
    B = h.shape[0]
    (w2, b2), (w3, b3), (w4, b4), (w5, b5) = enc1, enc2, dec0, dec1
    L = w3.shape[1]
    N4 = w5.shape[1]
    vmem = lambda: pl.BlockSpec(memory_space=pltpu.MemorySpace.VMEM)
    return pl.pallas_call(
        _middle_kernel,
        out_shape=(jax.ShapeDtypeStruct((B, L), h.dtype),
                   jax.ShapeDtypeStruct((B, N4), h.dtype)),
        in_specs=[vmem() for _ in range(9)],
        out_specs=(vmem(), vmem()),
        compiler_params=pltpu.CompilerParams(
            vmem_limit_bytes=_VMEM_LIMIT_BYTES,
        ),
    )(h, w2, b2.reshape(1, -1), w3, b3.reshape(1, -1),
      w4, b4.reshape(1, -1), w5, b5.reshape(1, -1))


# ----------------------------------------------------------------------------
# Parameters & forward pass
# ----------------------------------------------------------------------------
def init_linear_params(key, in_features, out_features, dtype=jnp.float32):
    """PyTorch-style uniform(-1/sqrt(in), 1/sqrt(in)) init; weight stored (in, out)."""
    kw, kb = jax.random.split(key)
    bound = 1.0 / (in_features ** 0.5)
    w = jax.random.uniform(
        kw, (in_features, out_features), dtype=dtype, minval=-bound, maxval=bound
    )
    b = jax.random.uniform(
        kb, (out_features,), dtype=dtype, minval=-bound, maxval=bound
    )
    return w, b


def make_linear_ae_params(latent_dim, key):
    dims_enc = [(256 * 256, 1024), (1024, 512), (512, latent_dim)]
    dims_dec = [(latent_dim, 512), (512, 1024), (1024, 256 * 256)]
    keys = jax.random.split(key, len(dims_enc) + len(dims_dec))
    enc = [init_linear_params(k, i, o) for k, (i, o) in zip(keys[:3], dims_enc)]
    dec = [init_linear_params(k, i, o) for k, (i, o) in zip(keys[3:], dims_dec)]
    # The two 256 MiB matrices dominate HBM traffic: store them bf16 (f32 accumulation
    # inside the kernel).  Small layers and all biases stay f32.
    enc[0] = (enc[0][0].astype(jnp.bfloat16), enc[0][1])
    dec[2] = (dec[2][0].astype(jnp.bfloat16), dec[2][1])
    return enc, dec


def linear_ae_forward(x, enc_params, dec_params):
    """x: (B, H, W) image -> (x_recon (B, 65536), z (B, latent_dim))."""
    B = x.shape[0]
    h = x.reshape(B, -1)  # x.view(x.size(0), -1)

    # Encoder layer 1: 65536 -> 1024, ReLU fused.  Large K tiles, >=2 N blocks
    # ("parallel") so v7x megacore can split the weight stream across TensorCores.
    h = pallas_linear(h, enc_params[0][0], enc_params[0][1],
                      activation="relu", tk=4096, tn=512)

    # Middle layers (enc 1024->512->latent, dec latent->512->1024) fused in VMEM.
    z, h = pallas_middle(h, enc_params[1], enc_params[2],
                         dec_params[0], dec_params[1])

    # Decoder layer 3: 1024 -> 65536, Sigmoid fused.  Full K in one step (no reduction
    # loop), large lane-dense N tiles for unmasked stores of the (B, 65536) output.
    x_recon = pallas_linear(h, dec_params[2][0], dec_params[2][1],
                            activation="sigmoid", tk=1024, tn=2048)

    return x_recon, z


if __name__ == "__main__":
    latent_dim = 32
    batch = 2

    key = jax.random.PRNGKey(0)
    k_x, k_p = jax.random.split(key)

    # Deterministic example input image batch (B, 256, 256); module flattens it.
    x = jax.random.uniform(k_x, (batch, 256, 256), dtype=jnp.float32)

    enc_params, dec_params = make_linear_ae_params(latent_dim, k_p)

    x_recon, z = linear_ae_forward(x, enc_params, dec_params)
    jax.block_until_ready((x_recon, z))

    assert x_recon.shape == (batch, 256 * 256)
    assert z.shape == (batch, latent_dim)

    # Sanity check vs. plain-JAX reference (same bf16-quantized weights, f32 math).
    def ref_forward(x, enc, dec):
        def lin(h, w, b):
            return jnp.dot(h, w.astype(jnp.float32),
                           preferred_element_type=jnp.float32) + b
        h = x.reshape(x.shape[0], -1)
        h = jnp.maximum(lin(h, *enc[0]), 0.0)
        h = jnp.maximum(lin(h, *enc[1]), 0.0)
        z = lin(h, *enc[2])
        h = jnp.maximum(lin(z, *dec[0]), 0.0)
        h = jnp.maximum(lin(h, *dec[1]), 0.0)
        xr = jax.nn.sigmoid(lin(h, *dec[2]))
        return xr, z

    xr_ref, z_ref = ref_forward(x, enc_params, dec_params)
    assert jnp.allclose(x_recon, xr_ref, atol=1e-3, rtol=1e-3)
    assert jnp.allclose(z, z_ref, atol=1e-3, rtol=1e-3)

    print("KERNEL_OK")
</pallas_src>

<mosaic_0001>
module attributes {stable_mosaic.version = 11 : i64} {
  func.func @_linear_kernel(%arg0: i32, %arg1: i32, %arg2: memref<2x4096xf32, #tpu.memory_space<vmem>>, %arg3: memref<4096x512xbf16, #tpu.memory_space<vmem>>, %arg4: memref<1x512xf32, #tpu.memory_space<vmem>>, %arg5: memref<2x512xf32, #tpu.memory_space<vmem>>, %arg6: memref<2x512xf32, #tpu.memory_space<vmem>>) attributes {dimension_semantics = [#tpu.dimension_semantics<parallel>, #tpu.dimension_semantics<arbitrary>], iteration_bounds = array<i64: 2, 16>, scalar_prefetch = 0 : i64, scratch_operands = 1 : i64, tpu.core_type = #tpu.core_type<tc>, window_params = [{transform_indices = @transform_0, window_bounds = array<i64: 2, 4096>}, {transform_indices = @transform_1, window_bounds = array<i64: 4096, 512>}, {transform_indices = @transform_2, window_bounds = array<i64: 1, 512>}, {transform_indices = @transform_3, window_bounds = array<i64: 2, 512>}]} {
    %c0_i32 = arith.constant 0 : i32
    %0 = arith.cmpi eq, %arg1, %c0_i32 : i32
    %1 = arith.extui %0 : i1 to i32
    %c0_i32_0 = arith.constant 0 : i32
    %2 = arith.cmpi ne, %1, %c0_i32_0 : i32
    scf.if %2 {
      %cst_9 = arith.constant 0.000000e+00 : f32
      %13 = vector.broadcast %cst_9 : f32 to vector<2x512xf32>
      %c0_10 = arith.constant 0 : index
      %c0_11 = arith.constant 0 : index
      %14 = vector.load %arg6[%c0_10, %c0_11] : memref<2x512xf32, #tpu.memory_space<vmem>>, vector<2x512xf32>
      tpu.vector_store %arg6[%c0_10, %c0_11], %13 {strides = array<i32>} : memref<2x512xf32, #tpu.memory_space<vmem>>, vector<2x512xf32>,
    } else {
    }
    %c0 = arith.constant 0 : index
    %c0_1 = arith.constant 0 : index
    %3 = vector.load %arg3[%c0, %c0_1] : memref<4096x512xbf16, #tpu.memory_space<vmem>>, vector<4096x512xbf16>
    %4 = arith.extf %3 : vector<4096x512xbf16> to vector<4096x512xf32>
    %c0_2 = arith.constant 0 : index
    %c0_3 = arith.constant 0 : index
    %5 = vector.load %arg6[%c0_2, %c0_3] : memref<2x512xf32, #tpu.memory_space<vmem>>, vector<2x512xf32>
    %c0_4 = arith.constant 0 : index
    %c0_5 = arith.constant 0 : index
    %6 = vector.load %arg2[%c0_4, %c0_5] : memref<2x4096xf32, #tpu.memory_space<vmem>>, vector<2x4096xf32>
    %cst = arith.constant dense<0.000000e+00> : vector<2x512xf32>
    %7 = tpu.matmul %6, %4, %cst {dimension_numbers = #tpu.dot_dimension_numbers<[1], [0], [0], [1], [0, 0, 1, 1], [], []>} : vector<2x4096xf32>, vector<4096x512xf32>, vector<2x512xf32> -> vector<2x512xf32>
    %8 = arith.addf %5, %7 : vector<2x512xf32>
    %c0_6 = arith.constant 0 : index
    %c0_7 = arith.constant 0 : index
    %9 = vector.load %arg6[%c0_6, %c0_7] : memref<2x512xf32, #tpu.memory_space<vmem>>, vector<2x512xf32>
    tpu.vector_store %arg6[%c0_6, %c0_7], %8 {strides = array<i32>} : memref<2x512xf32, #tpu.memory_space<vmem>>, vector<2x512xf32>,
    %c15_i32 = arith.constant 15 : i32
    %10 = arith.cmpi eq, %arg1, %c15_i32 : i32
    %11 = arith.extui %10 : i1 to i32
    %c0_i32_8 = arith.constant 0 : i32
    %12 = arith.cmpi ne, %11, %c0_i32_8 : i32
    scf.if %12 {
      %c0_9 = arith.constant 0 : index
      %c0_10 = arith.constant 0 : index
      %13 = vector.load %arg6[%c0_9, %c0_10] : memref<2x512xf32, #tpu.memory_space<vmem>>, vector<2x512xf32>
      %c0_11 = arith.constant 0 : index
      %c0_12 = arith.constant 0 : index
      %14 = vector.load %arg4[%c0_11, %c0_12] : memref<1x512xf32, #tpu.memory_space<vmem>>, vector<1x512xf32>
      %15 = vector.broadcast %14 : vector<1x512xf32> to vector<2x512xf32>
      %16 = arith.addf %13, %15 : vector<2x512xf32>
      %cst_13 = arith.constant 0.000000e+00 : f32
      %17 = vector.broadcast %cst_13 : f32 to vector<2x512xf32>
      %18 = arith.maximumf %16, %17 : vector<2x512xf32>
      %c0_14 = arith.constant 0 : index
      %c0_15 = arith.constant 0 : index
      %19 = vector.load %arg5[%c0_14, %c0_15] : memref<2x512xf32, #tpu.memory_space<vmem>>, vector<2x512xf32>
      tpu.vector_store %arg5[%c0_14, %c0_15], %18 {strides = array<i32>} : memref<2x512xf32, #tpu.memory_space<vmem>>, vector<2x512xf32>,
    } else {
    }
    return
  }
  func.func @transform_0(%arg0: i32, %arg1: i32) -> (i32, i32) {
    %c0_i32 = arith.constant 0 : i32
    %c0_i32_0 = arith.constant 0 : i32
    return %c0_i32, %arg1 : i32, i32
  }
  func.func @transform_1(%arg0: i32, %arg1: i32) -> (i32, i32) {
    %c0_i32 = arith.constant 0 : i32
    return %arg1, %arg0 : i32, i32
  }
  func.func @transform_2(%arg0: i32, %arg1: i32) -> (i32, i32) {
    %c0_i32 = arith.constant 0 : i32
    %c0_i32_0 = arith.constant 0 : i32
    return %c0_i32, %arg0 : i32, i32
  }
  func.func @transform_3(%arg0: i32, %arg1: i32) -> (i32, i32) {
    %c0_i32 = arith.constant 0 : i32
    %c0_i32_0 = arith.constant 0 : i32
    return %c0_i32, %arg0 : i32, i32
  }
}

</mosaic_0001>

<bundles_post_ra>
// kernel: tpu_custom_call.1
= control target key start
LH: loop header
LB: loop body
LE: loop exit
PB: predicated region body
PF: predicated region fallthrough
CT: control target
= control target key end

     0   :  { %s12744_s0 = inlined_call_operand.hbm [shape: f32[2,65536], index: 0, kind: input, shape index: {}]   ;;  %s12745_s1 = inlined_call_operand.hbm [shape: bf16[65536,1024], index: 1, kind: input, shape index: {}]   ;;  %s12746_s2 = inlined_call_operand.hbm [shape: f32[1,1024], index: 2, kind: input, shape index: {}]   ;;  %s12747_s3 = inlined_call_operand.hbm [shape: f32[2,1024], index: 3, kind: output, shape index: {}]  }
   0x1   :  { %12760 = sst [smem:[#allocation20_spill]] %s12744_s0 }
   0x2   :  { %12761 = sst [smem:[#allocation21_spill]] %s12745_s1 }
   0x3   :  { %12762 = sst [smem:[#allocation22_spill]] %s12747_s3 }
   0x4   :  { %8 = vsyncpa [#allocation4], 0 }
   0x5   :  { %10 = vsyncpa [#allocation4 + $0x1], 0 }
   0x6   :  { %11 = vsyncpa [#allocation7], 0 }
   0x7   :  { %13 = vsyncpa [#allocation7 + $0x1], 0 }
   0x8   :  { %14 = vsyncpa [#allocation5], 0 }
   0x9   :  { %16 = vsyncpa [#allocation5 + $0x1], 0  ;;  %s11151_s12 = smov 0   ;;  %s11153_s13 = smov 0  }
   0xa   :  { %s11155_s14 = smov 0   ;;  %s11157_s15 = smov 0  }
   0xb   :  { %s11159_s16 = smov 0   ;;  %s11161_s17 = smov 0  }
   0xc   :  { %s11163_s18 = smov 0   ;;  %s11165_s19 = smov 0  }
   0xd   :  { %s11167_s20 = smov 0   ;;  %s11169_s21 = smov 0  }
   0xe   :  { %s11171_s22 = smov 0   ;;  %s11173_s23 = smov 0  }
   0xf   :  { %s11175_s24 = smov 0   ;;  %s11177_s25 = smov 0  }
  0x10 LB: > { %12763 = sst [smem:[#allocation14_spill]] %s11100_s20  ;;  %p12749_p0 = scmp.eq.s32.totalorder %s11120_s25, 0  ;;  %s11120_s25 = sphi %s11177_s25, %s22_s25   ;;  %s11116_s24 = sphi %s11175_s24, %s12804_s24   ;;  %s11112_s23 = sphi %s11173_s23, %s12814_s23   ;;  %s11108_s22 = sphi %s11171_s22, %s12802_s22   ;;  %s11104_s21 = sphi %s11169_s21, %s12813_s21   ;;  %s11100_s20 = sphi %s11167_s20, %s12801_s20   ;;  %s11096_s19 = sphi %s11165_s19, %s12812_s19   ;;  %s11092_s18 = sphi %s11163_s18, %s12811_s18   ;;  %s11088_s17 = sphi %s11161_s17, %s12810_s17   ;;  %s11084_s16 = sphi %s11159_s16, %s12809_s16   ;;  %s11080_s15 = sphi %s11157_s15, %s12808_s15   ;;  %s11076_s14 = sphi %s11155_s14, %s12807_s14   ;;  %s11072_s13 = sphi %s11153_s13, %s12806_s13   ;;  %s11068_s12 = sphi %s11151_s12, %s12805_s12  }
  0x11   : > { %12764 = sst [smem:[#allocation15_spill]] %s11108_s22  ;;  %p76_p1 = scmp.ne.s32.totalorder %s11088_s17, %s11084_s16 }
  0x12   : > { %12765 = sst [smem:[#allocation16_spill]] %s11116_s24  ;;  %p12748_p4 = scmp.lt.s32.totalorder %s11120_s25, 32 }
  0x13   : > { %p78_p3 = por %p76_p1, %p12749_p0  ;;  %s177_s28 = sand.u32 1, %s11120_s25  }
  0x14   : > { %s179_s29 = sand.u32 1, %s11088_s17   ;;  %s6037_s4 = sshll.u32 %s11116_s24, 2 }
  0x15   : > { %s6035_s30 = sshll.u32 %s179_s29, 13  ;;  %s6056_s5 = sshll.u32 %s11112_s23, 12 }
  0x16   : > { %s181_s6 = scalar_lea.vmem [#allocation6], %s6035_s30  ;;  %s188_s8 = sadd.s32 %s6056_s5, %s6037_s4 }
  0x17   : > { %s191_s7 = sshll.u32 %s181_s6, 4  ;;  %s6039_s9 = sshll.u32 %s188_s8, 6  ;;  %s11235_s7 = int_to_ptr.vmem [resolvable:$true] %s191_s7 }
  0x18   : > { %p11239_p5 = pnand %p12748_p4, %p78_p3  ;;  %s12767_s1 = sld [smem:[#allocation21_spill]] }
  0x19   : > { %p6043_p6 = scmp.ge.s32.totalorder %s11120_s25, 1  ;;  %s11249_s29 = scalar_lea.sflag [#allocation7], %s177_s28 }
  0x1a   : > { %p10878_p8 = pneg %p11239_p5 }
  0x1e   : > { %s11246_s26 = scalar_lea.hbm %s12767_s1, %s6039_s9  ;;  %s10881_s5 = scalar_lea.hbm %s12767_s1, 4194304 }
  0x1f   : > { %s10876_s30 = scalar_lea.hbm %s11246_s26, 131072  ;;  %p10882_p11 = scmp.lt.u32.totalorder %s11246_s26, %s12767_s1 }
  0x20   : > { %p10877_p7 = scmp.ne.s32.totalorder %s11246_s26, %s10876_s30  ;;  %p10883_p12 = scmp.lt.u32.totalorder %s10881_s5, %s10876_s30 }
  0x21   : > { %p10885_p1 = scmp.lt.u32.totalorder %s10876_s30, %s11246_s26 }
  0x22   : > { %p10879_p9 = pnand %p10878_p8, %p10877_p7  ;;  %p10884_p13 = por %p10883_p12, %p10882_p11 }
  0x24   : > { %p10880_p10 = pneg %p10879_p9  ;;  %p10886_p3 = por %p10885_p1, %p10884_p13 }
  0x26   : > { %p10887_p4 = pnand %p10886_p3, %p10880_p10 }
  0x28   : > { %10890 = shalt.err (!%p10887_p4)
}
  0x29   : > { %s10891_s28 = scalar_lea.vmem %s11235_s7, 131072  ;;  %s11122_s9 = smov [#allocation6]  }
  0x2a   : > { %p10892_p7 = scmp.ne.s32.totalorder %s11235_s7, %s10891_s28  ;;  %s10896_s11 = sshll.u32 %s11122_s9, 4  ;;  %s10897_s11 = int_to_ptr.vmem [resolvable:$false] %s10896_s11 }
  0x2b   : > { %s10898_s27 = scalar_lea.vmem %s10897_s11, 262144  ;;  %p10899_p0 = scmp.lt.s32.totalorder %s11235_s7, %s10897_s11 }
  0x2c   : > { %p10894_p9 = pnand %p10892_p7, %p10878_p8  ;;  %p10900_p11 = scmp.lt.s32.totalorder %s10898_s27, %s10891_s28 }
  0x2e   : > { %p10895_p2 = pneg %p10894_p9  ;;  %p10901_p12 = por %p10900_p11, %p10899_p0 }
  0x30   : > { %p10902_p13 = pnand %p10901_p12, %p10895_p2 }
  0x32   : > { %10905 = shalt.err (!%p10902_p13)
}
  0x33   : > { %s11123_s30 = smov 512   ;;  %s11124_s4 = smov 256  }
  0x34   : > { %s11125_s5 = smov 16   ;;  %p218_p0 = scmp.lt.s32.totalorder %s11120_s25, 33 }
  0x35   : > { %9205 = dma.hbm_to_vmem [thread:$0]  (!%p11239_p5), %s11246_s26, 131072, %s11235_s7, %s11249_s29, %s11123_s30, %s11124_s4, %s11125_s5  }
  0x36   : > { %p11280_p2 = pnand %p6043_p6, %p218_p0  ;;  %s11285_s8 = sadd.s32 4294967295, %s11120_s25  }
  0x37   : > { %s31_s28 = sadd.s32 1, %s11112_s23  ;;  %s41_s9 = sadd.s32 1, %s11100_s20 }
  0x38   : > { %s12768_s6 = scalar_select %p11280_p2, 1, 0 }
  0x39   : > { %p32_p4 = scmp.ge.s32.totalorder %s31_s28, 16  ;;  %p48_p5 = scmp.ne.s32.totalorder %s11100_s20, %s11096_s19 }
  0x3a   : > { %p54_p8 = scmp.ne.s32.totalorder %s11096_s19, %s11092_s18  ;;  %s12770_s26 = sadd.s32 1, %s11116_s24 }
  0x3b   : > { %s12816_s28 = smov (%p32_p4, %s31_s28), 0  ;;  %s12818_s26 = smov (!%p32_p4, %s12770_s26), %s11116_s24 }
  0x3c   : > { %12769 = sst [smem:[#allocation17_spill]] %s12816_s28  ;;  %s38_s7 = ssub.s32 %s11112_s23, %s12816_s28 }
  0x3d   : > { %p12771_p6 = scmp.eq.s32.totalorder %s11120_s25, 0  ;;  %p36_p1 = scmp.ge.s32.totalorder %s12818_s26, 2 }
  0x3e   : > { %p39_p3 = scmp.eq.s32.totalorder %s38_s7, 0  ;;  %p12753_p7 = scmp.eq.s32.totalorder %s11285_s8, 0 }
  0x3f   : > { %p11302_p10 = por %p12771_p6, %p48_p5  ;;  %s158_s18 = sand.u32 1, %s11100_s20  }
  0x40   : > { %s12820_s26 = smov (%p36_p1, %s12818_s26), 0  ;;  %p11315_p9 = por %p12753_p7, %p54_p8 }
  0x41   : > { %12773 = sst [smem:[#allocation18_spill]] %s12820_s26  ;;  %s11321_s30 = ssub.s32 %s11116_s24, %s12820_s26 }
  0x42   : > { %s11311_s11 = scalar_select %p39_p3, %s11100_s20, %s41_s9  }
  0x43   : > { %s12775_s27 = scalar_select %p11315_p9, 1, 0 }
  0x44   : > { %12774 = sst [smem:[#allocation19_spill]] %s11311_s11  ;;  %s66_s4 = sor.u32 %s11321_s30, %s38_s7 }
  0x45   : > { %p12776_p11 = scmp.ne.s32.totalorder %s11084_s16, %s11080_s15  ;;  %p67_p13 = scmp.eq.s32.totalorder %s66_s4, 0 }
  0x46   : > { %s6032_s1 = sshll.u32 %s158_s18, 6  ;;  %s6055_s28 = sshll.u32 %s11112_s23, 10 }
  0x47   : > { %p11329_p12 = por %p12776_p11, %p12753_p7  ;;  %s12778_s9 = sadd.s32 1, %s11088_s17 }
  0x48   : > { %s11337_s11 = scalar_select %p67_p13, %s11088_s17, %s12778_s9  }
  0x49   : > { %s12777_s5 = scalar_select %p11329_p12, 1, 0 }
  0x4a   : > { %s12779_s0 = sld [smem:[#allocation20_spill]]  ;;  %s162_s15 = scalar_lea.vmem [#allocation3], %s6032_s1 }
  0x4b   : > { %s170_s7 = sshll.u32 %s162_s15, 4  ;;  %p12780_p0 = scmp.lt.s32.totalorder %s11120_s25, 32  ;;  %s11352_s7 = int_to_ptr.vmem [resolvable:$true] %s170_s7 }
  0x4c   : > { %s159_s9 = scalar_lea.sflag [#allocation4], %s158_s18 }
  0x4d   : > { %p11348_p4 = pnand %p12780_p0, %p11302_p10 }
  0x4f   : > { %p10908_p8 = pneg %p11348_p4 }
  0x50   : > { %s11342_s22 = scalar_lea.hbm %s12779_s0, %s6055_s28  ;;  %s10911_s28 = scalar_lea.hbm %s12779_s0, 16384 }
  0x51   : > { %s10906_s3 = scalar_lea.hbm %s11342_s22, 1024  ;;  %p10912_p10 = scmp.lt.u32.totalorder %s11342_s22, %s12779_s0 }
  0x52   : > { %p10907_p5 = scmp.ne.s32.totalorder %s11342_s22, %s10906_s3  ;;  %p10913_p3 = scmp.lt.u32.totalorder %s10911_s28, %s10906_s3 }
  0x53   : > { %p10915_p13 = scmp.lt.u32.totalorder %s10906_s3, %s11342_s22 }
  0x54   : > { %p10909_p6 = pnand %p10908_p8, %p10907_p5  ;;  %p10914_p11 = por %p10913_p3, %p10912_p10 }
  0x56   : > { %p10910_p1 = pneg %p10909_p6  ;;  %p10916_p0 = por %p10915_p13, %p10914_p11 }
  0x58   : > { %p10917_p7 = pnand %p10916_p0, %p10910_p1 }
  0x5a   : > { %10920 = shalt.err (!%p10917_p7)
}
  0x5b   : > { %s10921_s18 = scalar_lea.vmem %s11352_s7, 1024  ;;  %s11126_s1 = smov [#allocation3]  }
  0x5c   : > { %p10922_p5 = scmp.ne.s32.totalorder %s11352_s7, %s10921_s18  ;;  %s10926_s20 = sshll.u32 %s11126_s1, 4  ;;  %s10927_s20 = int_to_ptr.vmem [resolvable:$false] %s10926_s20 }
  0x5d   : > { %s10928_s10 = scalar_lea.vmem %s10927_s20, 2048  ;;  %p10929_p9 = scmp.lt.s32.totalorder %s11352_s7, %s10927_s20 }
  0x5e   : > { %p10924_p6 = pnand %p10922_p5, %p10908_p8  ;;  %p10930_p10 = scmp.lt.s32.totalorder %s10928_s10, %s10921_s18 }
  0x60   : > { %p10925_p12 = pneg %p10924_p6  ;;  %p10931_p3 = por %p10930_p10, %p10929_p9 }
  0x62   : > { %p10932_p11 = pnand %p10931_p3, %p10925_p12 }
  0x64   : > { %10935 = shalt.err (!%p10932_p11)
}
  0x65   : > { %9202 = dma.hbm_to_vmem [thread:$0]  (!%p11348_p4), %s11342_s22, 1024, %s11352_s7, %s159_s9  }
  0x66   : > { %s6029_s3 = sadd.s32 4294967294, %s11120_s25   ;;  %p93_p7 = scmp.eq.s32.totalorder %s11321_s30, 0 }
  0x67   : > { %s95_s28 = sadd.s32 1, %s11076_s14  ;;  %p102_p9 = scmp.ne.s32.totalorder %s11076_s14, %s11072_s13 }
  0x68   : > { %s11385_s4 = scalar_select %p93_p7, %s11076_s14, %s95_s28  }
  0x69   : > { %p12782_p12 = scmp.eq.s32.totalorder %s11120_s25, 0  ;;  %p108_p1 = scmp.ne.s32.totalorder %s11072_s13, %s11068_s12 }
  0x6a   : > { %p132_p13 = scmp.eq.s32.totalorder %s11285_s8, 31  ;;  %p138_p0 = scmp.eq.s32.totalorder %s6029_s3, 31 }
  0x6b   : > { %p11389_p8 = por %p102_p9, %p12782_p12  ;;  %p12784_p5 = scmp.eq.s32.totalorder %s11285_s8, 0 }
  0x6c   : > { %s203_s22 = sand.u32 1, %s11076_s14   ;;  %p11403_p4 = por %p132_p13, %p102_p9 }
  0x6d   : > { %p11398_p6 = por %p108_p1, %p12784_p5  ;;  %p11407_p10 = por %p138_p0, %p108_p1 }
  0x6e   : > { %s12786_s30 = scalar_select %p11403_p4, 1, 0 }
  0x6f   : > { %s12785_s18 = scalar_select %p11398_p6, 1, 0 }
  0x70   : > { %s12787_s7 = scalar_select %p11407_p10, 1, 0 }
  0x71   : > { %s6040_s9 = sshll.u32 %s203_s22, 2  ;;  %s6057_s1 = sshll.u32 %s11116_s24, 6 }
  0x72   : > { %s11415_s3 = scalar_lea.hbm %s12746_s2, %s6057_s1  ;;  %s205_s28 = scalar_lea.vmem [#allocation8], %s6040_s9 }
  0x73   : > { %s213_s0 = sshll.u32 %s205_s28, 4  ;;  %p12788_p3 = scmp.lt.s32.totalorder %s11120_s25, 32  ;;  %s214_s0 = int_to_ptr.vmem [resolvable:$true] %s213_s0 }
  0x74   : > { %s10936_s22 = scalar_lea.hbm %s11415_s3, 64  ;;  %s10941_s15 = scalar_lea.hbm %s12746_s2, 128 }
  0x75   : > { %p11421_p11 = pnand %p12788_p3, %p11389_p8  ;;  %p10937_p7 = scmp.ne.s32.totalorder %s11415_s3, %s10936_s22 }
  0x76   : > { %p10942_p8 = scmp.lt.u32.totalorder %s11415_s3, %s12746_s2  ;;  %p10943_p13 = scmp.lt.u32.totalorder %s10941_s15, %s10936_s22 }
  0x77   : > { %p10938_p9 = pneg %p11421_p11  ;;  %p10945_p5 = scmp.lt.u32.totalorder %s10936_s22, %s11415_s3 }
  0x78   : > { %p10944_p0 = por %p10943_p13, %p10942_p8 }
  0x79   : > { %p10939_p12 = pnand %p10938_p9, %p10937_p7 }
  0x7a   : > { %p10946_p3 = por %p10945_p5, %p10944_p0 }
  0x7b   : > { %p10940_p1 = pneg %p10939_p12 }
  0x7d   : > { %p10947_p10 = pnand %p10946_p3, %p10940_p1 }
  0x7f   : > { %10950 = shalt.err (!%p10947_p10)
}
  0x80   : > { %s10951_s28 = scalar_lea.vmem %s214_s0, 64  ;;  %s11127_s24 = smov [#allocation8]  }
  0x81   : > { %p10952_p4 = scmp.ne.s32.totalorder %s214_s0, %s10951_s28  ;;  %s10956_s1 = sshll.u32 %s11127_s24, 4  ;;  %s10957_s1 = int_to_ptr.vmem [resolvable:$false] %s10956_s1 }
  0x82   : > { %s10958_s9 = scalar_lea.vmem %s10957_s1, 128  ;;  %p10959_p6 = scmp.lt.s32.totalorder %s214_s0, %s10957_s1 }
  0x83   : > { %p10954_p7 = pnand %p10952_p4, %p10938_p9  ;;  %p10960_p2 = scmp.lt.s32.totalorder %s10958_s9, %s10951_s28 }
  0x85   : > { %p10955_p12 = pneg %p10954_p7  ;;  %p10961_p8 = por %p10960_p2, %p10959_p6 }
  0x87   : > { %p10962_p13 = pnand %p10961_p8, %p10955_p12 }
  0x89   : > { %10965 = shalt.err (!%p10962_p13)
}
  0x8a   : > { %9208 = dma.hbm_to_vmem [thread:$0]  (!%p11421_p11), %s11415_s3, 64, %s214_s0, %s11249_s29  }
  0x8b   : > { %p12790_p10 = scmp.ne.s32.totalorder %s12768_s6, 0 }
  0x8c   : > { %s224_s22 = sand.u32 (!%p12790_p10), 1, %s11096_s19   ;;  %p12791_p4 = scmp.ne.s32.totalorder (!%p12790_p10), %s12775_s27, 0 }
  0x8d   : > { %222 = sbr.rel (%p12790_p10) target bundleno = 1453 (0x5ad), region = 32  ;;  %s6044_s15 = sshll.u32 (!%p12790_p10), %s224_s22, 6 }
  0x8e   : > { %s225_s24 = scalar_lea.sflag (!%p12790_p10), [#allocation4], %s224_s22  ;;  %s11450_s20 = scalar_lea.vmem (!%p12790_p10), [#allocation3], %s6044_s15 }
  0x94   : > { %11051 = dma.done.wait (%p12791_p4), %s225_s24, 1024  }
  0x95   : > { %11053 = vsyncadd (%p12791_p4), %s225_s24, 4294966272  ;;  %s233_s26 = sand.u32 1, %s11285_s8   ;;  %s235_s0 = sand.u32 1, %s11084_s16  }
  0x96   : > { %s6045_s29 = sshll.u32 %s235_s0, 13  ;;  %s234_s6 = scalar_lea.sflag [#allocation7], %s233_s26 }
  0x97   : > { %s11458_s3 = scalar_lea.vmem [#allocation6], %s6045_s29  ;;  %p12792_p2 = scmp.ne.s32.totalorder %s12777_s5, 0 }
  0x99   : > { %11055 = dma.done.wait (%p12792_p2), %s234_s6, 131072  }
  0x9a   : > { %11057 = vsyncadd (%p12792_p2), %s234_s6, 4294836224  ;;  %s11465_s10 = sand.u32 1, %s11072_s13   ;;  %p12793_p6 = scmp.ne.s32.totalorder %s12785_s18, 0 }
  0x9b   : > { %s6046_s27 = sshll.u32 %s11465_s10, 2 }
  0x9c   : > { %s11468_s28 = scalar_lea.vmem [#allocation8], %s6046_s27 }
  0x9d   : > { %11059 = dma.done.wait (%p12793_p6), %s234_s6, 64  }
  0x9e   : > { %11061 = vsyncadd (%p12793_p6), %s234_s6, 4294967232  ;;  %s6047_s8 = sshll.u32 %s11465_s10, 3  ;;  %p6048_p11 = scmp.ne.s32.totalorder %s11104_s21, 0 }
  0x9f   : > { %s11475_s1 = scalar_lea.vmem [#allocation9], %s6047_s8  ;;  %v11128_v0 = vmov (!%p6048_p11), 0.0  }
  0xa0   : > { %287 = sbr.rel (%p6048_p11) target bundleno = 167 (0xa7), region = 48  ;;  %288 = vst [vmem:[#allocation2] sm:$0xff] (!%p6048_p11), %v11128_v0 }
  0xa7 PF: > { %v9332_v1 = vld [vmem:[%s11458_s3 + $0x4] ss:$16 sps:$4 sm:$0xff]   ;;  %v9334_v2 = vld [vmem:[%s11458_s3 + $0xc] ss:$16 sps:$4 sm:$0xff]   ;;  %v9336_v3 = vld [vmem:[%s11458_s3] ss:$16 sps:$4 sm:$0xff]   ;;  %v3382_v39 = vlaneseq }
  0xa8   : > { %6060 = vmatprep.subr.bf16.mxu0 %v9332_v1  ;;  %v9337_v4 = vld [vmem:[%s11458_s3 + $0x8] ss:$16 sps:$4 sm:$0xff]   ;;  %7084 = vmatprep.subr.bf16.mxu1 %v9334_v2  ;;  %v9338_v5 = vld [vmem:[%s11458_s3 + $0x24] ss:$16 sps:$4 sm:$0xff]   ;;  %v9340_v6 = vld [vmem:[%s11458_s3 + $0x2c] ss:$16 sps:$4 sm:$0xff]  }
  0xa9   : > { %6062 = vmatpush1.bf16.msra.mxu0 %v9336_v3  ;;  %7086 = vmatpush1.bf16.msra.mxu1 %v9337_v4  ;;  %v9342_v7 = vld [vmem:[%s11458_s3 + $0x20] ss:$16 sps:$4 sm:$0xff]   ;;  %v9343_v8 = vld [vmem:[%s11458_s3 + $0x28] ss:$16 sps:$4 sm:$0xff]   ;;  %v9344_v9 = vld [vmem:[%s11458_s3 + $0x44] ss:$16 sps:$4 sm:$0xff]  }
  0xaa   : > { %6064 = vmatprep.subr.bf16.mxu0 %v9338_v5  ;;  %7088 = vmatprep.subr.bf16.mxu1 %v9340_v6  ;;  %v9346_v10 = vld [vmem:[%s11458_s3 + $0x4c] ss:$16 sps:$4 sm:$0xff]   ;;  %v9348_v11 = vld [vmem:[%s11458_s3 + $0x40] ss:$16 sps:$4 sm:$0xff]   ;;  %v9349_v12 = vld [vmem:[%s11458_s3 + $0x48] ss:$16 sps:$4 sm:$0xff]  }
  0xab   : > { %v9350_v13 = vld [vmem:[%s11458_s3 + $0x64] ss:$16 sps:$4 sm:$0xff]   ;;  %v9352_v14 = vld [vmem:[%s11458_s3 + $0x6c] ss:$16 sps:$4 sm:$0xff]   ;;  %v9354_v15 = vld [vmem:[%s11458_s3 + $0x60] ss:$16 sps:$4 sm:$0xff]  }
  0xac   : > { %v9355_v16 = vld [vmem:[%s11458_s3 + $0x68] ss:$16 sps:$4 sm:$0xff]   ;;  %v9356_v17 = vld [vmem:[%s11458_s3 + $0x84] ss:$16 sps:$4 sm:$0xff]   ;;  %v9358_v18 = vld [vmem:[%s11458_s3 + $0x8c] ss:$16 sps:$4 sm:$0xff]  }
  0xad   : > { %6066 = vmatpush1.bf16.msra.mxu0 %v9342_v7  ;;  %7090 = vmatpush1.bf16.msra.mxu1 %v9343_v8  ;;  %v9360_v19 = vld [vmem:[%s11458_s3 + $0x80] ss:$16 sps:$4 sm:$0xff]   ;;  %v9361_v20 = vld [vmem:[%s11458_s3 + $0x88] ss:$16 sps:$4 sm:$0xff]   ;;  %v9362_v21 = vld [vmem:[%s11458_s3 + $0xa4] ss:$16 sps:$4 sm:$0xff]  }
  0xae   : > { %6068 = vmatprep.subr.bf16.mxu0 %v9344_v9  ;;  %7092 = vmatprep.subr.bf16.mxu1 %v9346_v10  ;;  %v9364_v22 = vld [vmem:[%s11458_s3 + $0xac] ss:$16 sps:$4 sm:$0xff]   ;;  %v9366_v23 = vld [vmem:[%s11458_s3 + $0xa0] ss:$16 sps:$4 sm:$0xff]   ;;  %v9367_v24 = vld [vmem:[%s11458_s3 + $0xa8] ss:$16 sps:$4 sm:$0xff]  }
  0xaf   : > { %v9368_v25 = vld [vmem:[%s11458_s3 + $0xc4] ss:$16 sps:$4 sm:$0xff]   ;;  %v9370_v26 = vld [vmem:[%s11458_s3 + $0xcc] ss:$16 sps:$4 sm:$0xff]   ;;  %v9372_v27 = vld [vmem:[%s11458_s3 + $0xc0] ss:$16 sps:$4 sm:$0xff]  }
  0xb0   : > { %v9373_v28 = vld [vmem:[%s11458_s3 + $0xc8] ss:$16 sps:$4 sm:$0xff]   ;;  %v9374_v29 = vld [vmem:[%s11458_s3 + $0xe4] ss:$16 sps:$4 sm:$0xff]   ;;  %v9376_v30 = vld [vmem:[%s11458_s3 + $0xec] ss:$16 sps:$4 sm:$0xff]  }
  0xb1   : > { %6070 = vmatpush1.bf16.msra.mxu0 %v9348_v11  ;;  %7094 = vmatpush1.bf16.msra.mxu1 %v9349_v12  ;;  %v9378_v31 = vld [vmem:[%s11458_s3 + $0xe0] ss:$16 sps:$4 sm:$0xff]   ;;  %v9379_v32 = vld [vmem:[%s11458_s3 + $0xe8] ss:$16 sps:$4 sm:$0xff]   ;;  %v9380_v33 = vld [vmem:[%s11458_s3 + $0x104] ss:$16 sps:$4 sm:$0xff]  }
  0xb2   : > { %6072 = vmatprep.subr.bf16.mxu0 %v9350_v13  ;;  %7096 = vmatprep.subr.bf16.mxu1 %v9352_v14  ;;  %v9382_v34 = vld [vmem:[%s11458_s3 + $0x10c] ss:$16 sps:$4 sm:$0xff]   ;;  %v9384_v35 = vld [vmem:[%s11458_s3 + $0x100] ss:$16 sps:$4 sm:$0xff]   ;;  %v9385_v36 = vld [vmem:[%s11458_s3 + $0x108] ss:$16 sps:$4 sm:$0xff]  }
  0xb3   : > { %v11129_v37 = vmov 1983009808   ;;  %v9386_v40 = vld [vmem:[%s11458_s3 + $0x124] ss:$16 sps:$4 sm:$0xff]   ;;  %v9388_v41 = vld [vmem:[%s11458_s3 + $0x12c] ss:$16 sps:$4 sm:$0xff]  }
  0xb4   : > { %v3380_v38 = vunpack.c.l.s4 %v11129_v37  ;;  %v9390_v42 = vld [vmem:[%s11458_s3 + $0x120] ss:$16 sps:$4 sm:$0xff]   ;;  %v11517_v44 = vshrl.u32 %v3382_v39, 7  ;;  %v9391_v45 = vld [vmem:[%s11458_s3 + $0x128] ss:$16 sps:$4 sm:$0xff]   ;;  %p6049_p9 = scmp.ne.s32.totalorder %s11104_s21, 15 }
  0xb5   : > { %6074 = vmatpush1.bf16.msra.mxu0 %v9354_v15  ;;  %7098 = vmatpush1.bf16.msra.mxu1 %v9355_v16  ;;  %v9392_v46 = vld [vmem:[%s11458_s3 + $0x144] ss:$16 sps:$4 sm:$0xff]   ;;  %v9394_v47 = vld [vmem:[%s11458_s3 + $0x14c] ss:$16 sps:$4 sm:$0xff]   ;;  %v9396_v48 = vld [vmem:[%s11458_s3 + $0x140] ss:$16 sps:$4 sm:$0xff]  }
  0xb6   : > { %6076 = vmatprep.subr.bf16.mxu0 %v9356_v17  ;;  %7100 = vmatprep.subr.bf16.mxu1 %v9358_v18  ;;  %v3381_v43 = vunpack.c.0.s8 %v3380_v38  ;;  %v9397_v49 = vld [vmem:[%s11458_s3 + $0x148] ss:$16 sps:$4 sm:$0xff]   ;;  %v9398_v51 = vld [vmem:[%s11458_s3 + $0x164] ss:$16 sps:$4 sm:$0xff]   ;;  %v9400_v52 = vld [vmem:[%s11458_s3 + $0x16c] ss:$16 sps:$4 sm:$0xff]  }
  0xb7   : > { %v3362_v53 = vld [vmem:[%s11450_s20] sm:$0xff]  ;;  %v9403_v56 = vld [vmem:[%s11458_s3 + $0x168] ss:$16 sps:$4 sm:$0xff]   ;;  %v9406_v58 = vld [vmem:[%s11458_s3 + $0x18c] ss:$16 sps:$4 sm:$0xff]  }
  0xb8   : > { %v11525_v50 = vsub.s32 %v3381_v43, %v11517_v44  ;;  %v9402_v54 = vld [vmem:[%s11458_s3 + $0x160] ss:$16 sps:$4 sm:$0xff]   ;;  %v9404_v57 = vld [vmem:[%s11458_s3 + $0x184] ss:$16 sps:$4 sm:$0xff]   ;;  %v9409_v61 = vld [vmem:[%s11458_s3 + $0x188] ss:$16 sps:$4 sm:$0xff]   ;;  %v3378_v8 = vcombine.high %v3362_v53, %v3362_v53 }
  0xb9   : > { %6078 = vmatpush1.bf16.msra.mxu0 %v9360_v19  ;;  %7102 = vmatpush1.bf16.msra.mxu1 %v9361_v20  ;;  %v9408_v60 = vld [vmem:[%s11458_s3 + $0x180] ss:$16 sps:$4 sm:$0xff]   ;;  %v9410_v62 = vld [vmem:[%s11458_s3 + $0x1a4] ss:$16 sps:$4 sm:$0xff]   ;;  %v9412_v63 = vld [vmem:[%s11458_s3 + $0x1ac] ss:$16 sps:$4 sm:$0xff]  }
  0xba   : > { %6080 = vmatprep.subr.bf16.mxu0 %v9362_v21  ;;  %7104 = vmatprep.subr.bf16.mxu1 %v9364_v22  ;;  %v3385_v55 = vrot.slane %v3362_v53, %v11525_v50  ;;  %v9414_v0 = vld [vmem:[%s11458_s3 + $0x1a0] ss:$16 sps:$4 sm:$0xff]   ;;  %v9415_v1 = vld [vmem:[%s11458_s3 + $0x1a8] ss:$16 sps:$4 sm:$0xff]   ;;  %v9416_v2 = vld [vmem:[%s11458_s3 + $0x1c4] ss:$16 sps:$4 sm:$0xff]   ;;  %v11552_v13 = vrot.slane %v3378_v8, %v11525_v50 }
  0xbb   : > { %v9418_v3 = vld [vmem:[%s11458_s3 + $0x1cc] ss:$16 sps:$4 sm:$0xff]   ;;  %v9420_v4 = vld [vmem:[%s11458_s3 + $0x1c0] ss:$16 sps:$4 sm:$0xff]   ;;  %v9421_v5 = vld [vmem:[%s11458_s3 + $0x1c8] ss:$16 sps:$4 sm:$0xff]  }
  0xbc   : > { %v3393_v59 = vcombine.high %v3385_v55, %v3385_v55  ;;  %v9422_v6 = vld [vmem:[%s11458_s3 + $0x1e4] ss:$16 sps:$4 sm:$0xff]   ;;  %v9424_v7 = vld [vmem:[%s11458_s3 + $0x1ec] ss:$16 sps:$4 sm:$0xff]   ;;  %v9426_v9 = vld [vmem:[%s11458_s3 + $0x1e0] ss:$16 sps:$4 sm:$0xff]   ;;  %v3394_v18 = vcombine.high %v11552_v13, %v11552_v13 }
  0xbd   : > { %6082 = vmatpush1.bf16.msra.mxu0 %v9366_v23  ;;  %7106 = vmatpush1.bf16.msra.mxu1 %v9367_v24  ;;  %v9427_v10 = vld [vmem:[%s11458_s3 + $0x1e8] ss:$16 sps:$4 sm:$0xff]   ;;  %v9429_v11 = vld [vmem:[%s11458_s3 + $0x204] ss:$16 sps:$4 sm:$0xff]   ;;  %v9432_v12 = vld [vmem:[%s11458_s3 + $0x20c] ss:$16 sps:$4 sm:$0xff]  }
  0xbe   : > { %6084 = vmatprep.subr.bf16.mxu0 %v9368_v25  ;;  %7108 = vmatprep.subr.bf16.mxu1 %v9370_v26  ;;  %v9431_v14 = vld [vmem:[%s11458_s3 + $0x200] ss:$16 sps:$4 sm:$0xff]   ;;  %v9434_v15 = vld [vmem:[%s11458_s3 + $0x208] ss:$16 sps:$4 sm:$0xff]   ;;  %v9435_v16 = vld [vmem:[%s11458_s3 + $0x224] ss:$16 sps:$4 sm:$0xff]  }
  0xbf   : > { %3610 = vmatprep.mubr.f32.mxu0 %v3393_v59  ;;  %4746 = vmatprep.mubr.f32.mxu1 %v3393_v59  ;;  %v9438_v17 = vld [vmem:[%s11458_s3 + $0x22c] ss:$16 sps:$4 sm:$0xff]   ;;  %v9437_v19 = vld [vmem:[%s11458_s3 + $0x220] ss:$16 sps:$4 sm:$0xff]   ;;  %v9440_v20 = vld [vmem:[%s11458_s3 + $0x228] ss:$16 sps:$4 sm:$0xff]  }
  0xc0   : > { %v9441_v21 = vld [vmem:[%s11458_s3 + $0x244] ss:$16 sps:$4 sm:$0xff]   ;;  %v9444_v22 = vld [vmem:[%s11458_s3 + $0x24c] ss:$16 sps:$4 sm:$0xff]   ;;  %v9443_v23 = vld [vmem:[%s11458_s3 + $0x240] ss:$16 sps:$4 sm:$0xff]  }
  0xc1   : > { %6086 = vmatpush1.bf16.msra.mxu0 %v9372_v27  ;;  %7110 = vmatpush1.bf16.msra.mxu1 %v9373_v28  ;;  %v9446_v24 = vld [vmem:[%s11458_s3 + $0x248] ss:$16 sps:$4 sm:$0xff]   ;;  %v9447_v25 = vld [vmem:[%s11458_s3 + $0x264] ss:$16 sps:$4 sm:$0xff]   ;;  %v9450_v26 = vld [vmem:[%s11458_s3 + $0x26c] ss:$16 sps:$4 sm:$0xff]  }
  0xc2   : > { %6088 = vmatprep.subr.bf16.mxu0 %v9374_v29  ;;  %7112 = vmatprep.subr.bf16.mxu1 %v9376_v30  ;;  %v9449_v27 = vld [vmem:[%s11458_s3 + $0x260] ss:$16 sps:$4 sm:$0xff]   ;;  %v9452_v28 = vld [vmem:[%s11458_s3 + $0x268] ss:$16 sps:$4 sm:$0xff]   ;;  %v9453_v29 = vld [vmem:[%s11458_s3 + $0x284] ss:$16 sps:$4 sm:$0xff]  }
  0xc3   : > { %v9456_v30 = vld [vmem:[%s11458_s3 + $0x28c] ss:$16 sps:$4 sm:$0xff]   ;;  %v9465_v37 = vld [vmem:[%s11458_s3 + $0x2c4] ss:$16 sps:$4 sm:$0xff]   ;;  %v9467_v39 = vld [vmem:[%s11458_s3 + $0x2c0] ss:$16 sps:$4 sm:$0xff]  }
  0xc4   : > { %v9468_v38 = vld [vmem:[%s11458_s3 + $0x2cc] ss:$16 sps:$4 sm:$0xff]   ;;  %v9473_v43 = vld [vmem:[%s11458_s3 + $0x2e0] ss:$16 sps:$4 sm:$0xff]   ;;  %v9495_v59 = vld [vmem:[%s11458_s3 + $0x364] ss:$16 sps:$4 sm:$0xff]  }
  0xc5   : > { %6090 = vmatpush1.bf16.msra.mxu0 %v9378_v31  ;;  %7114 = vmatpush1.bf16.msra.mxu1 %v9379_v32  ;;  %v9455_v31 = vld [vmem:[%s11458_s3 + $0x280] ss:$16 sps:$4 sm:$0xff]   ;;  %v9458_v32 = vld [vmem:[%s11458_s3 + $0x288] ss:$16 sps:$4 sm:$0xff]   ;;  %v9516_v8 = vld [vmem:[%s11458_s3 + $0x3cc] ss:$16 sps:$4 sm:$0xff]  }
  0xc6   : > { %6092 = vmatprep.subr.bf16.mxu0 %v9380_v33  ;;  %7116 = vmatprep.subr.bf16.mxu1 %v9382_v34  ;;  %v9459_v33 = vld [vmem:[%s11458_s3 + $0x2a4] ss:$16 sps:$4 sm:$0xff]   ;;  %v9462_v34 = vld [vmem:[%s11458_s3 + $0x2ac] ss:$16 sps:$4 sm:$0xff]   ;;  %v9485_v53 = vld [vmem:[%s11458_s3 + $0x320] ss:$16 sps:$4 sm:$0xff]  }
  0xc9   : > { %6094 = vmatpush1.bf16.msra.mxu0 %v9384_v35  ;;  %7118 = vmatpush1.bf16.msra.mxu1 %v9385_v36  ;;  %v9461_v35 = vld [vmem:[%s11458_s3 + $0x2a0] ss:$16 sps:$4 sm:$0xff]   ;;  %v9464_v36 = vld [vmem:[%s11458_s3 + $0x2a8] ss:$16 sps:$4 sm:$0xff]  }
  0xca   : > { %6096 = vmatprep.subr.bf16.mxu0 %v9386_v40  ;;  %7120 = vmatprep.subr.bf16.mxu1 %v9388_v41  ;;  %v9470_v40 = vld [vmem:[%s11458_s3 + $0x2c8] ss:$16 sps:$4 sm:$0xff]   ;;  %v9471_v41 = vld [vmem:[%s11458_s3 + $0x2e4] ss:$16 sps:$4 sm:$0xff]  }
  0xcd   : > { %6098 = vmatpush1.bf16.msra.mxu0 %v9390_v42  ;;  %7122 = vmatpush1.bf16.msra.mxu1 %v9391_v45  ;;  %v9474_v42 = vld [vmem:[%s11458_s3 + $0x2ec] ss:$16 sps:$4 sm:$0xff]   ;;  %v9476_v45 = vld [vmem:[%s11458_s3 + $0x2e8] ss:$16 sps:$4 sm:$0xff]  }
  0xce   : > { %6100 = vmatprep.subr.bf16.mxu0 %v9392_v46  ;;  %7124 = vmatprep.subr.bf16.mxu1 %v9394_v47  ;;  %v9477_v46 = vld [vmem:[%s11458_s3 + $0x304] ss:$16 sps:$4 sm:$0xff]   ;;  %v9480_v47 = vld [vmem:[%s11458_s3 + $0x30c] ss:$16 sps:$4 sm:$0xff]  }
  0xd1   : > { %6102 = vmatpush1.bf16.msra.mxu0 %v9396_v48  ;;  %7126 = vmatpush1.bf16.msra.mxu1 %v9397_v49  ;;  %v9479_v48 = vld [vmem:[%s11458_s3 + $0x300] ss:$16 sps:$4 sm:$0xff]   ;;  %v9482_v49 = vld [vmem:[%s11458_s3 + $0x308] ss:$16 sps:$4 sm:$0xff]  }
  0xd2   : > { %6104 = vmatprep.subr.bf16.mxu0 %v9398_v51  ;;  %7128 = vmatprep.subr.bf16.mxu1 %v9400_v52  ;;  %v9483_v51 = vld [vmem:[%s11458_s3 + $0x324] ss:$16 sps:$4 sm:$0xff]   ;;  %v9486_v52 = vld [vmem:[%s11458_s3 + $0x32c] ss:$16 sps:$4 sm:$0xff]  }
  0xd5   : > { %6106 = vmatpush1.bf16.msra.mxu0 %v9402_v54  ;;  %7130 = vmatpush1.bf16.msra.mxu1 %v9403_v56  ;;  %v9488_v54 = vld [vmem:[%s11458_s3 + $0x328] ss:$16 sps:$4 sm:$0xff]   ;;  %v9492_v56 = vld [vmem:[%s11458_s3 + $0x34c] ss:$16 sps:$4 sm:$0xff]  }
  0xd6   : > { %6108 = vmatprep.subr.bf16.mxu0 %v9404_v57  ;;  %7132 = vmatprep.subr.bf16.mxu1 %v9406_v58  ;;  %v9491_v57 = vld [vmem:[%s11458_s3 + $0x340] ss:$16 sps:$4 sm:$0xff]   ;;  %v9494_v58 = vld [vmem:[%s11458_s3 + $0x348] ss:$16 sps:$4 sm:$0xff]  }
  0xd9   : > { %6110 = vmatpush1.bf16.msra.mxu0 %v9408_v60  ;;  %7134 = vmatpush1.bf16.msra.mxu1 %v9409_v61  ;;  %v9498_v60 = vld [vmem:[%s11458_s3 + $0x36c] ss:$16 sps:$4 sm:$0xff]   ;;  %v9497_v61 = vld [vmem:[%s11458_s3 + $0x360] ss:$16 sps:$4 sm:$0xff]  }
  0xda   : > { %6112 = vmatprep.subr.bf16.mxu0 %v9410_v62  ;;  %7136 = vmatprep.subr.bf16.mxu1 %v9412_v63  ;;  %v9500_v62 = vld [vmem:[%s11458_s3 + $0x368] ss:$16 sps:$4 sm:$0xff]   ;;  %v9501_v63 = vld [vmem:[%s11458_s3 + $0x384] ss:$16 sps:$4 sm:$0xff]  }
  0xdd   : > { %6114 = vmatpush1.bf16.msra.mxu0 %v9414_v0  ;;  %7138 = vmatpush1.bf16.msra.mxu1 %v9415_v1  ;;  %v9504_v0 = vld [vmem:[%s11458_s3 + $0x38c] ss:$16 sps:$4 sm:$0xff]   ;;  %v9503_v1 = vld [vmem:[%s11458_s3 + $0x380] ss:$16 sps:$4 sm:$0xff]  }
  0xde   : > { %6116 = vmatprep.subr.bf16.mxu0 %v9416_v2  ;;  %7140 = vmatprep.subr.bf16.mxu1 %v9418_v3  ;;  %v9506_v2 = vld [vmem:[%s11458_s3 + $0x388] ss:$16 sps:$4 sm:$0xff]   ;;  %v9507_v3 = vld [vmem:[%s11458_s3 + $0x3a4] ss:$16 sps:$4 sm:$0xff]  }
  0xe1   : > { %6118 = vmatpush1.bf16.msra.mxu0 %v9420_v4  ;;  %7142 = vmatpush1.bf16.msra.mxu1 %v9421_v5  ;;  %v9510_v4 = vld [vmem:[%s11458_s3 + $0x3ac] ss:$16 sps:$4 sm:$0xff]   ;;  %v9509_v5 = vld [vmem:[%s11458_s3 + $0x3a0] ss:$16 sps:$4 sm:$0xff]  }
  0xe2   : > { %6120 = vmatprep.subr.bf16.mxu0 %v9422_v6  ;;  %7144 = vmatprep.subr.bf16.mxu1 %v9424_v7  ;;  %v9512_v6 = vld [vmem:[%s11458_s3 + $0x3a8] ss:$16 sps:$4 sm:$0xff]   ;;  %v9513_v7 = vld [vmem:[%s11458_s3 + $0x3c4] ss:$16 sps:$4 sm:$0xff]  }
  0xe5   : > { %6122 = vmatpush1.bf16.msra.mxu0 %v9426_v9  ;;  %7146 = vmatpush1.bf16.msra.mxu1 %v9427_v10  ;;  %v9515_v9 = vld [vmem:[%s11458_s3 + $0x3c0] ss:$16 sps:$4 sm:$0xff]   ;;  %v9518_v10 = vld [vmem:[%s11458_s3 + $0x3c8] ss:$16 sps:$4 sm:$0xff]  }
  0xe6   : > { %6124 = vmatprep.subr.bf16.mxu0 %v9429_v11  ;;  %7148 = vmatprep.subr.bf16.mxu1 %v9432_v12  ;;  %v9519_v11 = vld [vmem:[%s11458_s3 + $0x3e4] ss:$16 sps:$4 sm:$0xff]   ;;  %v9522_v12 = vld [vmem:[%s11458_s3 + $0x3ec] ss:$16 sps:$4 sm:$0xff]  }
  0xe8   : > { %3611 = vmatmul.mubr.f32.vlgmr.msra.gmra.mrb[0].mxu0 %v3385_v55  ;;  %4747 = vmatmul.mubr.f32.vlgmr.msra.gmra.mrb[0].mxu1 %v3385_v55  ;;  %v9489_v55 = vld [vmem:[%s11458_s3 + $0x344] ss:$16 sps:$4 sm:$0xff]  }
  0xe9   : > { %6126 = vmatpush1.bf16.msra.mxu0 %v9431_v14  ;;  %7150 = vmatpush1.bf16.msra.mxu1 %v9434_v15  ;;  %v9521_v14 = vld [vmem:[%s11458_s3 + $0x3e0] ss:$16 sps:$4 sm:$0xff]   ;;  %v9524_v15 = vld [vmem:[%s11458_s3 + $0x3e8] ss:$16 sps:$4 sm:$0xff]  }
  0xea   : > { %6128 = vmatprep.subr.bf16.mxu0 %v9435_v16  ;;  %7152 = vmatprep.subr.bf16.mxu1 %v9438_v17  ;;  %v9525_v16 = vld [vmem:[%s11458_s3 + $0x404] ss:$16 sps:$4 sm:$0xff]   ;;  %v9528_v17 = vld [vmem:[%s11458_s3 + $0x40c] ss:$16 sps:$4 sm:$0xff]  }
  0xeb   : > { %3681 = vmatprep.mubr.f32.mxu0 %v3394_v18  ;;  %4817 = vmatprep.mubr.f32.mxu1 %v3394_v18  ;;  %v9527_v18 = vld [vmem:[%s11458_s3 + $0x400] ss:$16 sps:$4 sm:$0xff]  }
  0xed   : > { %6130 = vmatpush1.bf16.msra.mxu0 %v9437_v19  ;;  %7154 = vmatpush1.bf16.msra.mxu1 %v9440_v20  ;;  %v9530_v19 = vld [vmem:[%s11458_s3 + $0x408] ss:$16 sps:$4 sm:$0xff]  }
  0xee   : > { %6132 = vmatprep.subr.bf16.mxu0 %v9441_v21  ;;  %7156 = vmatprep.subr.bf16.mxu1 %v9444_v22  ;;  %v11623_v20 = vld [vmem:[%s11450_s20 + $0x8] sm:$0xff]  ;;  %v9531_v21 = vld [vmem:[%s11458_s3 + $0x424] ss:$16 sps:$4 sm:$0xff]  }
  0xef   : > { %v9534_v22 = vld [vmem:[%s11458_s3 + $0x42c] ss:$16 sps:$4 sm:$0xff]  }
  0xf1   : > { %6134 = vmatpush1.bf16.msra.mxu0 %v9443_v23  ;;  %7158 = vmatpush1.bf16.msra.mxu1 %v9446_v24  ;;  %v11629_v23 = vrot.slane %v11623_v20, %v11525_v50 }
  0xf2   : > { %6136 = vmatprep.subr.bf16.mxu0 %v9447_v25  ;;  %7160 = vmatprep.subr.bf16.mxu1 %v9450_v26  ;;  %v9533_v25 = vld [vmem:[%s11458_s3 + $0x420] ss:$16 sps:$4 sm:$0xff]   ;;  %v9536_v26 = vld [vmem:[%s11458_s3 + $0x428] ss:$16 sps:$4 sm:$0xff]  }
  0xf3   : > { %v3410_v24 = vcombine.high %v11629_v23, %v11629_v23 }
  0xf5   : > { %6138 = vmatpush1.bf16.msra.mxu0 %v9449_v27  ;;  %7162 = vmatpush1.bf16.msra.mxu1 %v9452_v28  ;;  %v9537_v27 = vld [vmem:[%s11458_s3 + $0x444] ss:$16 sps:$4 sm:$0xff]   ;;  %v9540_v28 = vld [vmem:[%s11458_s3 + $0x44c] ss:$16 sps:$4 sm:$0xff]  }
  0xf6   : > { %6140 = vmatprep.subr.bf16.mxu0 %v9453_v29  ;;  %7164 = vmatprep.subr.bf16.mxu1 %v9456_v30  ;;  %v9542_v29 = vld [vmem:[%s11458_s3 + $0x448] ss:$16 sps:$4 sm:$0xff]   ;;  %v9543_v30 = vld [vmem:[%s11458_s3 + $0x464] ss:$16 sps:$4 sm:$0xff]  }
  0xf9   : > { %6142 = vmatpush1.bf16.msra.mxu0 %v9455_v31  ;;  %7166 = vmatpush1.bf16.msra.mxu1 %v9458_v32  ;;  %v9546_v31 = vld [vmem:[%s11458_s3 + $0x46c] ss:$16 sps:$4 sm:$0xff]   ;;  %v9545_v32 = vld [vmem:[%s11458_s3 + $0x460] ss:$16 sps:$4 sm:$0xff]  }
  0xfa   : > { %6144 = vmatprep.subr.bf16.mxu0 %v9459_v33  ;;  %7168 = vmatprep.subr.bf16.mxu1 %v9462_v34  ;;  %v9548_v33 = vld [vmem:[%s11458_s3 + $0x468] ss:$16 sps:$4 sm:$0xff]   ;;  %v9549_v34 = vld [vmem:[%s11458_s3 + $0x484] ss:$16 sps:$4 sm:$0xff]  }
  0xfd   : > { %6146 = vmatpush1.bf16.msra.mxu0 %v9461_v35  ;;  %7170 = vmatpush1.bf16.msra.mxu1 %v9464_v36  ;;  %v9552_v35 = vld [vmem:[%s11458_s3 + $0x48c] ss:$16 sps:$4 sm:$0xff]   ;;  %v9551_v36 = vld [vmem:[%s11458_s3 + $0x480] ss:$16 sps:$4 sm:$0xff]  }
  0xfe   : > { %6148 = vmatprep.subr.bf16.mxu0 %v9465_v37  ;;  %7172 = vmatprep.subr.bf16.mxu1 %v9468_v38  ;;  %v9554_v37 = vld [vmem:[%s11458_s3 + $0x488] ss:$16 sps:$4 sm:$0xff]   ;;  %v9555_v38 = vld [vmem:[%s11458_s3 + $0x4a4] ss:$16 sps:$4 sm:$0xff]  }
 0x101   : > { %6150 = vmatpush1.bf16.msra.mxu0 %v9467_v39  ;;  %7174 = vmatpush1.bf16.msra.mxu1 %v9470_v40  ;;  %v9558_v39 = vld [vmem:[%s11458_s3 + $0x4ac] ss:$16 sps:$4 sm:$0xff]   ;;  %v9557_v40 = vld [vmem:[%s11458_s3 + $0x4a0] ss:$16 sps:$4 sm:$0xff]  }
 0x102   : > { %6152 = vmatprep.subr.bf16.mxu0 %v9471_v41  ;;  %7176 = vmatprep.subr.bf16.mxu1 %v9474_v42  ;;  %v9560_v41 = vld [vmem:[%s11458_s3 + $0x4a8] ss:$16 sps:$4 sm:$0xff]   ;;  %v9561_v42 = vld [vmem:[%s11458_s3 + $0x4c4] ss:$16 sps:$4 sm:$0xff]  }
 0x105   : > { %6154 = vmatpush1.bf16.msra.mxu0 %v9473_v43  ;;  %7178 = vmatpush1.bf16.msra.mxu1 %v9476_v45  ;;  %v9564_v43 = vld [vmem:[%s11458_s3 + $0x4cc] ss:$16 sps:$4 sm:$0xff]   ;;  %v9563_v45 = vld [vmem:[%s11458_s3 + $0x4c0] ss:$16 sps:$4 sm:$0xff]  }
 0x106   : > { %6156 = vmatprep.subr.bf16.mxu0 %v9477_v46  ;;  %7180 = vmatprep.subr.bf16.mxu1 %v9480_v47  ;;  %v9566_v46 = vld [vmem:[%s11458_s3 + $0x4c8] ss:$16 sps:$4 sm:$0xff]   ;;  %v9567_v47 = vld [vmem:[%s11458_s3 + $0x4e4] ss:$16 sps:$4 sm:$0xff]  }
 0x109   : > { %6158 = vmatpush1.bf16.msra.mxu0 %v9479_v48  ;;  %7182 = vmatpush1.bf16.msra.mxu1 %v9482_v49  ;;  %v9570_v48 = vld [vmem:[%s11458_s3 + $0x4ec] ss:$16 sps:$4 sm:$0xff]   ;;  %v9569_v49 = vld [vmem:[%s11458_s3 + $0x4e0] ss:$16 sps:$4 sm:$0xff]  }
 0x10a   : > { %6160 = vmatprep.subr.bf16.mxu0 %v9483_v51  ;;  %7184 = vmatprep.subr.bf16.mxu1 %v9486_v52  ;;  %v9572_v51 = vld [vmem:[%s11458_s3 + $0x4e8] ss:$16 sps:$4 sm:$0xff]   ;;  %v9573_v52 = vld [vmem:[%s11458_s3 + $0x504] ss:$16 sps:$4 sm:$0xff]  }
 0x10d   : > { %6162 = vmatpush1.bf16.msra.mxu0 %v9485_v53  ;;  %7186 = vmatpush1.bf16.msra.mxu1 %v9488_v54  ;;  %v9576_v53 = vld [vmem:[%s11458_s3 + $0x50c] ss:$16 sps:$4 sm:$0xff]   ;;  %v9575_v54 = vld [vmem:[%s11458_s3 + $0x500] ss:$16 sps:$4 sm:$0xff]  }
 0x10e   : > { %6164 = vmatprep.subr.bf16.mxu0 %v9489_v55  ;;  %7188 = vmatprep.subr.bf16.mxu1 %v9492_v56  ;;  %v9578_v55 = vld [vmem:[%s11458_s3 + $0x508] ss:$16 sps:$4 sm:$0xff]   ;;  %v9579_v56 = vld [vmem:[%s11458_s3 + $0x524] ss:$16 sps:$4 sm:$0xff]  }
 0x111   : > { %6166 = vmatpush1.bf16.msra.mxu0 %v9491_v57  ;;  %7190 = vmatpush1.bf16.msra.mxu1 %v9494_v58  ;;  %v9582_v57 = vld [vmem:[%s11458_s3 + $0x52c] ss:$16 sps:$4 sm:$0xff]   ;;  %v9581_v58 = vld [vmem:[%s11458_s3 + $0x520] ss:$16 sps:$4 sm:$0xff]  }
 0x112   : > { %6168 = vmatprep.subr.bf16.mxu0 %v9495_v59  ;;  %7192 = vmatprep.subr.bf16.mxu1 %v9498_v60  ;;  %v9584_v59 = vld [vmem:[%s11458_s3 + $0x528] ss:$16 sps:$4 sm:$0xff]   ;;  %v9585_v60 = vld [vmem:[%s11458_s3 + $0x544] ss:$16 sps:$4 sm:$0xff]  }
 0x115   : > { %6170 = vmatpush1.bf16.msra.mxu0 %v9497_v61  ;;  %7194 = vmatpush1.bf16.msra.mxu1 %v9500_v62  ;;  %v9588_v61 = vld [vmem:[%s11458_s3 + $0x54c] ss:$16 sps:$4 sm:$0xff]   ;;  %v9587_v62 = vld [vmem:[%s11458_s3 + $0x540] ss:$16 sps:$4 sm:$0xff]  }
 0x116   : > { %6172 = vmatprep.subr.bf16.mxu0 %v9501_v63  ;;  %7196 = vmatprep.subr.bf16.mxu1 %v9504_v0  ;;  %v9590_v63 = vld [vmem:[%s11458_s3 + $0x548] ss:$16 sps:$4 sm:$0xff]   ;;  %v9591_v0 = vld [vmem:[%s11458_s3 + $0x564] ss:$16 sps:$4 sm:$0xff]  }
 0x119   : > { %6174 = vmatpush1.bf16.msra.mxu0 %v9503_v1  ;;  %7198 = vmatpush1.bf16.msra.mxu1 %v9506_v2  ;;  %v9594_v1 = vld [vmem:[%s11458_s3 + $0x56c] ss:$16 sps:$4 sm:$0xff]   ;;  %v9593_v2 = vld [vmem:[%s11458_s3 + $0x560] ss:$16 sps:$4 sm:$0xff]  }
 0x11a   : > { %6176 = vmatprep.subr.bf16.mxu0 %v9507_v3  ;;  %7200 = vmatprep.subr.bf16.mxu1 %v9510_v4  ;;  %v9596_v3 = vld [vmem:[%s11458_s3 + $0x568] ss:$16 sps:$4 sm:$0xff]   ;;  %v9597_v4 = vld [vmem:[%s11458_s3 + $0x584] ss:$16 sps:$4 sm:$0xff]  }
 0x11d   : > { %6178 = vmatpush1.bf16.msra.mxu0 %v9509_v5  ;;  %7202 = vmatpush1.bf16.msra.mxu1 %v9512_v6  ;;  %v9600_v5 = vld [vmem:[%s11458_s3 + $0x58c] ss:$16 sps:$4 sm:$0xff]   ;;  %v9599_v6 = vld [vmem:[%s11458_s3 + $0x580] ss:$16 sps:$4 sm:$0xff]  }
 0x11e   : > { %6180 = vmatprep.subr.bf16.mxu0 %v9513_v7  ;;  %7204 = vmatprep.subr.bf16.mxu1 %v9516_v8  ;;  %v9602_v7 = vld [vmem:[%s11458_s3 + $0x588] ss:$16 sps:$4 sm:$0xff]   ;;  %v9603_v8 = vld [vmem:[%s11458_s3 + $0x5a4] ss:$16 sps:$4 sm:$0xff]  }
 0x121   : > { %6182 = vmatpush1.bf16.msra.mxu0 %v9515_v9  ;;  %7206 = vmatpush1.bf16.msra.mxu1 %v9518_v10  ;;  %v9606_v9 = vld [vmem:[%s11458_s3 + $0x5ac] ss:$16 sps:$4 sm:$0xff]   ;;  %v9605_v10 = vld [vmem:[%s11458_s3 + $0x5a0] ss:$16 sps:$4 sm:$0xff]  }
 0x122   : > { %6184 = vmatprep.subr.bf16.mxu0 %v9519_v11  ;;  %7208 = vmatprep.subr.bf16.mxu1 %v9522_v12  ;;  %v9608_v11 = vld [vmem:[%s11458_s3 + $0x5a8] ss:$16 sps:$4 sm:$0xff]   ;;  %v9609_v12 = vld [vmem:[%s11458_s3 + $0x5c4] ss:$16 sps:$4 sm:$0xff]  }
 0x125   : > { %6186 = vmatpush1.bf16.msra.mxu0 %v9521_v14  ;;  %7210 = vmatpush1.bf16.msra.mxu1 %v9524_v15  ;;  %v9612_v14 = vld [vmem:[%s11458_s3 + $0x5cc] ss:$16 sps:$4 sm:$0xff]   ;;  %v9611_v15 = vld [vmem:[%s11458_s3 + $0x5c0] ss:$16 sps:$4 sm:$0xff]  }
 0x126   : > { %6188 = vmatprep.subr.bf16.mxu0 %v9525_v16  ;;  %7212 = vmatprep.subr.bf16.mxu1 %v9528_v17  ;;  %v9614_v16 = vld [vmem:[%s11458_s3 + $0x5c8] ss:$16 sps:$4 sm:$0xff]   ;;  %v9615_v17 = vld [vmem:[%s11458_s3 + $0x5e4] ss:$16 sps:$4 sm:$0xff]  }
 0x128   : > { %3682 = vmatmul.mubr.f32.vlgmr.msra.gmra.mrb[0].mxu0 %v11552_v13  ;;  %4818 = vmatmul.mubr.f32.vlgmr.msra.gmra.mrb[0].mxu1 %v11552_v13  ;;  %v9539_v13 = vld [vmem:[%s11458_s3 + $0x440] ss:$16 sps:$4 sm:$0xff]  }
 0x129   : > { %6190 = vmatpush1.bf16.msra.mxu0 %v9527_v18  ;;  %7214 = vmatpush1.bf16.msra.mxu1 %v9530_v19  ;;  %v9618_v18 = vld [vmem:[%s11458_s3 + $0x5ec] ss:$16 sps:$4 sm:$0xff]   ;;  %v3395_v19 = vcombine.high %v11623_v20, %v11623_v20  ;;  %v9626_v20 = vld [vmem:[%s11458_s3 + $0x608] ss:$16 sps:$4 sm:$0xff]  }
 0x12a   : > { %6192 = vmatprep.subr.bf16.mxu0 %v9531_v21  ;;  %7216 = vmatprep.subr.bf16.mxu1 %v9534_v22  ;;  %v9617_v21 = vld [vmem:[%s11458_s3 + $0x5e0] ss:$16 sps:$4 sm:$0xff]   ;;  %v9620_v22 = vld [vmem:[%s11458_s3 + $0x5e8] ss:$16 sps:$4 sm:$0xff]  }
 0x12b   : > { %3752 = vmatprep.mubr.f32.mxu0 %v3410_v24  ;;  %4888 = vmatprep.mubr.f32.mxu1 %v3410_v24  ;;  %v9621_v24 = vld [vmem:[%s11458_s3 + $0x604] ss:$16 sps:$4 sm:$0xff]  }
 0x12d   : > { %6194 = vmatpush1.bf16.msra.mxu0 %v9533_v25  ;;  %7218 = vmatpush1.bf16.msra.mxu1 %v9536_v26  ;;  %v9624_v25 = vld [vmem:[%s11458_s3 + $0x60c] ss:$16 sps:$4 sm:$0xff]   ;;  %v11698_v26 = vrot.slane %v3395_v19, %v11525_v50 }
 0x12e   : > { %6196 = vmatprep.subr.bf16.mxu0 %v9537_v27  ;;  %7220 = vmatprep.subr.bf16.mxu1 %v9540_v28  ;;  %v9623_v27 = vld [vmem:[%s11458_s3 + $0x600] ss:$16 sps:$4 sm:$0xff]   ;;  %v9627_v28 = vld [vmem:[%s11458_s3 + $0x624] ss:$16 sps:$4 sm:$0xff]   ;;  %v9708_v19 = vld [vmem:[%s11458_s3 + $0x7cc] ss:$16 sps:$4 sm:$0xff]  }
 0x131   : > { %6198 = vmatpush1.bf16.msra.mxu0 %v9539_v13  ;;  %7222 = vmatpush1.bf16.msra.mxu1 %v9542_v29  ;;  %v9630_v13 = vld [vmem:[%s11458_s3 + $0x62c] ss:$16 sps:$4 sm:$0xff]   ;;  %v3411_v29 = vcombine.high %v11698_v26, %v11698_v26 }
 0x132   : > { %6200 = vmatprep.subr.bf16.mxu0 %v9543_v30  ;;  %7224 = vmatprep.subr.bf16.mxu1 %v9546_v31  ;;  %v9629_v30 = vld [vmem:[%s11458_s3 + $0x620] ss:$16 sps:$4 sm:$0xff]   ;;  %v9632_v31 = vld [vmem:[%s11458_s3 + $0x628] ss:$16 sps:$4 sm:$0xff]  }
 0x135   : > { %6202 = vmatpush1.bf16.msra.mxu0 %v9545_v32  ;;  %7226 = vmatpush1.bf16.msra.mxu1 %v9548_v33  ;;  %v9633_v32 = vld [vmem:[%s11458_s3 + $0x644] ss:$16 sps:$4 sm:$0xff]   ;;  %v9636_v33 = vld [vmem:[%s11458_s3 + $0x64c] ss:$16 sps:$4 sm:$0xff]  }
 0x136   : > { %6204 = vmatprep.subr.bf16.mxu0 %v9549_v34  ;;  %7228 = vmatprep.subr.bf16.mxu1 %v9552_v35  ;;  %v9635_v34 = vld [vmem:[%s11458_s3 + $0x640] ss:$16 sps:$4 sm:$0xff]   ;;  %v9639_v35 = vld [vmem:[%s11458_s3 + $0x664] ss:$16 sps:$4 sm:$0xff]  }
 0x139   : > { %6206 = vmatpush1.bf16.msra.mxu0 %v9551_v36  ;;  %7230 = vmatpush1.bf16.msra.mxu1 %v9554_v37  ;;  %v9642_v36 = vld [vmem:[%s11458_s3 + $0x66c] ss:$16 sps:$4 sm:$0xff]   ;;  %v9641_v37 = vld [vmem:[%s11458_s3 + $0x660] ss:$16 sps:$4 sm:$0xff]  }
 0x13a   : > { %6208 = vmatprep.subr.bf16.mxu0 %v9555_v38  ;;  %7232 = vmatprep.subr.bf16.mxu1 %v9558_v39  ;;  %v9644_v38 = vld [vmem:[%s11458_s3 + $0x668] ss:$16 sps:$4 sm:$0xff]   ;;  %v9645_v39 = vld [vmem:[%s11458_s3 + $0x684] ss:$16 sps:$4 sm:$0xff]  }
 0x13d   : > { %6210 = vmatpush1.bf16.msra.mxu0 %v9557_v40  ;;  %7234 = vmatpush1.bf16.msra.mxu1 %v9560_v41  ;;  %v9648_v40 = vld [vmem:[%s11458_s3 + $0x68c] ss:$16 sps:$4 sm:$0xff]   ;;  %v9647_v41 = vld [vmem:[%s11458_s3 + $0x680] ss:$16 sps:$4 sm:$0xff]  }
 0x13e   : > { %6212 = vmatprep.subr.bf16.mxu0 %v9561_v42  ;;  %7236 = vmatprep.subr.bf16.mxu1 %v9564_v43  ;;  %v9650_v42 = vld [vmem:[%s11458_s3 + $0x688] ss:$16 sps:$4 sm:$0xff]   ;;  %v9651_v43 = vld [vmem:[%s11458_s3 + $0x6a4] ss:$16 sps:$4 sm:$0xff]  }
 0x141   : > { %6214 = vmatpush1.bf16.msra.mxu0 %v9563_v45  ;;  %7238 = vmatpush1.bf16.msra.mxu1 %v9566_v46  ;;  %v9654_v45 = vld [vmem:[%s11458_s3 + $0x6ac] ss:$16 sps:$4 sm:$0xff]   ;;  %v9653_v46 = vld [vmem:[%s11458_s3 + $0x6a0] ss:$16 sps:$4 sm:$0xff]  }
 0x142   : > { %6216 = vmatprep.subr.bf16.mxu0 %v9567_v47  ;;  %7240 = vmatprep.subr.bf16.mxu1 %v9570_v48  ;;  %v9656_v47 = vld [vmem:[%s11458_s3 + $0x6a8] ss:$16 sps:$4 sm:$0xff]   ;;  %v9657_v48 = vld [vmem:[%s11458_s3 + $0x6c4] ss:$16 sps:$4 sm:$0xff]  }
 0x145   : > { %6218 = vmatpush1.bf16.msra.mxu0 %v9569_v49  ;;  %7242 = vmatpush1.bf16.msra.mxu1 %v9572_v51  ;;  %v9660_v49 = vld [vmem:[%s11458_s3 + $0x6cc] ss:$16 sps:$4 sm:$0xff]   ;;  %v9659_v51 = vld [vmem:[%s11458_s3 + $0x6c0] ss:$16 sps:$4 sm:$0xff]  }
 0x146   : > { %6220 = vmatprep.subr.bf16.mxu0 %v9573_v52  ;;  %7244 = vmatprep.subr.bf16.mxu1 %v9576_v53  ;;  %v9662_v52 = vld [vmem:[%s11458_s3 + $0x6c8] ss:$16 sps:$4 sm:$0xff]   ;;  %v9663_v53 = vld [vmem:[%s11458_s3 + $0x6e4] ss:$16 sps:$4 sm:$0xff]  }
 0x149   : > { %6222 = vmatpush1.bf16.msra.mxu0 %v9575_v54  ;;  %7246 = vmatpush1.bf16.msra.mxu1 %v9578_v55  ;;  %v9666_v54 = vld [vmem:[%s11458_s3 + $0x6ec] ss:$16 sps:$4 sm:$0xff]   ;;  %v9665_v55 = vld [vmem:[%s11458_s3 + $0x6e0] ss:$16 sps:$4 sm:$0xff]  }
 0x14a   : > { %6224 = vmatprep.subr.bf16.mxu0 %v9579_v56  ;;  %7248 = vmatprep.subr.bf16.mxu1 %v9582_v57  ;;  %v9668_v56 = vld [vmem:[%s11458_s3 + $0x6e8] ss:$16 sps:$4 sm:$0xff]   ;;  %v9669_v57 = vld [vmem:[%s11458_s3 + $0x704] ss:$16 sps:$4 sm:$0xff]  }
 0x14d   : > { %6226 = vmatpush1.bf16.msra.mxu0 %v9581_v58  ;;  %7250 = vmatpush1.bf16.msra.mxu1 %v9584_v59  ;;  %v9672_v58 = vld [vmem:[%s11458_s3 + $0x70c] ss:$16 sps:$4 sm:$0xff]   ;;  %v9671_v59 = vld [vmem:[%s11458_s3 + $0x700] ss:$16 sps:$4 sm:$0xff]  }
 0x14e   : > { %6228 = vmatprep.subr.bf16.mxu0 %v9585_v60  ;;  %7252 = vmatprep.subr.bf16.mxu1 %v9588_v61  ;;  %v9674_v60 = vld [vmem:[%s11458_s3 + $0x708] ss:$16 sps:$4 sm:$0xff]   ;;  %v9675_v61 = vld [vmem:[%s11458_s3 + $0x724] ss:$16 sps:$4 sm:$0xff]  }
 0x151   : > { %6230 = vmatpush1.bf16.msra.mxu0 %v9587_v62  ;;  %7254 = vmatpush1.bf16.msra.mxu1 %v9590_v63  ;;  %v9678_v62 = vld [vmem:[%s11458_s3 + $0x72c] ss:$16 sps:$4 sm:$0xff]   ;;  %v9677_v63 = vld [vmem:[%s11458_s3 + $0x720] ss:$16 sps:$4 sm:$0xff]  }
 0x152   : > { %6232 = vmatprep.subr.bf16.mxu0 %v9591_v0  ;;  %7256 = vmatprep.subr.bf16.mxu1 %v9594_v1  ;;  %v9680_v0 = vld [vmem:[%s11458_s3 + $0x728] ss:$16 sps:$4 sm:$0xff]   ;;  %v9681_v1 = vld [vmem:[%s11458_s3 + $0x744] ss:$16 sps:$4 sm:$0xff]  }
 0x155   : > { %6234 = vmatpush1.bf16.msra.mxu0 %v9593_v2  ;;  %7258 = vmatpush1.bf16.msra.mxu1 %v9596_v3  ;;  %v9684_v2 = vld [vmem:[%s11458_s3 + $0x74c] ss:$16 sps:$4 sm:$0xff]   ;;  %v9683_v3 = vld [vmem:[%s11458_s3 + $0x740] ss:$16 sps:$4 sm:$0xff]  }
 0x156   : > { %6236 = vmatprep.subr.bf16.mxu0 %v9597_v4  ;;  %7260 = vmatprep.subr.bf16.mxu1 %v9600_v5  ;;  %v9686_v4 = vld [vmem:[%s11458_s3 + $0x748] ss:$16 sps:$4 sm:$0xff]   ;;  %v9687_v5 = vld [vmem:[%s11458_s3 + $0x764] ss:$16 sps:$4 sm:$0xff]  }
 0x159   : > { %6238 = vmatpush1.bf16.msra.mxu0 %v9599_v6  ;;  %7262 = vmatpush1.bf16.msra.mxu1 %v9602_v7  ;;  %v9690_v6 = vld [vmem:[%s11458_s3 + $0x76c] ss:$16 sps:$4 sm:$0xff]   ;;  %v9689_v7 = vld [vmem:[%s11458_s3 + $0x760] ss:$16 sps:$4 sm:$0xff]  }
 0x15a   : > { %6240 = vmatprep.subr.bf16.mxu0 %v9603_v8  ;;  %7264 = vmatprep.subr.bf16.mxu1 %v9606_v9  ;;  %v9692_v8 = vld [vmem:[%s11458_s3 + $0x768] ss:$16 sps:$4 sm:$0xff]   ;;  %v9693_v9 = vld [vmem:[%s11458_s3 + $0x784] ss:$16 sps:$4 sm:$0xff]  }
 0x15d   : > { %6242 = vmatpush1.bf16.msra.mxu0 %v9605_v10  ;;  %7266 = vmatpush1.bf16.msra.mxu1 %v9608_v11  ;;  %v9696_v10 = vld [vmem:[%s11458_s3 + $0x78c] ss:$16 sps:$4 sm:$0xff]   ;;  %v9695_v11 = vld [vmem:[%s11458_s3 + $0x780] ss:$16 sps:$4 sm:$0xff]  }
 0x15e   : > { %6244 = vmatprep.subr.bf16.mxu0 %v9609_v12  ;;  %7268 = vmatprep.subr.bf16.mxu1 %v9612_v14  ;;  %v9698_v12 = vld [vmem:[%s11458_s3 + $0x788] ss:$16 sps:$4 sm:$0xff]   ;;  %v9699_v14 = vld [vmem:[%s11458_s3 + $0x7a4] ss:$16 sps:$4 sm:$0xff]  }
 0x161   : > { %6246 = vmatpush1.bf16.msra.mxu0 %v9611_v15  ;;  %7270 = vmatpush1.bf16.msra.mxu1 %v9614_v16  ;;  %v9702_v15 = vld [vmem:[%s11458_s3 + $0x7ac] ss:$16 sps:$4 sm:$0xff]   ;;  %v9701_v16 = vld [vmem:[%s11458_s3 + $0x7a0] ss:$16 sps:$4 sm:$0xff]  }
 0x162   : > { %6248 = vmatprep.subr.bf16.mxu0 %v9615_v17  ;;  %7272 = vmatprep.subr.bf16.mxu1 %v9618_v18  ;;  %v9704_v17 = vld [vmem:[%s11458_s3 + $0x7a8] ss:$16 sps:$4 sm:$0xff]   ;;  %v9705_v18 = vld [vmem:[%s11458_s3 + $0x7c4] ss:$16 sps:$4 sm:$0xff]  }
 0x165   : > { %6250 = vmatpush1.bf16.msra.mxu0 %v9617_v21  ;;  %7274 = vmatpush1.bf16.msra.mxu1 %v9620_v22  ;;  %v9707_v21 = vld [vmem:[%s11458_s3 + $0x7c0] ss:$16 sps:$4 sm:$0xff]   ;;  %v9710_v22 = vld [vmem:[%s11458_s3 + $0x7c8] ss:$16 sps:$4 sm:$0xff]  }
 0x166   : > { %6252 = vmatprep.subr.bf16.mxu0 %v9621_v24  ;;  %7276 = vmatprep.subr.bf16.mxu1 %v9624_v25  ;;  %v9711_v24 = vld [vmem:[%s11458_s3 + $0x7e4] ss:$16 sps:$4 sm:$0xff]   ;;  %v9714_v25 = vld [vmem:[%s11458_s3 + $0x7ec] ss:$16 sps:$4 sm:$0xff]  }
 0x168   : > { %3753 = vmatmul.mubr.f32.vlgmr.msra.gmra.mrb[0].mxu0 %v11629_v23  ;;  %4889 = vmatmul.mubr.f32.vlgmr.msra.gmra.mrb[0].mxu1 %v11629_v23  ;;  %v9638_v23 = vld [vmem:[%s11458_s3 + $0x648] ss:$16 sps:$4 sm:$0xff]  }
 0x169   : > { %6254 = vmatpush1.bf16.msra.mxu0 %v9623_v27  ;;  %7278 = vmatpush1.bf16.msra.mxu1 %v9626_v20  ;;  %v9713_v27 = vld [vmem:[%s11458_s3 + $0x7e0] ss:$16 sps:$4 sm:$0xff]  }
 0x16a   : > { %6256 = vmatprep.subr.bf16.mxu0 %v9627_v28  ;;  %7280 = vmatprep.subr.bf16.mxu1 %v9630_v13  ;;  %v11766_v20 = vld [vmem:[%s11450_s20 + $0x10] sm:$0xff]  ;;  %v9716_v28 = vld [vmem:[%s11458_s3 + $0x7e8] ss:$16 sps:$4 sm:$0xff]  }
 0x16b   : > { %3823 = vmatprep.mubr.f32.mxu0 %v3411_v29  ;;  %4959 = vmatprep.mubr.f32.mxu1 %v3411_v29  ;;  %v9718_v13 = vld [vmem:[%s11458_s3 + $0x804] ss:$16 sps:$4 sm:$0xff]   ;;  %v9721_v29 = vld [vmem:[%s11458_s3 + $0x80c] ss:$16 sps:$4 sm:$0xff]  }
 0x16d   : > { %6258 = vmatpush1.bf16.msra.mxu0 %v9629_v30  ;;  %7282 = vmatpush1.bf16.msra.mxu1 %v9632_v31  ;;  %v11773_v30 = vrot.slane %v11766_v20, %v11525_v50  ;;  %v9720_v31 = vld [vmem:[%s11458_s3 + $0x800] ss:$16 sps:$4 sm:$0xff]  }
 0x16e   : > { %6260 = vmatprep.subr.bf16.mxu0 %v9633_v32  ;;  %7284 = vmatprep.subr.bf16.mxu1 %v9636_v33  ;;  %v9723_v32 = vld [vmem:[%s11458_s3 + $0x808] ss:$16 sps:$4 sm:$0xff]   ;;  %v9724_v33 = vld [vmem:[%s11458_s3 + $0x824] ss:$16 sps:$4 sm:$0xff]  }
 0x171   : > { %6262 = vmatpush1.bf16.msra.mxu0 %v9635_v34  ;;  %7286 = vmatpush1.bf16.msra.mxu1 %v9638_v23  ;;  %v9727_v34 = vld [vmem:[%s11458_s3 + $0x82c] ss:$16 sps:$4 sm:$0xff]   ;;  %v3427_v23 = vcombine.high %v11773_v30, %v11773_v30 }
 0x172   : > { %6264 = vmatprep.subr.bf16.mxu0 %v9639_v35  ;;  %7288 = vmatprep.subr.bf16.mxu1 %v9642_v36  ;;  %v9726_v35 = vld [vmem:[%s11458_s3 + $0x820] ss:$16 sps:$4 sm:$0xff]   ;;  %v9729_v36 = vld [vmem:[%s11458_s3 + $0x828] ss:$16 sps:$4 sm:$0xff]  }
 0x175   : > { %6266 = vmatpush1.bf16.msra.mxu0 %v9641_v37  ;;  %7290 = vmatpush1.bf16.msra.mxu1 %v9644_v38  ;;  %v9730_v37 = vld [vmem:[%s11458_s3 + $0x844] ss:$16 sps:$4 sm:$0xff]   ;;  %v9733_v38 = vld [vmem:[%s11458_s3 + $0x84c] ss:$16 sps:$4 sm:$0xff]  }
 0x176   : > { %6268 = vmatprep.subr.bf16.mxu0 %v9645_v39  ;;  %7292 = vmatprep.subr.bf16.mxu1 %v9648_v40  ;;  %v9732_v39 = vld [vmem:[%s11458_s3 + $0x840] ss:$16 sps:$4 sm:$0xff]   ;;  %v9736_v40 = vld [vmem:[%s11458_s3 + $0x864] ss:$16 sps:$4 sm:$0xff]  }
 0x179   : > { %6270 = vmatpush1.bf16.msra.mxu0 %v9647_v41  ;;  %7294 = vmatpush1.bf16.msra.mxu1 %v9650_v42  ;;  %v9739_v41 = vld [vmem:[%s11458_s3 + $0x86c] ss:$16 sps:$4 sm:$0xff]   ;;  %v9738_v42 = vld [vmem:[%s11458_s3 + $0x860] ss:$16 sps:$4 sm:$0xff]  }
 0x17a   : > { %6272 = vmatprep.subr.bf16.mxu0 %v9651_v43  ;;  %7296 = vmatprep.subr.bf16.mxu1 %v9654_v45  ;;  %v9741_v43 = vld [vmem:[%s11458_s3 + $0x868] ss:$16 sps:$4 sm:$0xff]   ;;  %v9742_v45 = vld [vmem:[%s11458_s3 + $0x884] ss:$16 sps:$4 sm:$0xff]  }
 0x17d   : > { %6274 = vmatpush1.bf16.msra.mxu0 %v9653_v46  ;;  %7298 = vmatpush1.bf16.msra.mxu1 %v9656_v47  ;;  %v9745_v46 = vld [vmem:[%s11458_s3 + $0x88c] ss:$16 sps:$4 sm:$0xff]   ;;  %v9744_v47 = vld [vmem:[%s11458_s3 + $0x880] ss:$16 sps:$4 sm:$0xff]  }
 0x17e   : > { %6276 = vmatprep.subr.bf16.mxu0 %v9657_v48  ;;  %7300 = vmatprep.subr.bf16.mxu1 %v9660_v49  ;;  %v9747_v48 = vld [vmem:[%s11458_s3 + $0x888] ss:$16 sps:$4 sm:$0xff]   ;;  %v9748_v49 = vld [vmem:[%s11458_s3 + $0x8a4] ss:$16 sps:$4 sm:$0xff]  }
 0x181   : > { %6278 = vmatpush1.bf16.msra.mxu0 %v9659_v51  ;;  %7302 = vmatpush1.bf16.msra.mxu1 %v9662_v52  ;;  %v9751_v51 = vld [vmem:[%s11458_s3 + $0x8ac] ss:$16 sps:$4 sm:$0xff]   ;;  %v9750_v52 = vld [vmem:[%s11458_s3 + $0x8a0] ss:$16 sps:$4 sm:$0xff]  }
 0x182   : > { %6280 = vmatprep.subr.bf16.mxu0 %v9663_v53  ;;  %7304 = vmatprep.subr.bf16.mxu1 %v9666_v54  ;;  %v9753_v53 = vld [vmem:[%s11458_s3 + $0x8a8] ss:$16 sps:$4 sm:$0xff]   ;;  %v9754_v54 = vld [vmem:[%s11458_s3 + $0x8c4] ss:$16 sps:$4 sm:$0xff]  }
 0x185   : > { %6282 = vmatpush1.bf16.msra.mxu0 %v9665_v55  ;;  %7306 = vmatpush1.bf16.msra.mxu1 %v9668_v56  ;;  %v9757_v55 = vld [vmem:[%s11458_s3 + $0x8cc] ss:$16 sps:$4 sm:$0xff]   ;;  %v9756_v56 = vld [vmem:[%s11458_s3 + $0x8c0] ss:$16 sps:$4 sm:$0xff]  }
 0x186   : > { %6284 = vmatprep.subr.bf16.mxu0 %v9669_v57  ;;  %7308 = vmatprep.subr.bf16.mxu1 %v9672_v58  ;;  %v9759_v57 = vld [vmem:[%s11458_s3 + $0x8c8] ss:$16 sps:$4 sm:$0xff]   ;;  %v9760_v58 = vld [vmem:[%s11458_s3 + $0x8e4] ss:$16 sps:$4 sm:$0xff]  }
 0x189   : > { %6286 = vmatpush1.bf16.msra.mxu0 %v9671_v59  ;;  %7310 = vmatpush1.bf16.msra.mxu1 %v9674_v60  ;;  %v9763_v59 = vld [vmem:[%s11458_s3 + $0x8ec] ss:$16 sps:$4 sm:$0xff]   ;;  %v9762_v60 = vld [vmem:[%s11458_s3 + $0x8e0] ss:$16 sps:$4 sm:$0xff]  }
 0x18a   : > { %6288 = vmatprep.subr.bf16.mxu0 %v9675_v61  ;;  %7312 = vmatprep.subr.bf16.mxu1 %v9678_v62  ;;  %v9765_v61 = vld [vmem:[%s11458_s3 + $0x8e8] ss:$16 sps:$4 sm:$0xff]   ;;  %v9766_v62 = vld [vmem:[%s11458_s3 + $0x904] ss:$16 sps:$4 sm:$0xff]  }
 0x18d   : > { %6290 = vmatpush1.bf16.msra.mxu0 %v9677_v63  ;;  %7314 = vmatpush1.bf16.msra.mxu1 %v9680_v0  ;;  %v9769_v63 = vld [vmem:[%s11458_s3 + $0x90c] ss:$16 sps:$4 sm:$0xff]   ;;  %v9768_v0 = vld [vmem:[%s11458_s3 + $0x900] ss:$16 sps:$4 sm:$0xff]  }
 0x18e   : > { %6292 = vmatprep.subr.bf16.mxu0 %v9681_v1  ;;  %7316 = vmatprep.subr.bf16.mxu1 %v9684_v2  ;;  %v9771_v1 = vld [vmem:[%s11458_s3 + $0x908] ss:$16 sps:$4 sm:$0xff]   ;;  %v9772_v2 = vld [vmem:[%s11458_s3 + $0x924] ss:$16 sps:$4 sm:$0xff]  }
 0x191   : > { %6294 = vmatpush1.bf16.msra.mxu0 %v9683_v3  ;;  %7318 = vmatpush1.bf16.msra.mxu1 %v9686_v4  ;;  %v9775_v3 = vld [vmem:[%s11458_s3 + $0x92c] ss:$16 sps:$4 sm:$0xff]   ;;  %v9774_v4 = vld [vmem:[%s11458_s3 + $0x920] ss:$16 sps:$4 sm:$0xff]  }
 0x192   : > { %6296 = vmatprep.subr.bf16.mxu0 %v9687_v5  ;;  %7320 = vmatprep.subr.bf16.mxu1 %v9690_v6  ;;  %v9777_v5 = vld [vmem:[%s11458_s3 + $0x928] ss:$16 sps:$4 sm:$0xff]   ;;  %v9778_v6 = vld [vmem:[%s11458_s3 + $0x944] ss:$16 sps:$4 sm:$0xff]  }
 0x195   : > { %6298 = vmatpush1.bf16.msra.mxu0 %v9689_v7  ;;  %7322 = vmatpush1.bf16.msra.mxu1 %v9692_v8  ;;  %v9781_v7 = vld [vmem:[%s11458_s3 + $0x94c] ss:$16 sps:$4 sm:$0xff]   ;;  %v9780_v8 = vld [vmem:[%s11458_s3 + $0x940] ss:$16 sps:$4 sm:$0xff]  }
 0x196   : > { %6300 = vmatprep.subr.bf16.mxu0 %v9693_v9  ;;  %7324 = vmatprep.subr.bf16.mxu1 %v9696_v10  ;;  %v9783_v9 = vld [vmem:[%s11458_s3 + $0x948] ss:$16 sps:$4 sm:$0xff]   ;;  %v9784_v10 = vld [vmem:[%s11458_s3 + $0x964] ss:$16 sps:$4 sm:$0xff]  }
 0x199   : > { %6302 = vmatpush1.bf16.msra.mxu0 %v9695_v11  ;;  %7326 = vmatpush1.bf16.msra.mxu1 %v9698_v12  ;;  %v9787_v11 = vld [vmem:[%s11458_s3 + $0x96c] ss:$16 sps:$4 sm:$0xff]   ;;  %v9786_v12 = vld [vmem:[%s11458_s3 + $0x960] ss:$16 sps:$4 sm:$0xff]  }
 0x19a   : > { %6304 = vmatprep.subr.bf16.mxu0 %v9699_v14  ;;  %7328 = vmatprep.subr.bf16.mxu1 %v9702_v15  ;;  %v9789_v14 = vld [vmem:[%s11458_s3 + $0x968] ss:$16 sps:$4 sm:$0xff]   ;;  %v9790_v15 = vld [vmem:[%s11458_s3 + $0x984] ss:$16 sps:$4 sm:$0xff]  }
 0x19d   : > { %6306 = vmatpush1.bf16.msra.mxu0 %v9701_v16  ;;  %7330 = vmatpush1.bf16.msra.mxu1 %v9704_v17  ;;  %v9793_v16 = vld [vmem:[%s11458_s3 + $0x98c] ss:$16 sps:$4 sm:$0xff]   ;;  %v9792_v17 = vld [vmem:[%s11458_s3 + $0x980] ss:$16 sps:$4 sm:$0xff]  }
 0x19e   : > { %6308 = vmatprep.subr.bf16.mxu0 %v9705_v18  ;;  %7332 = vmatprep.subr.bf16.mxu1 %v9708_v19  ;;  %v9795_v18 = vld [vmem:[%s11458_s3 + $0x988] ss:$16 sps:$4 sm:$0xff]   ;;  %v9796_v19 = vld [vmem:[%s11458_s3 + $0x9a4] ss:$16 sps:$4 sm:$0xff]  }
 0x1a1   : > { %6310 = vmatpush1.bf16.msra.mxu0 %v9707_v21  ;;  %7334 = vmatpush1.bf16.msra.mxu1 %v9710_v22  ;;  %v9799_v21 = vld [vmem:[%s11458_s3 + $0x9ac] ss:$16 sps:$4 sm:$0xff]   ;;  %v9798_v22 = vld [vmem:[%s11458_s3 + $0x9a0] ss:$16 sps:$4 sm:$0xff]  }
 0x1a2   : > { %6312 = vmatprep.subr.bf16.mxu0 %v9711_v24  ;;  %7336 = vmatprep.subr.bf16.mxu1 %v9714_v25  ;;  %v9801_v24 = vld [vmem:[%s11458_s3 + $0x9a8] ss:$16 sps:$4 sm:$0xff]   ;;  %v9802_v25 = vld [vmem:[%s11458_s3 + $0x9c4] ss:$16 sps:$4 sm:$0xff]  }
 0x1a5   : > { %6314 = vmatpush1.bf16.msra.mxu0 %v9713_v27  ;;  %7338 = vmatpush1.bf16.msra.mxu1 %v9716_v28  ;;  %v9805_v27 = vld [vmem:[%s11458_s3 + $0x9cc] ss:$16 sps:$4 sm:$0xff]   ;;  %v9804_v28 = vld [vmem:[%s11458_s3 + $0x9c0] ss:$16 sps:$4 sm:$0xff]  }
 0x1a6   : > { %6316 = vmatprep.subr.bf16.mxu0 %v9718_v13  ;;  %7340 = vmatprep.subr.bf16.mxu1 %v9721_v29  ;;  %v9807_v13 = vld [vmem:[%s11458_s3 + $0x9c8] ss:$16 sps:$4 sm:$0xff]   ;;  %v9808_v29 = vld [vmem:[%s11458_s3 + $0x9e4] ss:$16 sps:$4 sm:$0xff]  }
 0x1a8   : > { %3824 = vmatmul.mubr.f32.vlgmr.msra.gmra.mrb[0].mxu0 %v11698_v26  ;;  %4960 = vmatmul.mubr.f32.vlgmr.msra.gmra.mrb[0].mxu1 %v11698_v26  ;;  %v9735_v26 = vld [vmem:[%s11458_s3 + $0x848] ss:$16 sps:$4 sm:$0xff]  }
 0x1a9   : > { %6318 = vmatpush1.bf16.msra.mxu0 %v9720_v31  ;;  %7342 = vmatpush1.bf16.msra.mxu1 %v9723_v32  ;;  %v9811_v31 = vld [vmem:[%s11458_s3 + $0x9ec] ss:$16 sps:$4 sm:$0xff]   ;;  %v9810_v32 = vld [vmem:[%s11458_s3 + $0x9e0] ss:$16 sps:$4 sm:$0xff]  }
 0x1aa   : > { %6320 = vmatprep.subr.bf16.mxu0 %v9724_v33  ;;  %7344 = vmatprep.subr.bf16.mxu1 %v9727_v34  ;;  %v3412_v33 = vcombine.high %v11766_v20, %v11766_v20  ;;  %v9813_v34 = vld [vmem:[%s11458_s3 + $0x9e8] ss:$16 sps:$4 sm:$0xff]   ;;  %v9820_v20 = vld [vmem:[%s11458_s3 + $0xa24] ss:$16 sps:$4 sm:$0xff]  }
 0x1ab   : > { %3894 = vmatprep.mubr.f32.mxu0 %v3427_v23  ;;  %5030 = vmatprep.mubr.f32.mxu1 %v3427_v23  ;;  %v9814_v23 = vld [vmem:[%s11458_s3 + $0xa04] ss:$16 sps:$4 sm:$0xff]  }
 0x1ad   : > { %6322 = vmatpush1.bf16.msra.mxu0 %v9726_v35  ;;  %7346 = vmatpush1.bf16.msra.mxu1 %v9729_v36  ;;  %v9817_v35 = vld [vmem:[%s11458_s3 + $0xa0c] ss:$16 sps:$4 sm:$0xff]   ;;  %v9816_v36 = vld [vmem:[%s11458_s3 + $0xa00] ss:$16 sps:$4 sm:$0xff]  }
 0x1ae   : > { %6324 = vmatprep.subr.bf16.mxu0 %v9730_v37  ;;  %7348 = vmatprep.subr.bf16.mxu1 %v9733_v38  ;;  %v11847_v37 = vrot.slane %v3412_v33, %v11525_v50  ;;  %v9819_v38 = vld [vmem:[%s11458_s3 + $0xa08] ss:$16 sps:$4 sm:$0xff]   ;;  %v9900_v33 = vld [vmem:[%s11458_s3 + $0xbc0] ss:$16 sps:$4 sm:$0xff]  }
 0x1b1   : > { %6326 = vmatpush1.bf16.msra.mxu0 %v9732_v39  ;;  %7350 = vmatpush1.bf16.msra.mxu1 %v9735_v26  ;;  %v9823_v39 = vld [vmem:[%s11458_s3 + $0xa2c] ss:$16 sps:$4 sm:$0xff]   ;;  %v9822_v26 = vld [vmem:[%s11458_s3 + $0xa20] ss:$16 sps:$4 sm:$0xff]  }
 0x1b2   : > { %6328 = vmatprep.subr.bf16.mxu0 %v9736_v40  ;;  %7352 = vmatprep.subr.bf16.mxu1 %v9739_v41  ;;  %v3428_v40 = vcombine.high %v11847_v37, %v11847_v37  ;;  %v9825_v41 = vld [vmem:[%s11458_s3 + $0xa28] ss:$16 sps:$4 sm:$0xff]  }
 0x1b5   : > { %6330 = vmatpush1.bf16.msra.mxu0 %v9738_v42  ;;  %7354 = vmatpush1.bf16.msra.mxu1 %v9741_v43  ;;  %v9826_v42 = vld [vmem:[%s11458_s3 + $0xa44] ss:$16 sps:$4 sm:$0xff]   ;;  %v9829_v43 = vld [vmem:[%s11458_s3 + $0xa4c] ss:$16 sps:$4 sm:$0xff]  }
 0x1b6   : > { %6332 = vmatprep.subr.bf16.mxu0 %v9742_v45  ;;  %7356 = vmatprep.subr.bf16.mxu1 %v9745_v46  ;;  %v9828_v45 = vld [vmem:[%s11458_s3 + $0xa40] ss:$16 sps:$4 sm:$0xff]   ;;  %v9832_v46 = vld [vmem:[%s11458_s3 + $0xa64] ss:$16 sps:$4 sm:$0xff]  }
 0x1b9   : > { %6334 = vmatpush1.bf16.msra.mxu0 %v9744_v47  ;;  %7358 = vmatpush1.bf16.msra.mxu1 %v9747_v48  ;;  %v9835_v47 = vld [vmem:[%s11458_s3 + $0xa6c] ss:$16 sps:$4 sm:$0xff]   ;;  %v9834_v48 = vld [vmem:[%s11458_s3 + $0xa60] ss:$16 sps:$4 sm:$0xff]  }
 0x1ba   : > { %6336 = vmatprep.subr.bf16.mxu0 %v9748_v49  ;;  %7360 = vmatprep.subr.bf16.mxu1 %v9751_v51  ;;  %v9837_v49 = vld [vmem:[%s11458_s3 + $0xa68] ss:$16 sps:$4 sm:$0xff]   ;;  %v9838_v51 = vld [vmem:[%s11458_s3 + $0xa84] ss:$16 sps:$4 sm:$0xff]  }
 0x1bd   : > { %6338 = vmatpush1.bf16.msra.mxu0 %v9750_v52  ;;  %7362 = vmatpush1.bf16.msra.mxu1 %v9753_v53  ;;  %v9841_v52 = vld [vmem:[%s11458_s3 + $0xa8c] ss:$16 sps:$4 sm:$0xff]   ;;  %v9840_v53 = vld [vmem:[%s11458_s3 + $0xa80] ss:$16 sps:$4 sm:$0xff]  }
 0x1be   : > { %6340 = vmatprep.subr.bf16.mxu0 %v9754_v54  ;;  %7364 = vmatprep.subr.bf16.mxu1 %v9757_v55  ;;  %v9843_v54 = vld [vmem:[%s11458_s3 + $0xa88] ss:$16 sps:$4 sm:$0xff]   ;;  %v9844_v55 = vld [vmem:[%s11458_s3 + $0xaa4] ss:$16 sps:$4 sm:$0xff]  }
 0x1c1   : > { %6342 = vmatpush1.bf16.msra.mxu0 %v9756_v56  ;;  %7366 = vmatpush1.bf16.msra.mxu1 %v9759_v57  ;;  %v9847_v56 = vld [vmem:[%s11458_s3 + $0xaac] ss:$16 sps:$4 sm:$0xff]   ;;  %v9846_v57 = vld [vmem:[%s11458_s3 + $0xaa0] ss:$16 sps:$4 sm:$0xff]  }
 0x1c2   : > { %6344 = vmatprep.subr.bf16.mxu0 %v9760_v58  ;;  %7368 = vmatprep.subr.bf16.mxu1 %v9763_v59  ;;  %v9849_v58 = vld [vmem:[%s11458_s3 + $0xaa8] ss:$16 sps:$4 sm:$0xff]   ;;  %v9850_v59 = vld [vmem:[%s11458_s3 + $0xac4] ss:$16 sps:$4 sm:$0xff]  }
 0x1c5   : > { %6346 = vmatpush1.bf16.msra.mxu0 %v9762_v60  ;;  %7370 = vmatpush1.bf16.msra.mxu1 %v9765_v61  ;;  %v9853_v60 = vld [vmem:[%s11458_s3 + $0xacc] ss:$16 sps:$4 sm:$0xff]   ;;  %v9852_v61 = vld [vmem:[%s11458_s3 + $0xac0] ss:$16 sps:$4 sm:$0xff]  }
 0x1c6   : > { %6348 = vmatprep.subr.bf16.mxu0 %v9766_v62  ;;  %7372 = vmatprep.subr.bf16.mxu1 %v9769_v63  ;;  %v9855_v62 = vld [vmem:[%s11458_s3 + $0xac8] ss:$16 sps:$4 sm:$0xff]   ;;  %v9856_v63 = vld [vmem:[%s11458_s3 + $0xae4] ss:$16 sps:$4 sm:$0xff]  }
 0x1c9   : > { %6350 = vmatpush1.bf16.msra.mxu0 %v9768_v0  ;;  %7374 = vmatpush1.bf16.msra.mxu1 %v9771_v1  ;;  %v9859_v0 = vld [vmem:[%s11458_s3 + $0xaec] ss:$16 sps:$4 sm:$0xff]   ;;  %v9858_v1 = vld [vmem:[%s11458_s3 + $0xae0] ss:$16 sps:$4 sm:$0xff]  }
 0x1ca   : > { %6352 = vmatprep.subr.bf16.mxu0 %v9772_v2  ;;  %7376 = vmatprep.subr.bf16.mxu1 %v9775_v3  ;;  %v9861_v2 = vld [vmem:[%s11458_s3 + $0xae8] ss:$16 sps:$4 sm:$0xff]   ;;  %v9862_v3 = vld [vmem:[%s11458_s3 + $0xb04] ss:$16 sps:$4 sm:$0xff]  }
 0x1cd   : > { %6354 = vmatpush1.bf16.msra.mxu0 %v9774_v4  ;;  %7378 = vmatpush1.bf16.msra.mxu1 %v9777_v5  ;;  %v9865_v4 = vld [vmem:[%s11458_s3 + $0xb0c] ss:$16 sps:$4 sm:$0xff]   ;;  %v9864_v5 = vld [vmem:[%s11458_s3 + $0xb00] ss:$16 sps:$4 sm:$0xff]  }
 0x1ce   : > { %6356 = vmatprep.subr.bf16.mxu0 %v9778_v6  ;;  %7380 = vmatprep.subr.bf16.mxu1 %v9781_v7  ;;  %v9867_v6 = vld [vmem:[%s11458_s3 + $0xb08] ss:$16 sps:$4 sm:$0xff]   ;;  %v9868_v7 = vld [vmem:[%s11458_s3 + $0xb24] ss:$16 sps:$4 sm:$0xff]  }
 0x1d1   : > { %6358 = vmatpush1.bf16.msra.mxu0 %v9780_v8  ;;  %7382 = vmatpush1.bf16.msra.mxu1 %v9783_v9  ;;  %v9871_v8 = vld [vmem:[%s11458_s3 + $0xb2c] ss:$16 sps:$4 sm:$0xff]   ;;  %v9870_v9 = vld [vmem:[%s11458_s3 + $0xb20] ss:$16 sps:$4 sm:$0xff]  }
 0x1d2   : > { %6360 = vmatprep.subr.bf16.mxu0 %v9784_v10  ;;  %7384 = vmatprep.subr.bf16.mxu1 %v9787_v11  ;;  %v9873_v10 = vld [vmem:[%s11458_s3 + $0xb28] ss:$16 sps:$4 sm:$0xff]   ;;  %v9874_v11 = vld [vmem:[%s11458_s3 + $0xb44] ss:$16 sps:$4 sm:$0xff]  }
 0x1d5   : > { %6362 = vmatpush1.bf16.msra.mxu0 %v9786_v12  ;;  %7386 = vmatpush1.bf16.msra.mxu1 %v9789_v14  ;;  %v9877_v12 = vld [vmem:[%s11458_s3 + $0xb4c] ss:$16 sps:$4 sm:$0xff]   ;;  %v9876_v14 = vld [vmem:[%s11458_s3 + $0xb40] ss:$16 sps:$4 sm:$0xff]  }
 0x1d6   : > { %6364 = vmatprep.subr.bf16.mxu0 %v9790_v15  ;;  %7388 = vmatprep.subr.bf16.mxu1 %v9793_v16  ;;  %v9879_v15 = vld [vmem:[%s11458_s3 + $0xb48] ss:$16 sps:$4 sm:$0xff]   ;;  %v9880_v16 = vld [vmem:[%s11458_s3 + $0xb64] ss:$16 sps:$4 sm:$0xff]  }
 0x1d9   : > { %6366 = vmatpush1.bf16.msra.mxu0 %v9792_v17  ;;  %7390 = vmatpush1.bf16.msra.mxu1 %v9795_v18  ;;  %v9883_v17 = vld [vmem:[%s11458_s3 + $0xb6c] ss:$16 sps:$4 sm:$0xff]   ;;  %v9882_v18 = vld [vmem:[%s11458_s3 + $0xb60] ss:$16 sps:$4 sm:$0xff]  }
 0x1da   : > { %6368 = vmatprep.subr.bf16.mxu0 %v9796_v19  ;;  %7392 = vmatprep.subr.bf16.mxu1 %v9799_v21  ;;  %v9885_v19 = vld [vmem:[%s11458_s3 + $0xb68] ss:$16 sps:$4 sm:$0xff]   ;;  %v9886_v21 = vld [vmem:[%s11458_s3 + $0xb84] ss:$16 sps:$4 sm:$0xff]  }
 0x1dd   : > { %6370 = vmatpush1.bf16.msra.mxu0 %v9798_v22  ;;  %7394 = vmatpush1.bf16.msra.mxu1 %v9801_v24  ;;  %v9889_v22 = vld [vmem:[%s11458_s3 + $0xb8c] ss:$16 sps:$4 sm:$0xff]   ;;  %v9888_v24 = vld [vmem:[%s11458_s3 + $0xb80] ss:$16 sps:$4 sm:$0xff]  }
 0x1de   : > { %6372 = vmatprep.subr.bf16.mxu0 %v9802_v25  ;;  %7396 = vmatprep.subr.bf16.mxu1 %v9805_v27  ;;  %v9891_v25 = vld [vmem:[%s11458_s3 + $0xb88] ss:$16 sps:$4 sm:$0xff]   ;;  %v9892_v27 = vld [vmem:[%s11458_s3 + $0xba4] ss:$16 sps:$4 sm:$0xff]  }
 0x1e1   : > { %6374 = vmatpush1.bf16.msra.mxu0 %v9804_v28  ;;  %7398 = vmatpush1.bf16.msra.mxu1 %v9807_v13  ;;  %v9895_v28 = vld [vmem:[%s11458_s3 + $0xbac] ss:$16 sps:$4 sm:$0xff]   ;;  %v9894_v13 = vld [vmem:[%s11458_s3 + $0xba0] ss:$16 sps:$4 sm:$0xff]  }
 0x1e2   : > { %6376 = vmatprep.subr.bf16.mxu0 %v9808_v29  ;;  %7400 = vmatprep.subr.bf16.mxu1 %v9811_v31  ;;  %v9897_v29 = vld [vmem:[%s11458_s3 + $0xba8] ss:$16 sps:$4 sm:$0xff]   ;;  %v9898_v31 = vld [vmem:[%s11458_s3 + $0xbc4] ss:$16 sps:$4 sm:$0xff]  }
 0x1e5   : > { %6378 = vmatpush1.bf16.msra.mxu0 %v9810_v32  ;;  %7402 = vmatpush1.bf16.msra.mxu1 %v9813_v34  ;;  %v9901_v32 = vld [vmem:[%s11458_s3 + $0xbcc] ss:$16 sps:$4 sm:$0xff]   ;;  %v9903_v34 = vld [vmem:[%s11458_s3 + $0xbc8] ss:$16 sps:$4 sm:$0xff]  }
 0x1e6   : > { %6380 = vmatprep.subr.bf16.mxu0 %v9814_v23  ;;  %7404 = vmatprep.subr.bf16.mxu1 %v9817_v35  ;;  %v9904_v23 = vld [vmem:[%s11458_s3 + $0xbe4] ss:$16 sps:$4 sm:$0xff]   ;;  %v9907_v35 = vld [vmem:[%s11458_s3 + $0xbec] ss:$16 sps:$4 sm:$0xff]  }
 0x1e8   : > { %3895 = vmatmul.mubr.f32.vlgmr.msra.gmra.mrb[0].mxu0 %v11773_v30  ;;  %5031 = vmatmul.mubr.f32.vlgmr.msra.gmra.mrb[0].mxu1 %v11773_v30  ;;  %v9831_v30 = vld [vmem:[%s11458_s3 + $0xa48] ss:$16 sps:$4 sm:$0xff]  }
 0x1e9   : > { %6382 = vmatpush1.bf16.msra.mxu0 %v9816_v36  ;;  %7406 = vmatpush1.bf16.msra.mxu1 %v9819_v38  ;;  %v11913_v36 = vld [vmem:[%s11450_s20 + $0x18] sm:$0xff]  ;;  %v9906_v38 = vld [vmem:[%s11458_s3 + $0xbe0] ss:$16 sps:$4 sm:$0xff]  }
 0x1ea   : > { %6384 = vmatprep.subr.bf16.mxu0 %v9820_v20  ;;  %7408 = vmatprep.subr.bf16.mxu1 %v9823_v39  ;;  %v9909_v20 = vld [vmem:[%s11458_s3 + $0xbe8] ss:$16 sps:$4 sm:$0xff]   ;;  %v9911_v39 = vld [vmem:[%s11458_s3 + $0xc04] ss:$16 sps:$4 sm:$0xff]  }
 0x1eb   : > { %3965 = vmatprep.mubr.f32.mxu0 %v3428_v40  ;;  %5101 = vmatprep.mubr.f32.mxu1 %v3428_v40  ;;  %v9913_v40 = vld [vmem:[%s11458_s3 + $0xc00] ss:$16 sps:$4 sm:$0xff]  }
 0x1ed   : > { %6386 = vmatpush1.bf16.msra.mxu0 %v9822_v26  ;;  %7410 = vmatpush1.bf16.msra.mxu1 %v9825_v41  ;;  %v9914_v26 = vld [vmem:[%s11458_s3 + $0xc0c] ss:$16 sps:$4 sm:$0xff]   ;;  %v11922_v41 = vrot.slane %v11913_v36, %v11525_v50 }
 0x1ee   : > { %6388 = vmatprep.subr.bf16.mxu0 %v9826_v42  ;;  %7412 = vmatprep.subr.bf16.mxu1 %v9829_v43  ;;  %v9916_v42 = vld [vmem:[%s11458_s3 + $0xc08] ss:$16 sps:$4 sm:$0xff]   ;;  %v9917_v43 = vld [vmem:[%s11458_s3 + $0xc24] ss:$16 sps:$4 sm:$0xff]  }
 0x1f1   : > { %6390 = vmatpush1.bf16.msra.mxu0 %v9828_v45  ;;  %7414 = vmatpush1.bf16.msra.mxu1 %v9831_v30  ;;  %v9920_v45 = vld [vmem:[%s11458_s3 + $0xc2c] ss:$16 sps:$4 sm:$0xff]   ;;  %v9919_v30 = vld [vmem:[%s11458_s3 + $0xc20] ss:$16 sps:$4 sm:$0xff]  }
 0x1f2   : > { %6392 = vmatprep.subr.bf16.mxu0 %v9832_v46  ;;  %7416 = vmatprep.subr.bf16.mxu1 %v9835_v47  ;;  %v3444_v46 = vcombine.high %v11922_v41, %v11922_v41  ;;  %v9922_v47 = vld [vmem:[%s11458_s3 + $0xc28] ss:$16 sps:$4 sm:$0xff]  }
 0x1f5   : > { %6394 = vmatpush1.bf16.msra.mxu0 %v9834_v48  ;;  %7418 = vmatpush1.bf16.msra.mxu1 %v9837_v49  ;;  %v9923_v48 = vld [vmem:[%s11458_s3 + $0xc44] ss:$16 sps:$4 sm:$0xff]   ;;  %v9926_v49 = vld [vmem:[%s11458_s3 + $0xc4c] ss:$16 sps:$4 sm:$0xff]  }
 0x1f6   : > { %6396 = vmatprep.subr.bf16.mxu0 %v9838_v51  ;;  %7420 = vmatprep.subr.bf16.mxu1 %v9841_v52  ;;  %v9925_v51 = vld [vmem:[%s11458_s3 + $0xc40] ss:$16 sps:$4 sm:$0xff]   ;;  %v9929_v52 = vld [vmem:[%s11458_s3 + $0xc64] ss:$16 sps:$4 sm:$0xff]  }
 0x1f9   : > { %6398 = vmatpush1.bf16.msra.mxu0 %v9840_v53  ;;  %7422 = vmatpush1.bf16.msra.mxu1 %v9843_v54  ;;  %v9932_v53 = vld [vmem:[%s11458_s3 + $0xc6c] ss:$16 sps:$4 sm:$0xff]   ;;  %v9931_v54 = vld [vmem:[%s11458_s3 + $0xc60] ss:$16 sps:$4 sm:$0xff]  }
 0x1fa   : > { %6400 = vmatprep.subr.bf16.mxu0 %v9844_v55  ;;  %7424 = vmatprep.subr.bf16.mxu1 %v9847_v56  ;;  %v9934_v55 = vld [vmem:[%s11458_s3 + $0xc68] ss:$16 sps:$4 sm:$0xff]   ;;  %v9935_v56 = vld [vmem:[%s11458_s3 + $0xc84] ss:$16 sps:$4 sm:$0xff]  }
 0x1fd   : > { %6402 = vmatpush1.bf16.msra.mxu0 %v9846_v57  ;;  %7426 = vmatpush1.bf16.msra.mxu1 %v9849_v58  ;;  %v9938_v57 = vld [vmem:[%s11458_s3 + $0xc8c] ss:$16 sps:$4 sm:$0xff]   ;;  %v9937_v58 = vld [vmem:[%s11458_s3 + $0xc80] ss:$16 sps:$4 sm:$0xff]  }
 0x1fe   : > { %6404 = vmatprep.subr.bf16.mxu0 %v9850_v59  ;;  %7428 = vmatprep.subr.bf16.mxu1 %v9853_v60  ;;  %v9940_v59 = vld [vmem:[%s11458_s3 + $0xc88] ss:$16 sps:$4 sm:$0xff]   ;;  %v9941_v60 = vld [vmem:[%s11458_s3 + $0xca4] ss:$16 sps:$4 sm:$0xff]  }
 0x201   : > { %6406 = vmatpush1.bf16.msra.mxu0 %v9852_v61  ;;  %7430 = vmatpush1.bf16.msra.mxu1 %v9855_v62  ;;  %v9944_v61 = vld [vmem:[%s11458_s3 + $0xcac] ss:$16 sps:$4 sm:$0xff]   ;;  %v9943_v62 = vld [vmem:[%s11458_s3 + $0xca0] ss:$16 sps:$4 sm:$0xff]  }
 0x202   : > { %6408 = vmatprep.subr.bf16.mxu0 %v9856_v63  ;;  %7432 = vmatprep.subr.bf16.mxu1 %v9859_v0  ;;  %v9946_v63 = vld [vmem:[%s11458_s3 + $0xca8] ss:$16 sps:$4 sm:$0xff]   ;;  %v9947_v0 = vld [vmem:[%s11458_s3 + $0xcc4] ss:$16 sps:$4 sm:$0xff]  }
 0x205   : > { %6410 = vmatpush1.bf16.msra.mxu0 %v9858_v1  ;;  %7434 = vmatpush1.bf16.msra.mxu1 %v9861_v2  ;;  %v9950_v1 = vld [vmem:[%s11458_s3 + $0xccc] ss:$16 sps:$4 sm:$0xff]   ;;  %v9949_v2 = vld [vmem:[%s11458_s3 + $0xcc0] ss:$16 sps:$4 sm:$0xff]  }
 0x206   : > { %6412 = vmatprep.subr.bf16.mxu0 %v9862_v3  ;;  %7436 = vmatprep.subr.bf16.mxu1 %v9865_v4  ;;  %v9952_v3 = vld [vmem:[%s11458_s3 + $0xcc8] ss:$16 sps:$4 sm:$0xff]   ;;  %v9953_v4 = vld [vmem:[%s11458_s3 + $0xce4] ss:$16 sps:$4 sm:$0xff]  }
 0x209   : > { %6414 = vmatpush1.bf16.msra.mxu0 %v9864_v5  ;;  %7438 = vmatpush1.bf16.msra.mxu1 %v9867_v6  ;;  %v9956_v5 = vld [vmem:[%s11458_s3 + $0xcec] ss:$16 sps:$4 sm:$0xff]   ;;  %v9955_v6 = vld [vmem:[%s11458_s3 + $0xce0] ss:$16 sps:$4 sm:$0xff]  }
 0x20a   : > { %6416 = vmatprep.subr.bf16.mxu0 %v9868_v7  ;;  %7440 = vmatprep.subr.bf16.mxu1 %v9871_v8  ;;  %v9958_v7 = vld [vmem:[%s11458_s3 + $0xce8] ss:$16 sps:$4 sm:$0xff]   ;;  %v9959_v8 = vld [vmem:[%s11458_s3 + $0xd04] ss:$16 sps:$4 sm:$0xff]  }
 0x20d   : > { %6418 = vmatpush1.bf16.msra.mxu0 %v9870_v9  ;;  %7442 = vmatpush1.bf16.msra.mxu1 %v9873_v10  ;;  %v9962_v9 = vld [vmem:[%s11458_s3 + $0xd0c] ss:$16 sps:$4 sm:$0xff]   ;;  %v9961_v10 = vld [vmem:[%s11458_s3 + $0xd00] ss:$16 sps:$4 sm:$0xff]  }
 0x20e   : > { %6420 = vmatprep.subr.bf16.mxu0 %v9874_v11  ;;  %7444 = vmatprep.subr.bf16.mxu1 %v9877_v12  ;;  %v9964_v11 = vld [vmem:[%s11458_s3 + $0xd08] ss:$16 sps:$4 sm:$0xff]   ;;  %v9965_v12 = vld [vmem:[%s11458_s3 + $0xd24] ss:$16 sps:$4 sm:$0xff]  }
 0x211   : > { %6422 = vmatpush1.bf16.msra.mxu0 %v9876_v14  ;;  %7446 = vmatpush1.bf16.msra.mxu1 %v9879_v15  ;;  %v9968_v14 = vld [vmem:[%s11458_s3 + $0xd2c] ss:$16 sps:$4 sm:$0xff]   ;;  %v9967_v15 = vld [vmem:[%s11458_s3 + $0xd20] ss:$16 sps:$4 sm:$0xff]  }
 0x212   : > { %6424 = vmatprep.subr.bf16.mxu0 %v9880_v16  ;;  %7448 = vmatprep.subr.bf16.mxu1 %v9883_v17  ;;  %v9970_v16 = vld [vmem:[%s11458_s3 + $0xd28] ss:$16 sps:$4 sm:$0xff]   ;;  %v9971_v17 = vld [vmem:[%s11458_s3 + $0xd44] ss:$16 sps:$4 sm:$0xff]  }
 0x215   : > { %6426 = vmatpush1.bf16.msra.mxu0 %v9882_v18  ;;  %7450 = vmatpush1.bf16.msra.mxu1 %v9885_v19  ;;  %v9974_v18 = vld [vmem:[%s11458_s3 + $0xd4c] ss:$16 sps:$4 sm:$0xff]   ;;  %v9973_v19 = vld [vmem:[%s11458_s3 + $0xd40] ss:$16 sps:$4 sm:$0xff]  }
 0x216   : > { %6428 = vmatprep.subr.bf16.mxu0 %v9886_v21  ;;  %7452 = vmatprep.subr.bf16.mxu1 %v9889_v22  ;;  %v9976_v21 = vld [vmem:[%s11458_s3 + $0xd48] ss:$16 sps:$4 sm:$0xff]   ;;  %v9977_v22 = vld [vmem:[%s11458_s3 + $0xd64] ss:$16 sps:$4 sm:$0xff]  }
 0x219   : > { %6430 = vmatpush1.bf16.msra.mxu0 %v9888_v24  ;;  %7454 = vmatpush1.bf16.msra.mxu1 %v9891_v25  ;;  %v9980_v24 = vld [vmem:[%s11458_s3 + $0xd6c] ss:$16 sps:$4 sm:$0xff]   ;;  %v9979_v25 = vld [vmem:[%s11458_s3 + $0xd60] ss:$16 sps:$4 sm:$0xff]  }
 0x21a   : > { %6432 = vmatprep.subr.bf16.mxu0 %v9892_v27  ;;  %7456 = vmatprep.subr.bf16.mxu1 %v9895_v28  ;;  %v9982_v27 = vld [vmem:[%s11458_s3 + $0xd68] ss:$16 sps:$4 sm:$0xff]   ;;  %v9983_v28 = vld [vmem:[%s11458_s3 + $0xd84] ss:$16 sps:$4 sm:$0xff]  }
 0x21d   : > { %6434 = vmatpush1.bf16.msra.mxu0 %v9894_v13  ;;  %7458 = vmatpush1.bf16.msra.mxu1 %v9897_v29  ;;  %v9986_v13 = vld [vmem:[%s11458_s3 + $0xd8c] ss:$16 sps:$4 sm:$0xff]   ;;  %v9985_v29 = vld [vmem:[%s11458_s3 + $0xd80] ss:$16 sps:$4 sm:$0xff]  }
 0x21e   : > { %6436 = vmatprep.subr.bf16.mxu0 %v9898_v31  ;;  %7460 = vmatprep.subr.bf16.mxu1 %v9901_v32  ;;  %v9988_v31 = vld [vmem:[%s11458_s3 + $0xd88] ss:$16 sps:$4 sm:$0xff]   ;;  %v9989_v32 = vld [vmem:[%s11458_s3 + $0xda4] ss:$16 sps:$4 sm:$0xff]  }
 0x221   : > { %6438 = vmatpush1.bf16.msra.mxu0 %v9900_v33  ;;  %7462 = vmatpush1.bf16.msra.mxu1 %v9903_v34  ;;  %v9992_v33 = vld [vmem:[%s11458_s3 + $0xdac] ss:$16 sps:$4 sm:$0xff]   ;;  %v9991_v34 = vld [vmem:[%s11458_s3 + $0xda0] ss:$16 sps:$4 sm:$0xff]  }
 0x222   : > { %6440 = vmatprep.subr.bf16.mxu0 %v9904_v23  ;;  %7464 = vmatprep.subr.bf16.mxu1 %v9907_v35  ;;  %v9994_v23 = vld [vmem:[%s11458_s3 + $0xda8] ss:$16 sps:$4 sm:$0xff]   ;;  %v9995_v35 = vld [vmem:[%s11458_s3 + $0xdc4] ss:$16 sps:$4 sm:$0xff]  }
 0x225   : > { %6442 = vmatpush1.bf16.msra.mxu0 %v9906_v38  ;;  %7466 = vmatpush1.bf16.msra.mxu1 %v9909_v20  ;;  %v9998_v38 = vld [vmem:[%s11458_s3 + $0xdcc] ss:$16 sps:$4 sm:$0xff]   ;;  %v9997_v20 = vld [vmem:[%s11458_s3 + $0xdc0] ss:$16 sps:$4 sm:$0xff]  }
 0x226   : > { %6444 = vmatprep.subr.bf16.mxu0 %v9911_v39  ;;  %7468 = vmatprep.subr.bf16.mxu1 %v9914_v26  ;;  %v10000_v39 = vld [vmem:[%s11458_s3 + $0xdc8] ss:$16 sps:$4 sm:$0xff]   ;;  %v10001_v26 = vld [vmem:[%s11458_s3 + $0xde4] ss:$16 sps:$4 sm:$0xff]  }
 0x228   : > { %3966 = vmatmul.mubr.f32.vlgmr.msra.gmra.mrb[0].mxu0 %v11847_v37  ;;  %5102 = vmatmul.mubr.f32.vlgmr.msra.gmra.mrb[0].mxu1 %v11847_v37  ;;  %v9928_v37 = vld [vmem:[%s11458_s3 + $0xc48] ss:$16 sps:$4 sm:$0xff]  }
 0x229   : > { %6446 = vmatpush1.bf16.msra.mxu0 %v9913_v40  ;;  %7470 = vmatpush1.bf16.msra.mxu1 %v9916_v42  ;;  %v10004_v40 = vld [vmem:[%s11458_s3 + $0xdec] ss:$16 sps:$4 sm:$0xff]   ;;  %v10003_v42 = vld [vmem:[%s11458_s3 + $0xde0] ss:$16 sps:$4 sm:$0xff]  }
 0x22a   : > { %6448 = vmatprep.subr.bf16.mxu0 %v9917_v43  ;;  %7472 = vmatprep.subr.bf16.mxu1 %v9920_v45  ;;  %v3429_v43 = vcombine.high %v11913_v36, %v11913_v36  ;;  %v10006_v45 = vld [vmem:[%s11458_s3 + $0xde8] ss:$16 sps:$4 sm:$0xff]   ;;  %v10013_v36 = vld [vmem:[%s11458_s3 + $0xe24] ss:$16 sps:$4 sm:$0xff]  }
 0x22b   : > { %4036 = vmatprep.mubr.f32.mxu0 %v3444_v46  ;;  %5172 = vmatprep.mubr.f32.mxu1 %v3444_v46  ;;  %v10010_v46 = vld [vmem:[%s11458_s3 + $0xe0c] ss:$16 sps:$4 sm:$0xff]  }
 0x22d   : > { %6450 = vmatpush1.bf16.msra.mxu0 %v9919_v30  ;;  %7474 = vmatpush1.bf16.msra.mxu1 %v9922_v47  ;;  %v10007_v30 = vld [vmem:[%s11458_s3 + $0xe04] ss:$16 sps:$4 sm:$0xff]   ;;  %v10009_v47 = vld [vmem:[%s11458_s3 + $0xe00] ss:$16 sps:$4 sm:$0xff]  }
 0x22e   : > { %6452 = vmatprep.subr.bf16.mxu0 %v9923_v48  ;;  %7476 = vmatprep.subr.bf16.mxu1 %v9926_v49  ;;  %v11995_v48 = vrot.slane %v3429_v43, %v11525_v50  ;;  %v10012_v49 = vld [vmem:[%s11458_s3 + $0xe08] ss:$16 sps:$4 sm:$0xff]   ;;  %v10093_v43 = vld [vmem:[%s11458_s3 + $0xfc0] ss:$16 sps:$4 sm:$0xff]  }
 0x231   : > { %6454 = vmatpush1.bf16.msra.mxu0 %v9925_v51  ;;  %7478 = vmatpush1.bf16.msra.mxu1 %v9928_v37  ;;  %v10016_v51 = vld [vmem:[%s11458_s3 + $0xe2c] ss:$16 sps:$4 sm:$0xff]   ;;  %v10015_v37 = vld [vmem:[%s11458_s3 + $0xe20] ss:$16 sps:$4 sm:$0xff]  }
 0x232   : > { %6456 = vmatprep.subr.bf16.mxu0 %v9929_v52  ;;  %7480 = vmatprep.subr.bf16.mxu1 %v9932_v53  ;;  %v3445_v52 = vcombine.high %v11995_v48, %v11995_v48  ;;  %v10018_v53 = vld [vmem:[%s11458_s3 + $0xe28] ss:$16 sps:$4 sm:$0xff]  }
 0x235   : > { %6458 = vmatpush1.bf16.msra.mxu0 %v9931_v54  ;;  %7482 = vmatpush1.bf16.msra.mxu1 %v9934_v55  ;;  %v10019_v54 = vld [vmem:[%s11458_s3 + $0xe44] ss:$16 sps:$4 sm:$0xff]   ;;  %v10022_v55 = vld [vmem:[%s11458_s3 + $0xe4c] ss:$16 sps:$4 sm:$0xff]  }
 0x236   : > { %6460 = vmatprep.subr.bf16.mxu0 %v9935_v56  ;;  %7484 = vmatprep.subr.bf16.mxu1 %v9938_v57  ;;  %v10021_v56 = vld [vmem:[%s11458_s3 + $0xe40] ss:$16 sps:$4 sm:$0xff]   ;;  %v10025_v57 = vld [vmem:[%s11458_s3 + $0xe64] ss:$16 sps:$4 sm:$0xff]  }
 0x239   : > { %6462 = vmatpush1.bf16.msra.mxu0 %v9937_v58  ;;  %7486 = vmatpush1.bf16.msra.mxu1 %v9940_v59  ;;  %v10028_v58 = vld [vmem:[%s11458_s3 + $0xe6c] ss:$16 sps:$4 sm:$0xff]   ;;  %v10027_v59 = vld [vmem:[%s11458_s3 + $0xe60] ss:$16 sps:$4 sm:$0xff]  }
 0x23a   : > { %6464 = vmatprep.subr.bf16.mxu0 %v9941_v60  ;;  %7488 = vmatprep.subr.bf16.mxu1 %v9944_v61  ;;  %v10030_v60 = vld [vmem:[%s11458_s3 + $0xe68] ss:$16 sps:$4 sm:$0xff]   ;;  %v10031_v61 = vld [vmem:[%s11458_s3 + $0xe84] ss:$16 sps:$4 sm:$0xff]  }
 0x23d   : > { %6466 = vmatpush1.bf16.msra.mxu0 %v9943_v62  ;;  %7490 = vmatpush1.bf16.msra.mxu1 %v9946_v63  ;;  %v10034_v62 = vld [vmem:[%s11458_s3 + $0xe8c] ss:$16 sps:$4 sm:$0xff]   ;;  %v10033_v63 = vld [vmem:[%s11458_s3 + $0xe80] ss:$16 sps:$4 sm:$0xff]  }
 0x23e   : > { %6468 = vmatprep.subr.bf16.mxu0 %v9947_v0  ;;  %7492 = vmatprep.subr.bf16.mxu1 %v9950_v1  ;;  %v10036_v0 = vld [vmem:[%s11458_s3 + $0xe88] ss:$16 sps:$4 sm:$0xff]   ;;  %v10037_v1 = vld [vmem:[%s11458_s3 + $0xea4] ss:$16 sps:$4 sm:$0xff]  }
 0x241   : > { %6470 = vmatpush1.bf16.msra.mxu0 %v9949_v2  ;;  %7494 = vmatpush1.bf16.msra.mxu1 %v9952_v3  ;;  %v10040_v2 = vld [vmem:[%s11458_s3 + $0xeac] ss:$16 sps:$4 sm:$0xff]   ;;  %v10039_v3 = vld [vmem:[%s11458_s3 + $0xea0] ss:$16 sps:$4 sm:$0xff]  }
 0x242   : > { %6472 = vmatprep.subr.bf16.mxu0 %v9953_v4  ;;  %7496 = vmatprep.subr.bf16.mxu1 %v9956_v5  ;;  %v10042_v4 = vld [vmem:[%s11458_s3 + $0xea8] ss:$16 sps:$4 sm:$0xff]   ;;  %v10043_v5 = vld [vmem:[%s11458_s3 + $0xec4] ss:$16 sps:$4 sm:$0xff]  }
 0x245   : > { %6474 = vmatpush1.bf16.msra.mxu0 %v9955_v6  ;;  %7498 = vmatpush1.bf16.msra.mxu1 %v9958_v7  ;;  %v10046_v6 = vld [vmem:[%s11458_s3 + $0xecc] ss:$16 sps:$4 sm:$0xff]   ;;  %v10045_v7 = vld [vmem:[%s11458_s3 + $0xec0] ss:$16 sps:$4 sm:$0xff]  }
 0x246   : > { %6476 = vmatprep.subr.bf16.mxu0 %v9959_v8  ;;  %7500 = vmatprep.subr.bf16.mxu1 %v9962_v9  ;;  %v10048_v8 = vld [vmem:[%s11458_s3 + $0xec8] ss:$16 sps:$4 sm:$0xff]   ;;  %v10049_v9 = vld [vmem:[%s11458_s3 + $0xee4] ss:$16 sps:$4 sm:$0xff]  }
 0x249   : > { %6478 = vmatpush1.bf16.msra.mxu0 %v9961_v10  ;;  %7502 = vmatpush1.bf16.msra.mxu1 %v9964_v11  ;;  %v10052_v10 = vld [vmem:[%s11458_s3 + $0xeec] ss:$16 sps:$4 sm:$0xff]   ;;  %v10051_v11 = vld [vmem:[%s11458_s3 + $0xee0] ss:$16 sps:$4 sm:$0xff]  }
 0x24a   : > { %6480 = vmatprep.subr.bf16.mxu0 %v9965_v12  ;;  %7504 = vmatprep.subr.bf16.mxu1 %v9968_v14  ;;  %v10054_v12 = vld [vmem:[%s11458_s3 + $0xee8] ss:$16 sps:$4 sm:$0xff]   ;;  %v10055_v14 = vld [vmem:[%s11458_s3 + $0xf04] ss:$16 sps:$4 sm:$0xff]  }
 0x24d   : > { %6482 = vmatpush1.bf16.msra.mxu0 %v9967_v15  ;;  %7506 = vmatpush1.bf16.msra.mxu1 %v9970_v16  ;;  %v10058_v15 = vld [vmem:[%s11458_s3 + $0xf0c] ss:$16 sps:$4 sm:$0xff]   ;;  %v10057_v16 = vld [vmem:[%s11458_s3 + $0xf00] ss:$16 sps:$4 sm:$0xff]  }
 0x24e   : > { %6484 = vmatprep.subr.bf16.mxu0 %v9971_v17  ;;  %7508 = vmatprep.subr.bf16.mxu1 %v9974_v18  ;;  %v10060_v17 = vld [vmem:[%s11458_s3 + $0xf08] ss:$16 sps:$4 sm:$0xff]   ;;  %v10061_v18 = vld [vmem:[%s11458_s3 + $0xf24] ss:$16 sps:$4 sm:$0xff]  }
 0x251   : > { %6486 = vmatpush1.bf16.msra.mxu0 %v9973_v19  ;;  %7510 = vmatpush1.bf16.msra.mxu1 %v9976_v21  ;;  %v10064_v19 = vld [vmem:[%s11458_s3 + $0xf2c] ss:$16 sps:$4 sm:$0xff]   ;;  %v10063_v21 = vld [vmem:[%s11458_s3 + $0xf20] ss:$16 sps:$4 sm:$0xff]  }
 0x252   : > { %6488 = vmatprep.subr.bf16.mxu0 %v9977_v22  ;;  %7512 = vmatprep.subr.bf16.mxu1 %v9980_v24  ;;  %v10066_v22 = vld [vmem:[%s11458_s3 + $0xf28] ss:$16 sps:$4 sm:$0xff]   ;;  %v10067_v24 = vld [vmem:[%s11458_s3 + $0xf44] ss:$16 sps:$4 sm:$0xff]  }
 0x255   : > { %6490 = vmatpush1.bf16.msra.mxu0 %v9979_v25  ;;  %7514 = vmatpush1.bf16.msra.mxu1 %v9982_v27  ;;  %v10070_v25 = vld [vmem:[%s11458_s3 + $0xf4c] ss:$16 sps:$4 sm:$0xff]   ;;  %v10069_v27 = vld [vmem:[%s11458_s3 + $0xf40] ss:$16 sps:$4 sm:$0xff]  }
 0x256   : > { %6492 = vmatprep.subr.bf16.mxu0 %v9983_v28  ;;  %7516 = vmatprep.subr.bf16.mxu1 %v9986_v13  ;;  %v10072_v28 = vld [vmem:[%s11458_s3 + $0xf48] ss:$16 sps:$4 sm:$0xff]   ;;  %v10073_v13 = vld [vmem:[%s11458_s3 + $0xf64] ss:$16 sps:$4 sm:$0xff]  }
 0x259   : > { %6494 = vmatpush1.bf16.msra.mxu0 %v9985_v29  ;;  %7518 = vmatpush1.bf16.msra.mxu1 %v9988_v31  ;;  %v10076_v29 = vld [vmem:[%s11458_s3 + $0xf6c] ss:$16 sps:$4 sm:$0xff]   ;;  %v10075_v31 = vld [vmem:[%s11458_s3 + $0xf60] ss:$16 sps:$4 sm:$0xff]  }
 0x25a   : > { %6496 = vmatprep.subr.bf16.mxu0 %v9989_v32  ;;  %7520 = vmatprep.subr.bf16.mxu1 %v9992_v33  ;;  %v10078_v32 = vld [vmem:[%s11458_s3 + $0xf68] ss:$16 sps:$4 sm:$0xff]   ;;  %v10079_v33 = vld [vmem:[%s11458_s3 + $0xf84] ss:$16 sps:$4 sm:$0xff]  }
 0x25d   : > { %6498 = vmatpush1.bf16.msra.mxu0 %v9991_v34  ;;  %7522 = vmatpush1.bf16.msra.mxu1 %v9994_v23  ;;  %v10082_v34 = vld [vmem:[%s11458_s3 + $0xf8c] ss:$16 sps:$4 sm:$0xff]   ;;  %v10081_v23 = vld [vmem:[%s11458_s3 + $0xf80] ss:$16 sps:$4 sm:$0xff]  }
 0x25e   : > { %6500 = vmatprep.subr.bf16.mxu0 %v9995_v35  ;;  %7524 = vmatprep.subr.bf16.mxu1 %v9998_v38  ;;  %v10084_v35 = vld [vmem:[%s11458_s3 + $0xf88] ss:$16 sps:$4 sm:$0xff]   ;;  %v10085_v38 = vld [vmem:[%s11458_s3 + $0xfa4] ss:$16 sps:$4 sm:$0xff]  }
 0x261   : > { %6502 = vmatpush1.bf16.msra.mxu0 %v9997_v20  ;;  %7526 = vmatpush1.bf16.msra.mxu1 %v10000_v39  ;;  %v10088_v20 = vld [vmem:[%s11458_s3 + $0xfac] ss:$16 sps:$4 sm:$0xff]   ;;  %v10087_v39 = vld [vmem:[%s11458_s3 + $0xfa0] ss:$16 sps:$4 sm:$0xff]  }
 0x262   : > { %6504 = vmatprep.subr.bf16.mxu0 %v10001_v26  ;;  %7528 = vmatprep.subr.bf16.mxu1 %v10004_v40  ;;  %v10090_v26 = vld [vmem:[%s11458_s3 + $0xfa8] ss:$16 sps:$4 sm:$0xff]   ;;  %v10091_v40 = vld [vmem:[%s11458_s3 + $0xfc4] ss:$16 sps:$4 sm:$0xff]  }
 0x265   : > { %6506 = vmatpush1.bf16.msra.mxu0 %v10003_v42  ;;  %7530 = vmatpush1.bf16.msra.mxu1 %v10006_v45  ;;  %v10094_v42 = vld [vmem:[%s11458_s3 + $0xfcc] ss:$16 sps:$4 sm:$0xff]   ;;  %v10096_v45 = vld [vmem:[%s11458_s3 + $0xfc8] ss:$16 sps:$4 sm:$0xff]  }
 0x266   : > { %6508 = vmatprep.subr.bf16.mxu0 %v10007_v30  ;;  %7532 = vmatprep.subr.bf16.mxu1 %v10010_v46  ;;  %v10097_v30 = vld [vmem:[%s11458_s3 + $0xfe4] ss:$16 sps:$4 sm:$0xff]   ;;  %v10100_v46 = vld [vmem:[%s11458_s3 + $0xfec] ss:$16 sps:$4 sm:$0xff]  }
 0x268   : > { %4037 = vmatmul.mubr.f32.vlgmr.msra.gmra.mrb[0].mxu0 %v11922_v41  ;;  %5173 = vmatmul.mubr.f32.vlgmr.msra.gmra.mrb[0].mxu1 %v11922_v41  ;;  %v10024_v41 = vld [vmem:[%s11458_s3 + $0xe48] ss:$16 sps:$4 sm:$0xff]  }
 0x269   : > { %6510 = vmatpush1.bf16.msra.mxu0 %v10009_v47  ;;  %7534 = vmatpush1.bf16.msra.mxu1 %v10012_v49  ;;  %v12061_v47 = vld [vmem:[%s11450_s20 + $0x20] sm:$0xff] }
 0x26a   : > { %6512 = vmatprep.subr.bf16.mxu0 %v10013_v36  ;;  %7536 = vmatprep.subr.bf16.mxu1 %v10016_v51  ;;  %v10099_v49 = vld [vmem:[%s11458_s3 + $0xfe0] ss:$16 sps:$4 sm:$0xff]   ;;  %v10102_v36 = vld [vmem:[%s11458_s3 + $0xfe8] ss:$16 sps:$4 sm:$0xff]   ;;  %v10104_v51 = vld [vmem:[%s11458_s3 + $0x1004] ss:$16 sps:$4 sm:$0xff]  }
 0x26b   : > { %4107 = vmatprep.mubr.f32.mxu0 %v3445_v52  ;;  %5243 = vmatprep.mubr.f32.mxu1 %v3445_v52  ;;  %v10106_v52 = vld [vmem:[%s11458_s3 + $0x1000] ss:$16 sps:$4 sm:$0xff]  }
 0x26d   : > { %6514 = vmatpush1.bf16.msra.mxu0 %v10015_v37  ;;  %7538 = vmatpush1.bf16.msra.mxu1 %v10018_v53  ;;  %v10107_v37 = vld [vmem:[%s11458_s3 + $0x100c] ss:$16 sps:$4 sm:$0xff]   ;;  %v12070_v53 = vrot.slane %v12061_v47, %v11525_v50 }
 0x26e   : > { %6516 = vmatprep.subr.bf16.mxu0 %v10019_v54  ;;  %7540 = vmatprep.subr.bf16.mxu1 %v10022_v55  ;;  %v10109_v54 = vld [vmem:[%s11458_s3 + $0x1008] ss:$16 sps:$4 sm:$0xff]   ;;  %v10110_v55 = vld [vmem:[%s11458_s3 + $0x1024] ss:$16 sps:$4 sm:$0xff]  }
 0x271   : > { %6518 = vmatpush1.bf16.msra.mxu0 %v10021_v56  ;;  %7542 = vmatpush1.bf16.msra.mxu1 %v10024_v41  ;;  %v10113_v56 = vld [vmem:[%s11458_s3 + $0x102c] ss:$16 sps:$4 sm:$0xff]   ;;  %v10112_v41 = vld [vmem:[%s11458_s3 + $0x1020] ss:$16 sps:$4 sm:$0xff]  }
 0x272   : > { %6520 = vmatprep.subr.bf16.mxu0 %v10025_v57  ;;  %7544 = vmatprep.subr.bf16.mxu1 %v10028_v58  ;;  %v3461_v57 = vcombine.high %v12070_v53, %v12070_v53  ;;  %v10115_v58 = vld [vmem:[%s11458_s3 + $0x1028] ss:$16 sps:$4 sm:$0xff]  }
 0x275   : > { %6522 = vmatpush1.bf16.msra.mxu0 %v10027_v59  ;;  %7546 = vmatpush1.bf16.msra.mxu1 %v10030_v60  ;;  %v10116_v59 = vld [vmem:[%s11458_s3 + $0x1044] ss:$16 sps:$4 sm:$0xff]   ;;  %v10119_v60 = vld [vmem:[%s11458_s3 + $0x104c] ss:$16 sps:$4 sm:$0xff]  }
 0x276   : > { %6524 = vmatprep.subr.bf16.mxu0 %v10031_v61  ;;  %7548 = vmatprep.subr.bf16.mxu1 %v10034_v62  ;;  %v10118_v61 = vld [vmem:[%s11458_s3 + $0x1040] ss:$16 sps:$4 sm:$0xff]   ;;  %v10122_v62 = vld [vmem:[%s11458_s3 + $0x1064] ss:$16 sps:$4 sm:$0xff]  }
 0x279   : > { %6526 = vmatpush1.bf16.msra.mxu0 %v10033_v63  ;;  %7550 = vmatpush1.bf16.msra.mxu1 %v10036_v0  ;;  %v10125_v63 = vld [vmem:[%s11458_s3 + $0x106c] ss:$16 sps:$4 sm:$0xff]   ;;  %v10124_v0 = vld [vmem:[%s11458_s3 + $0x1060] ss:$16 sps:$4 sm:$0xff]  }
 0x27a   : > { %6528 = vmatprep.subr.bf16.mxu0 %v10037_v1  ;;  %7552 = vmatprep.subr.bf16.mxu1 %v10040_v2  ;;  %v10127_v1 = vld [vmem:[%s11458_s3 + $0x1068] ss:$16 sps:$4 sm:$0xff]   ;;  %v10128_v2 = vld [vmem:[%s11458_s3 + $0x1084] ss:$16 sps:$4 sm:$0xff]  }
 0x27d   : > { %6530 = vmatpush1.bf16.msra.mxu0 %v10039_v3  ;;  %7554 = vmatpush1.bf16.msra.mxu1 %v10042_v4  ;;  %v10131_v3 = vld [vmem:[%s11458_s3 + $0x108c] ss:$16 sps:$4 sm:$0xff]   ;;  %v10130_v4 = vld [vmem:[%s11458_s3 + $0x1080] ss:$16 sps:$4 sm:$0xff]  }
 0x27e   : > { %6532 = vmatprep.subr.bf16.mxu0 %v10043_v5  ;;  %7556 = vmatprep.subr.bf16.mxu1 %v10046_v6  ;;  %v10133_v5 = vld [vmem:[%s11458_s3 + $0x1088] ss:$16 sps:$4 sm:$0xff]   ;;  %v10134_v6 = vld [vmem:[%s11458_s3 + $0x10a4] ss:$16 sps:$4 sm:$0xff]  }
 0x281   : > { %6534 = vmatpush1.bf16.msra.mxu0 %v10045_v7  ;;  %7558 = vmatpush1.bf16.msra.mxu1 %v10048_v8  ;;  %v10137_v7 = vld [vmem:[%s11458_s3 + $0x10ac] ss:$16 sps:$4 sm:$0xff]   ;;  %v10136_v8 = vld [vmem:[%s11458_s3 + $0x10a0] ss:$16 sps:$4 sm:$0xff]  }
 0x282   : > { %6536 = vmatprep.subr.bf16.mxu0 %v10049_v9  ;;  %7560 = vmatprep.subr.bf16.mxu1 %v10052_v10  ;;  %v10139_v9 = vld [vmem:[%s11458_s3 + $0x10a8] ss:$16 sps:$4 sm:$0xff]   ;;  %v10140_v10 = vld [vmem:[%s11458_s3 + $0x10c4] ss:$16 sps:$4 sm:$0xff]  }
 0x285   : > { %6538 = vmatpush1.bf16.msra.mxu0 %v10051_v11  ;;  %7562 = vmatpush1.bf16.msra.mxu1 %v10054_v12  ;;  %v10143_v11 = vld [vmem:[%s11458_s3 + $0x10cc] ss:$16 sps:$4 sm:$0xff]   ;;  %v10142_v12 = vld [vmem:[%s11458_s3 + $0x10c0] ss:$16 sps:$4 sm:$0xff]  }
 0x286   : > { %6540 = vmatprep.subr.bf16.mxu0 %v10055_v14  ;;  %7564 = vmatprep.subr.bf16.mxu1 %v10058_v15  ;;  %v10145_v14 = vld [vmem:[%s11458_s3 + $0x10c8] ss:$16 sps:$4 sm:$0xff]   ;;  %v10146_v15 = vld [vmem:[%s11458_s3 + $0x10e4] ss:$16 sps:$4 sm:$0xff]  }
 0x289   : > { %6542 = vmatpush1.bf16.msra.mxu0 %v10057_v16  ;;  %7566 = vmatpush1.bf16.msra.mxu1 %v10060_v17  ;;  %v10149_v16 = vld [vmem:[%s11458_s3 + $0x10ec] ss:$16 sps:$4 sm:$0xff]   ;;  %v10148_v17 = vld [vmem:[%s11458_s3 + $0x10e0] ss:$16 sps:$4 sm:$0xff]  }
 0x28a   : > { %6544 = vmatprep.subr.bf16.mxu0 %v10061_v18  ;;  %7568 = vmatprep.subr.bf16.mxu1 %v10064_v19  ;;  %v10151_v18 = vld [vmem:[%s11458_s3 + $0x10e8] ss:$16 sps:$4 sm:$0xff]   ;;  %v10152_v19 = vld [vmem:[%s11458_s3 + $0x1104] ss:$16 sps:$4 sm:$0xff]  }
 0x28d   : > { %6546 = vmatpush1.bf16.msra.mxu0 %v10063_v21  ;;  %7570 = vmatpush1.bf16.msra.mxu1 %v10066_v22  ;;  %v10155_v21 = vld [vmem:[%s11458_s3 + $0x110c] ss:$16 sps:$4 sm:$0xff]   ;;  %v10154_v22 = vld [vmem:[%s11458_s3 + $0x1100] ss:$16 sps:$4 sm:$0xff]  }
 0x28e   : > { %6548 = vmatprep.subr.bf16.mxu0 %v10067_v24  ;;  %7572 = vmatprep.subr.bf16.mxu1 %v10070_v25  ;;  %v10157_v24 = vld [vmem:[%s11458_s3 + $0x1108] ss:$16 sps:$4 sm:$0xff]   ;;  %v10158_v25 = vld [vmem:[%s11458_s3 + $0x1124] ss:$16 sps:$4 sm:$0xff]  }
 0x291   : > { %6550 = vmatpush1.bf16.msra.mxu0 %v10069_v27  ;;  %7574 = vmatpush1.bf16.msra.mxu1 %v10072_v28  ;;  %v10161_v27 = vld [vmem:[%s11458_s3 + $0x112c] ss:$16 sps:$4 sm:$0xff]   ;;  %v10160_v28 = vld [vmem:[%s11458_s3 + $0x1120] ss:$16 sps:$4 sm:$0xff]  }
 0x292   : > { %6552 = vmatprep.subr.bf16.mxu0 %v10073_v13  ;;  %7576 = vmatprep.subr.bf16.mxu1 %v10076_v29  ;;  %v10163_v13 = vld [vmem:[%s11458_s3 + $0x1128] ss:$16 sps:$4 sm:$0xff]   ;;  %v10164_v29 = vld [vmem:[%s11458_s3 + $0x1144] ss:$16 sps:$4 sm:$0xff]  }
 0x295   : > { %6554 = vmatpush1.bf16.msra.mxu0 %v10075_v31  ;;  %7578 = vmatpush1.bf16.msra.mxu1 %v10078_v32  ;;  %v10167_v31 = vld [vmem:[%s11458_s3 + $0x114c] ss:$16 sps:$4 sm:$0xff]   ;;  %v10166_v32 = vld [vmem:[%s11458_s3 + $0x1140] ss:$16 sps:$4 sm:$0xff]  }
 0x296   : > { %6556 = vmatprep.subr.bf16.mxu0 %v10079_v33  ;;  %7580 = vmatprep.subr.bf16.mxu1 %v10082_v34  ;;  %v10169_v33 = vld [vmem:[%s11458_s3 + $0x1148] ss:$16 sps:$4 sm:$0xff]   ;;  %v10170_v34 = vld [vmem:[%s11458_s3 + $0x1164] ss:$16 sps:$4 sm:$0xff]  }
 0x299   : > { %6558 = vmatpush1.bf16.msra.mxu0 %v10081_v23  ;;  %7582 = vmatpush1.bf16.msra.mxu1 %v10084_v35  ;;  %v10173_v23 = vld [vmem:[%s11458_s3 + $0x116c] ss:$16 sps:$4 sm:$0xff]   ;;  %v10172_v35 = vld [vmem:[%s11458_s3 + $0x1160] ss:$16 sps:$4 sm:$0xff]  }
 0x29a   : > { %6560 = vmatprep.subr.bf16.mxu0 %v10085_v38  ;;  %7584 = vmatprep.subr.bf16.mxu1 %v10088_v20  ;;  %v10175_v38 = vld [vmem:[%s11458_s3 + $0x1168] ss:$16 sps:$4 sm:$0xff]   ;;  %v10176_v20 = vld [vmem:[%s11458_s3 + $0x1184] ss:$16 sps:$4 sm:$0xff]  }
 0x29d   : > { %6562 = vmatpush1.bf16.msra.mxu0 %v10087_v39  ;;  %7586 = vmatpush1.bf16.msra.mxu1 %v10090_v26  ;;  %v10179_v39 = vld [vmem:[%s11458_s3 + $0x118c] ss:$16 sps:$4 sm:$0xff]   ;;  %v10178_v26 = vld [vmem:[%s11458_s3 + $0x1180] ss:$16 sps:$4 sm:$0xff]  }
 0x29e   : > { %6564 = vmatprep.subr.bf16.mxu0 %v10091_v40  ;;  %7588 = vmatprep.subr.bf16.mxu1 %v10094_v42  ;;  %v10181_v40 = vld [vmem:[%s11458_s3 + $0x1188] ss:$16 sps:$4 sm:$0xff]   ;;  %v10182_v42 = vld [vmem:[%s11458_s3 + $0x11a4] ss:$16 sps:$4 sm:$0xff]  }
 0x2a1   : > { %6566 = vmatpush1.bf16.msra.mxu0 %v10093_v43  ;;  %7590 = vmatpush1.bf16.msra.mxu1 %v10096_v45  ;;  %v10185_v43 = vld [vmem:[%s11458_s3 + $0x11ac] ss:$16 sps:$4 sm:$0xff]   ;;  %v10184_v45 = vld [vmem:[%s11458_s3 + $0x11a0] ss:$16 sps:$4 sm:$0xff]  }
 0x2a2   : > { %6568 = vmatprep.subr.bf16.mxu0 %v10097_v30  ;;  %7592 = vmatprep.subr.bf16.mxu1 %v10100_v46  ;;  %v10187_v30 = vld [vmem:[%s11458_s3 + $0x11a8] ss:$16 sps:$4 sm:$0xff]   ;;  %v10188_v46 = vld [vmem:[%s11458_s3 + $0x11c4] ss:$16 sps:$4 sm:$0xff]  }
 0x2a5   : > { %6570 = vmatpush1.bf16.msra.mxu0 %v10099_v49  ;;  %7594 = vmatpush1.bf16.msra.mxu1 %v10102_v36  ;;  %v10191_v49 = vld [vmem:[%s11458_s3 + $0x11cc] ss:$16 sps:$4 sm:$0xff]   ;;  %v10190_v36 = vld [vmem:[%s11458_s3 + $0x11c0] ss:$16 sps:$4 sm:$0xff]  }
 0x2a6   : > { %6572 = vmatprep.subr.bf16.mxu0 %v10104_v51  ;;  %7596 = vmatprep.subr.bf16.mxu1 %v10107_v37  ;;  %v10193_v51 = vld [vmem:[%s11458_s3 + $0x11c8] ss:$16 sps:$4 sm:$0xff]   ;;  %v10194_v37 = vld [vmem:[%s11458_s3 + $0x11e4] ss:$16 sps:$4 sm:$0xff]  }
 0x2a8   : > { %4108 = vmatmul.mubr.f32.vlgmr.msra.gmra.mrb[0].mxu0 %v11995_v48  ;;  %5244 = vmatmul.mubr.f32.vlgmr.msra.gmra.mrb[0].mxu1 %v11995_v48  ;;  %v10121_v48 = vld [vmem:[%s11458_s3 + $0x1048] ss:$16 sps:$4 sm:$0xff]  }
 0x2a9   : > { %6574 = vmatpush1.bf16.msra.mxu0 %v10106_v52  ;;  %7598 = vmatpush1.bf16.msra.mxu1 %v10109_v54  ;;  %v10197_v52 = vld [vmem:[%s11458_s3 + $0x11ec] ss:$16 sps:$4 sm:$0xff]   ;;  %v10196_v54 = vld [vmem:[%s11458_s3 + $0x11e0] ss:$16 sps:$4 sm:$0xff]  }
 0x2aa   : > { %6576 = vmatprep.subr.bf16.mxu0 %v10110_v55  ;;  %7600 = vmatprep.subr.bf16.mxu1 %v10113_v56  ;;  %v3446_v55 = vcombine.high %v12061_v47, %v12061_v47  ;;  %v10199_v56 = vld [vmem:[%s11458_s3 + $0x11e8] ss:$16 sps:$4 sm:$0xff]   ;;  %v10206_v47 = vld [vmem:[%s11458_s3 + $0x1224] ss:$16 sps:$4 sm:$0xff]  }
 0x2ab   : > { %4178 = vmatprep.mubr.f32.mxu0 %v3461_v57  ;;  %5314 = vmatprep.mubr.f32.mxu1 %v3461_v57  ;;  %v10203_v57 = vld [vmem:[%s11458_s3 + $0x120c] ss:$16 sps:$4 sm:$0xff]  }
 0x2ad   : > { %6578 = vmatpush1.bf16.msra.mxu0 %v10112_v41  ;;  %7602 = vmatpush1.bf16.msra.mxu1 %v10115_v58  ;;  %v10200_v41 = vld [vmem:[%s11458_s3 + $0x1204] ss:$16 sps:$4 sm:$0xff]   ;;  %v10202_v58 = vld [vmem:[%s11458_s3 + $0x1200] ss:$16 sps:$4 sm:$0xff]  }
 0x2ae   : > { %6580 = vmatprep.subr.bf16.mxu0 %v10116_v59  ;;  %7604 = vmatprep.subr.bf16.mxu1 %v10119_v60  ;;  %v12143_v59 = vrot.slane %v3446_v55, %v11525_v50  ;;  %v10205_v60 = vld [vmem:[%s11458_s3 + $0x1208] ss:$16 sps:$4 sm:$0xff]   ;;  %v10286_v55 = vld [vmem:[%s11458_s3 + $0x13c0] ss:$16 sps:$4 sm:$0xff]  }
 0x2b1   : > { %6582 = vmatpush1.bf16.msra.mxu0 %v10118_v61  ;;  %7606 = vmatpush1.bf16.msra.mxu1 %v10121_v48  ;;  %v10209_v61 = vld [vmem:[%s11458_s3 + $0x122c] ss:$16 sps:$4 sm:$0xff]   ;;  %v3462_v48 = vcombine.high %v12143_v59, %v12143_v59 }
 0x2b2   : > { %6584 = vmatprep.subr.bf16.mxu0 %v10122_v62  ;;  %7608 = vmatprep.subr.bf16.mxu1 %v10125_v63  ;;  %v10208_v62 = vld [vmem:[%s11458_s3 + $0x1220] ss:$16 sps:$4 sm:$0xff]   ;;  %v10211_v63 = vld [vmem:[%s11458_s3 + $0x1228] ss:$16 sps:$4 sm:$0xff]  }
 0x2b5   : > { %6586 = vmatpush1.bf16.msra.mxu0 %v10124_v0  ;;  %7610 = vmatpush1.bf16.msra.mxu1 %v10127_v1  ;;  %v10212_v0 = vld [vmem:[%s11458_s3 + $0x1244] ss:$16 sps:$4 sm:$0xff]   ;;  %v10215_v1 = vld [vmem:[%s11458_s3 + $0x124c] ss:$16 sps:$4 sm:$0xff]  }
 0x2b6   : > { %6588 = vmatprep.subr.bf16.mxu0 %v10128_v2  ;;  %7612 = vmatprep.subr.bf16.mxu1 %v10131_v3  ;;  %v10214_v2 = vld [vmem:[%s11458_s3 + $0x1240] ss:$16 sps:$4 sm:$0xff]   ;;  %v10218_v3 = vld [vmem:[%s11458_s3 + $0x1264] ss:$16 sps:$4 sm:$0xff]  }
 0x2b9   : > { %6590 = vmatpush1.bf16.msra.mxu0 %v10130_v4  ;;  %7614 = vmatpush1.bf16.msra.mxu1 %v10133_v5  ;;  %v10221_v4 = vld [vmem:[%s11458_s3 + $0x126c] ss:$16 sps:$4 sm:$0xff]   ;;  %v10220_v5 = vld [vmem:[%s11458_s3 + $0x1260] ss:$16 sps:$4 sm:$0xff]  }
 0x2ba   : > { %6592 = vmatprep.subr.bf16.mxu0 %v10134_v6  ;;  %7616 = vmatprep.subr.bf16.mxu1 %v10137_v7  ;;  %v10223_v6 = vld [vmem:[%s11458_s3 + $0x1268] ss:$16 sps:$4 sm:$0xff]   ;;  %v10224_v7 = vld [vmem:[%s11458_s3 + $0x1284] ss:$16 sps:$4 sm:$0xff]  }
 0x2bd   : > { %6594 = vmatpush1.bf16.msra.mxu0 %v10136_v8  ;;  %7618 = vmatpush1.bf16.msra.mxu1 %v10139_v9  ;;  %v10227_v8 = vld [vmem:[%s11458_s3 + $0x128c] ss:$16 sps:$4 sm:$0xff]   ;;  %v10226_v9 = vld [vmem:[%s11458_s3 + $0x1280] ss:$16 sps:$4 sm:$0xff]  }
 0x2be   : > { %6596 = vmatprep.subr.bf16.mxu0 %v10140_v10  ;;  %7620 = vmatprep.subr.bf16.mxu1 %v10143_v11  ;;  %v10229_v10 = vld [vmem:[%s11458_s3 + $0x1288] ss:$16 sps:$4 sm:$0xff]   ;;  %v10230_v11 = vld [vmem:[%s11458_s3 + $0x12a4] ss:$16 sps:$4 sm:$0xff]  }
 0x2c1   : > { %6598 = vmatpush1.bf16.msra.mxu0 %v10142_v12  ;;  %7622 = vmatpush1.bf16.msra.mxu1 %v10145_v14  ;;  %v10233_v12 = vld [vmem:[%s11458_s3 + $0x12ac] ss:$16 sps:$4 sm:$0xff]   ;;  %v10232_v14 = vld [vmem:[%s11458_s3 + $0x12a0] ss:$16 sps:$4 sm:$0xff]  }
 0x2c2   : > { %6600 = vmatprep.subr.bf16.mxu0 %v10146_v15  ;;  %7624 = vmatprep.subr.bf16.mxu1 %v10149_v16  ;;  %v10235_v15 = vld [vmem:[%s11458_s3 + $0x12a8] ss:$16 sps:$4 sm:$0xff]   ;;  %v10236_v16 = vld [vmem:[%s11458_s3 + $0x12c4] ss:$16 sps:$4 sm:$0xff]  }
 0x2c5   : > { %6602 = vmatpush1.bf16.msra.mxu0 %v10148_v17  ;;  %7626 = vmatpush1.bf16.msra.mxu1 %v10151_v18  ;;  %v10239_v17 = vld [vmem:[%s11458_s3 + $0x12cc] ss:$16 sps:$4 sm:$0xff]   ;;  %v10238_v18 = vld [vmem:[%s11458_s3 + $0x12c0] ss:$16 sps:$4 sm:$0xff]  }
 0x2c6   : > { %6604 = vmatprep.subr.bf16.mxu0 %v10152_v19  ;;  %7628 = vmatprep.subr.bf16.mxu1 %v10155_v21  ;;  %v10241_v19 = vld [vmem:[%s11458_s3 + $0x12c8] ss:$16 sps:$4 sm:$0xff]   ;;  %v10242_v21 = vld [vmem:[%s11458_s3 + $0x12e4] ss:$16 sps:$4 sm:$0xff]  }
 0x2c9   : > { %6606 = vmatpush1.bf16.msra.mxu0 %v10154_v22  ;;  %7630 = vmatpush1.bf16.msra.mxu1 %v10157_v24  ;;  %v10245_v22 = vld [vmem:[%s11458_s3 + $0x12ec] ss:$16 sps:$4 sm:$0xff]   ;;  %v10244_v24 = vld [vmem:[%s11458_s3 + $0x12e0] ss:$16 sps:$4 sm:$0xff]  }
 0x2ca   : > { %6608 = vmatprep.subr.bf16.mxu0 %v10158_v25  ;;  %7632 = vmatprep.subr.bf16.mxu1 %v10161_v27  ;;  %v10247_v25 = vld [vmem:[%s11458_s3 + $0x12e8] ss:$16 sps:$4 sm:$0xff]   ;;  %v10248_v27 = vld [vmem:[%s11458_s3 + $0x1304] ss:$16 sps:$4 sm:$0xff]  }
 0x2cd   : > { %6610 = vmatpush1.bf16.msra.mxu0 %v10160_v28  ;;  %7634 = vmatpush1.bf16.msra.mxu1 %v10163_v13  ;;  %v10251_v28 = vld [vmem:[%s11458_s3 + $0x130c] ss:$16 sps:$4 sm:$0xff]   ;;  %v10250_v13 = vld [vmem:[%s11458_s3 + $0x1300] ss:$16 sps:$4 sm:$0xff]  }
 0x2ce   : > { %6612 = vmatprep.subr.bf16.mxu0 %v10164_v29  ;;  %7636 = vmatprep.subr.bf16.mxu1 %v10167_v31  ;;  %v10253_v29 = vld [vmem:[%s11458_s3 + $0x1308] ss:$16 sps:$4 sm:$0xff]   ;;  %v10254_v31 = vld [vmem:[%s11458_s3 + $0x1324] ss:$16 sps:$4 sm:$0xff]  }
 0x2d1   : > { %6614 = vmatpush1.bf16.msra.mxu0 %v10166_v32  ;;  %7638 = vmatpush1.bf16.msra.mxu1 %v10169_v33  ;;  %v10257_v32 = vld [vmem:[%s11458_s3 + $0x132c] ss:$16 sps:$4 sm:$0xff]   ;;  %v10256_v33 = vld [vmem:[%s11458_s3 + $0x1320] ss:$16 sps:$4 sm:$0xff]  }
 0x2d2   : > { %6616 = vmatprep.subr.bf16.mxu0 %v10170_v34  ;;  %7640 = vmatprep.subr.bf16.mxu1 %v10173_v23  ;;  %v10259_v34 = vld [vmem:[%s11458_s3 + $0x1328] ss:$16 sps:$4 sm:$0xff]   ;;  %v10260_v23 = vld [vmem:[%s11458_s3 + $0x1344] ss:$16 sps:$4 sm:$0xff]  }
 0x2d5   : > { %6618 = vmatpush1.bf16.msra.mxu0 %v10172_v35  ;;  %7642 = vmatpush1.bf16.msra.mxu1 %v10175_v38  ;;  %v10263_v35 = vld [vmem:[%s11458_s3 + $0x134c] ss:$16 sps:$4 sm:$0xff]   ;;  %v10262_v38 = vld [vmem:[%s11458_s3 + $0x1340] ss:$16 sps:$4 sm:$0xff]  }
 0x2d6   : > { %6620 = vmatprep.subr.bf16.mxu0 %v10176_v20  ;;  %7644 = vmatprep.subr.bf16.mxu1 %v10179_v39  ;;  %v10265_v20 = vld [vmem:[%s11458_s3 + $0x1348] ss:$16 sps:$4 sm:$0xff]   ;;  %v10266_v39 = vld [vmem:[%s11458_s3 + $0x1364] ss:$16 sps:$4 sm:$0xff]  }
 0x2d9   : > { %6622 = vmatpush1.bf16.msra.mxu0 %v10178_v26  ;;  %7646 = vmatpush1.bf16.msra.mxu1 %v10181_v40  ;;  %v10269_v26 = vld [vmem:[%s11458_s3 + $0x136c] ss:$16 sps:$4 sm:$0xff]   ;;  %v10268_v40 = vld [vmem:[%s11458_s3 + $0x1360] ss:$16 sps:$4 sm:$0xff]  }
 0x2da   : > { %6624 = vmatprep.subr.bf16.mxu0 %v10182_v42  ;;  %7648 = vmatprep.subr.bf16.mxu1 %v10185_v43  ;;  %v10271_v42 = vld [vmem:[%s11458_s3 + $0x1368] ss:$16 sps:$4 sm:$0xff]   ;;  %v10272_v43 = vld [vmem:[%s11458_s3 + $0x1384] ss:$16 sps:$4 sm:$0xff]  }
 0x2dd   : > { %6626 = vmatpush1.bf16.msra.mxu0 %v10184_v45  ;;  %7650 = vmatpush1.bf16.msra.mxu1 %v10187_v30  ;;  %v10275_v45 = vld [vmem:[%s11458_s3 + $0x138c] ss:$16 sps:$4 sm:$0xff]   ;;  %v10274_v30 = vld [vmem:[%s11458_s3 + $0x1380] ss:$16 sps:$4 sm:$0xff]  }
 0x2de   : > { %6628 = vmatprep.subr.bf16.mxu0 %v10188_v46  ;;  %7652 = vmatprep.subr.bf16.mxu1 %v10191_v49  ;;  %v10277_v46 = vld [vmem:[%s11458_s3 + $0x1388] ss:$16 sps:$4 sm:$0xff]   ;;  %v10278_v49 = vld [vmem:[%s11458_s3 + $0x13a4] ss:$16 sps:$4 sm:$0xff]  }
 0x2e1   : > { %6630 = vmatpush1.bf16.msra.mxu0 %v10190_v36  ;;  %7654 = vmatpush1.bf16.msra.mxu1 %v10193_v51  ;;  %v10281_v36 = vld [vmem:[%s11458_s3 + $0x13ac] ss:$16 sps:$4 sm:$0xff]   ;;  %v10280_v51 = vld [vmem:[%s11458_s3 + $0x13a0] ss:$16 sps:$4 sm:$0xff]  }
 0x2e2   : > { %6632 = vmatprep.subr.bf16.mxu0 %v10194_v37  ;;  %7656 = vmatprep.subr.bf16.mxu1 %v10197_v52  ;;  %v10283_v37 = vld [vmem:[%s11458_s3 + $0x13a8] ss:$16 sps:$4 sm:$0xff]   ;;  %v10284_v52 = vld [vmem:[%s11458_s3 + $0x13c4] ss:$16 sps:$4 sm:$0xff]  }
 0x2e5   : > { %6634 = vmatpush1.bf16.msra.mxu0 %v10196_v54  ;;  %7658 = vmatpush1.bf16.msra.mxu1 %v10199_v56  ;;  %v10287_v54 = vld [vmem:[%s11458_s3 + $0x13cc] ss:$16 sps:$4 sm:$0xff]   ;;  %v10289_v56 = vld [vmem:[%s11458_s3 + $0x13c8] ss:$16 sps:$4 sm:$0xff]  }
 0x2e6   : > { %6636 = vmatprep.subr.bf16.mxu0 %v10200_v41  ;;  %7660 = vmatprep.subr.bf16.mxu1 %v10203_v57  ;;  %v10290_v41 = vld [vmem:[%s11458_s3 + $0x13e4] ss:$16 sps:$4 sm:$0xff]   ;;  %v10293_v57 = vld [vmem:[%s11458_s3 + $0x13ec] ss:$16 sps:$4 sm:$0xff]  }
 0x2e8   : > { %4179 = vmatmul.mubr.f32.vlgmr.msra.gmra.mrb[0].mxu0 %v12070_v53  ;;  %5315 = vmatmul.mubr.f32.vlgmr.msra.gmra.mrb[0].mxu1 %v12070_v53  ;;  %v10217_v53 = vld [vmem:[%s11458_s3 + $0x1248] ss:$16 sps:$4 sm:$0xff]  }
 0x2e9   : > { %6638 = vmatpush1.bf16.msra.mxu0 %v10202_v58  ;;  %7662 = vmatpush1.bf16.msra.mxu1 %v10205_v60  ;;  %v12209_v58 = vld [vmem:[%s11450_s20 + $0x28] sm:$0xff]  ;;  %v10292_v60 = vld [vmem:[%s11458_s3 + $0x13e0] ss:$16 sps:$4 sm:$0xff]  }
 0x2ea   : > { %6640 = vmatprep.subr.bf16.mxu0 %v10206_v47  ;;  %7664 = vmatprep.subr.bf16.mxu1 %v10209_v61  ;;  %v10295_v47 = vld [vmem:[%s11458_s3 + $0x13e8] ss:$16 sps:$4 sm:$0xff]   ;;  %v10297_v61 = vld [vmem:[%s11458_s3 + $0x1404] ss:$16 sps:$4 sm:$0xff]  }
 0x2eb   : > { %4249 = vmatprep.mubr.f32.mxu0 %v3462_v48  ;;  %5385 = vmatprep.mubr.f32.mxu1 %v3462_v48  ;;  %v10300_v48 = vld [vmem:[%s11458_s3 + $0x140c] ss:$16 sps:$4 sm:$0xff]  }
 0x2ed   : > { %6642 = vmatpush1.bf16.msra.mxu0 %v10208_v62  ;;  %7666 = vmatpush1.bf16.msra.mxu1 %v10211_v63  ;;  %v12217_v62 = vrot.slane %v12209_v58, %v11525_v50  ;;  %v10299_v63 = vld [vmem:[%s11458_s3 + $0x1400] ss:$16 sps:$4 sm:$0xff]  }
 0x2ee   : > { %6644 = vmatprep.subr.bf16.mxu0 %v10212_v0  ;;  %7668 = vmatprep.subr.bf16.mxu1 %v10215_v1  ;;  %v10302_v0 = vld [vmem:[%s11458_s3 + $0x1408] ss:$16 sps:$4 sm:$0xff]   ;;  %v10303_v1 = vld [vmem:[%s11458_s3 + $0x1424] ss:$16 sps:$4 sm:$0xff]  }
 0x2f1   : > { %6646 = vmatpush1.bf16.msra.mxu0 %v10214_v2  ;;  %7670 = vmatpush1.bf16.msra.mxu1 %v10217_v53  ;;  %v10306_v2 = vld [vmem:[%s11458_s3 + $0x142c] ss:$16 sps:$4 sm:$0xff]   ;;  %v3478_v53 = vcombine.high %v12217_v62, %v12217_v62 }
 0x2f2   : > { %6648 = vmatprep.subr.bf16.mxu0 %v10218_v3  ;;  %7672 = vmatprep.subr.bf16.mxu1 %v10221_v4  ;;  %v10305_v3 = vld [vmem:[%s11458_s3 + $0x1420] ss:$16 sps:$4 sm:$0xff]   ;;  %v10308_v4 = vld [vmem:[%s11458_s3 + $0x1428] ss:$16 sps:$4 sm:$0xff]  }
 0x2f5   : > { %6650 = vmatpush1.bf16.msra.mxu0 %v10220_v5  ;;  %7674 = vmatpush1.bf16.msra.mxu1 %v10223_v6  ;;  %v10309_v5 = vld [vmem:[%s11458_s3 + $0x1444] ss:$16 sps:$4 sm:$0xff]   ;;  %v10312_v6 = vld [vmem:[%s11458_s3 + $0x144c] ss:$16 sps:$4 sm:$0xff]  }
 0x2f6   : > { %6652 = vmatprep.subr.bf16.mxu0 %v10224_v7  ;;  %7676 = vmatprep.subr.bf16.mxu1 %v10227_v8  ;;  %v10311_v7 = vld [vmem:[%s11458_s3 + $0x1440] ss:$16 sps:$4 sm:$0xff]   ;;  %v10315_v8 = vld [vmem:[%s11458_s3 + $0x1464] ss:$16 sps:$4 sm:$0xff]  }
 0x2f9   : > { %6654 = vmatpush1.bf16.msra.mxu0 %v10226_v9  ;;  %7678 = vmatpush1.bf16.msra.mxu1 %v10229_v10  ;;  %v10318_v9 = vld [vmem:[%s11458_s3 + $0x146c] ss:$16 sps:$4 sm:$0xff]   ;;  %v10317_v10 = vld [vmem:[%s11458_s3 + $0x1460] ss:$16 sps:$4 sm:$0xff]  }
 0x2fa   : > { %6656 = vmatprep.subr.bf16.mxu0 %v10230_v11  ;;  %7680 = vmatprep.subr.bf16.mxu1 %v10233_v12  ;;  %v10320_v11 = vld [vmem:[%s11458_s3 + $0x1468] ss:$16 sps:$4 sm:$0xff]   ;;  %v10321_v12 = vld [vmem:[%s11458_s3 + $0x1484] ss:$16 sps:$4 sm:$0xff]  }
 0x2fd   : > { %6658 = vmatpush1.bf16.msra.mxu0 %v10232_v14  ;;  %7682 = vmatpush1.bf16.msra.mxu1 %v10235_v15  ;;  %v10324_v14 = vld [vmem:[%s11458_s3 + $0x148c] ss:$16 sps:$4 sm:$0xff]   ;;  %v10323_v15 = vld [vmem:[%s11458_s3 + $0x1480] ss:$16 sps:$4 sm:$0xff]  }
 0x2fe   : > { %6660 = vmatprep.subr.bf16.mxu0 %v10236_v16  ;;  %7684 = vmatprep.subr.bf16.mxu1 %v10239_v17  ;;  %v10326_v16 = vld [vmem:[%s11458_s3 + $0x1488] ss:$16 sps:$4 sm:$0xff]   ;;  %v10327_v17 = vld [vmem:[%s11458_s3 + $0x14a4] ss:$16 sps:$4 sm:$0xff]  }
 0x301   : > { %6662 = vmatpush1.bf16.msra.mxu0 %v10238_v18  ;;  %7686 = vmatpush1.bf16.msra.mxu1 %v10241_v19  ;;  %v10330_v18 = vld [vmem:[%s11458_s3 + $0x14ac] ss:$16 sps:$4 sm:$0xff]   ;;  %v10329_v19 = vld [vmem:[%s11458_s3 + $0x14a0] ss:$16 sps:$4 sm:$0xff]  }
 0x302   : > { %6664 = vmatprep.subr.bf16.mxu0 %v10242_v21  ;;  %7688 = vmatprep.subr.bf16.mxu1 %v10245_v22  ;;  %v10332_v21 = vld [vmem:[%s11458_s3 + $0x14a8] ss:$16 sps:$4 sm:$0xff]   ;;  %v10333_v22 = vld [vmem:[%s11458_s3 + $0x14c4] ss:$16 sps:$4 sm:$0xff]  }
 0x305   : > { %6666 = vmatpush1.bf16.msra.mxu0 %v10244_v24  ;;  %7690 = vmatpush1.bf16.msra.mxu1 %v10247_v25  ;;  %v10336_v24 = vld [vmem:[%s11458_s3 + $0x14cc] ss:$16 sps:$4 sm:$0xff]   ;;  %v10335_v25 = vld [vmem:[%s11458_s3 + $0x14c0] ss:$16 sps:$4 sm:$0xff]  }
 0x306   : > { %6668 = vmatprep.subr.bf16.mxu0 %v10248_v27  ;;  %7692 = vmatprep.subr.bf16.mxu1 %v10251_v28  ;;  %v10338_v27 = vld [vmem:[%s11458_s3 + $0x14c8] ss:$16 sps:$4 sm:$0xff]   ;;  %v10339_v28 = vld [vmem:[%s11458_s3 + $0x14e4] ss:$16 sps:$4 sm:$0xff]  }
 0x309   : > { %6670 = vmatpush1.bf16.msra.mxu0 %v10250_v13  ;;  %7694 = vmatpush1.bf16.msra.mxu1 %v10253_v29  ;;  %v10342_v13 = vld [vmem:[%s11458_s3 + $0x14ec] ss:$16 sps:$4 sm:$0xff]   ;;  %v10341_v29 = vld [vmem:[%s11458_s3 + $0x14e0] ss:$16 sps:$4 sm:$0xff]  }
 0x30a   : > { %6672 = vmatprep.subr.bf16.mxu0 %v10254_v31  ;;  %7696 = vmatprep.subr.bf16.mxu1 %v10257_v32  ;;  %v10344_v31 = vld [vmem:[%s11458_s3 + $0x14e8] ss:$16 sps:$4 sm:$0xff]   ;;  %v10345_v32 = vld [vmem:[%s11458_s3 + $0x1504] ss:$16 sps:$4 sm:$0xff]  }
 0x30d   : > { %6674 = vmatpush1.bf16.msra.mxu0 %v10256_v33  ;;  %7698 = vmatpush1.bf16.msra.mxu1 %v10259_v34  ;;  %v10348_v33 = vld [vmem:[%s11458_s3 + $0x150c] ss:$16 sps:$4 sm:$0xff]   ;;  %v10347_v34 = vld [vmem:[%s11458_s3 + $0x1500] ss:$16 sps:$4 sm:$0xff]  }
 0x30e   : > { %6676 = vmatprep.subr.bf16.mxu0 %v10260_v23  ;;  %7700 = vmatprep.subr.bf16.mxu1 %v10263_v35  ;;  %v10350_v23 = vld [vmem:[%s11458_s3 + $0x1508] ss:$16 sps:$4 sm:$0xff]   ;;  %v10351_v35 = vld [vmem:[%s11458_s3 + $0x1524] ss:$16 sps:$4 sm:$0xff]  }
 0x311   : > { %6678 = vmatpush1.bf16.msra.mxu0 %v10262_v38  ;;  %7702 = vmatpush1.bf16.msra.mxu1 %v10265_v20  ;;  %v10354_v38 = vld [vmem:[%s11458_s3 + $0x152c] ss:$16 sps:$4 sm:$0xff]   ;;  %v10353_v20 = vld [vmem:[%s11458_s3 + $0x1520] ss:$16 sps:$4 sm:$0xff]  }
 0x312   : > { %6680 = vmatprep.subr.bf16.mxu0 %v10266_v39  ;;  %7704 = vmatprep.subr.bf16.mxu1 %v10269_v26  ;;  %v10356_v39 = vld [vmem:[%s11458_s3 + $0x1528] ss:$16 sps:$4 sm:$0xff]   ;;  %v10357_v26 = vld [vmem:[%s11458_s3 + $0x1544] ss:$16 sps:$4 sm:$0xff]  }
 0x315   : > { %6682 = vmatpush1.bf16.msra.mxu0 %v10268_v40  ;;  %7706 = vmatpush1.bf16.msra.mxu1 %v10271_v42  ;;  %v10360_v40 = vld [vmem:[%s11458_s3 + $0x154c] ss:$16 sps:$4 sm:$0xff]   ;;  %v10359_v42 = vld [vmem:[%s11458_s3 + $0x1540] ss:$16 sps:$4 sm:$0xff]  }
 0x316   : > { %6684 = vmatprep.subr.bf16.mxu0 %v10272_v43  ;;  %7708 = vmatprep.subr.bf16.mxu1 %v10275_v45  ;;  %v10362_v43 = vld [vmem:[%s11458_s3 + $0x1548] ss:$16 sps:$4 sm:$0xff]   ;;  %v10363_v45 = vld [vmem:[%s11458_s3 + $0x1564] ss:$16 sps:$4 sm:$0xff]  }
 0x319   : > { %6686 = vmatpush1.bf16.msra.mxu0 %v10274_v30  ;;  %7710 = vmatpush1.bf16.msra.mxu1 %v10277_v46  ;;  %v10366_v30 = vld [vmem:[%s11458_s3 + $0x156c] ss:$16 sps:$4 sm:$0xff]   ;;  %v10365_v46 = vld [vmem:[%s11458_s3 + $0x1560] ss:$16 sps:$4 sm:$0xff]  }
 0x31a   : > { %6688 = vmatprep.subr.bf16.mxu0 %v10278_v49  ;;  %7712 = vmatprep.subr.bf16.mxu1 %v10281_v36  ;;  %v10368_v49 = vld [vmem:[%s11458_s3 + $0x1568] ss:$16 sps:$4 sm:$0xff]   ;;  %v10369_v36 = vld [vmem:[%s11458_s3 + $0x1584] ss:$16 sps:$4 sm:$0xff]  }
 0x31d   : > { %6690 = vmatpush1.bf16.msra.mxu0 %v10280_v51  ;;  %7714 = vmatpush1.bf16.msra.mxu1 %v10283_v37  ;;  %v10372_v51 = vld [vmem:[%s11458_s3 + $0x158c] ss:$16 sps:$4 sm:$0xff]   ;;  %v10371_v37 = vld [vmem:[%s11458_s3 + $0x1580] ss:$16 sps:$4 sm:$0xff]  }
 0x31e   : > { %6692 = vmatprep.subr.bf16.mxu0 %v10284_v52  ;;  %7716 = vmatprep.subr.bf16.mxu1 %v10287_v54  ;;  %v10374_v52 = vld [vmem:[%s11458_s3 + $0x1588] ss:$16 sps:$4 sm:$0xff]   ;;  %v10375_v54 = vld [vmem:[%s11458_s3 + $0x15a4] ss:$16 sps:$4 sm:$0xff]  }
 0x321   : > { %6694 = vmatpush1.bf16.msra.mxu0 %v10286_v55  ;;  %7718 = vmatpush1.bf16.msra.mxu1 %v10289_v56  ;;  %v10378_v55 = vld [vmem:[%s11458_s3 + $0x15ac] ss:$16 sps:$4 sm:$0xff]   ;;  %v10377_v56 = vld [vmem:[%s11458_s3 + $0x15a0] ss:$16 sps:$4 sm:$0xff]  }
 0x322   : > { %6696 = vmatprep.subr.bf16.mxu0 %v10290_v41  ;;  %7720 = vmatprep.subr.bf16.mxu1 %v10293_v57  ;;  %v10380_v41 = vld [vmem:[%s11458_s3 + $0x15a8] ss:$16 sps:$4 sm:$0xff]   ;;  %v10381_v57 = vld [vmem:[%s11458_s3 + $0x15c4] ss:$16 sps:$4 sm:$0xff]  }
 0x325   : > { %6698 = vmatpush1.bf16.msra.mxu0 %v10292_v60  ;;  %7722 = vmatpush1.bf16.msra.mxu1 %v10295_v47  ;;  %v10384_v60 = vld [vmem:[%s11458_s3 + $0x15cc] ss:$16 sps:$4 sm:$0xff]   ;;  %v10383_v47 = vld [vmem:[%s11458_s3 + $0x15c0] ss:$16 sps:$4 sm:$0xff]  }
 0x326   : > { %6700 = vmatprep.subr.bf16.mxu0 %v10297_v61  ;;  %7724 = vmatprep.subr.bf16.mxu1 %v10300_v48  ;;  %v10386_v61 = vld [vmem:[%s11458_s3 + $0x15c8] ss:$16 sps:$4 sm:$0xff]   ;;  %v10387_v48 = vld [vmem:[%s11458_s3 + $0x15e4] ss:$16 sps:$4 sm:$0xff]  }
 0x328   : > { %4250 = vmatmul.mubr.f32.vlgmr.msra.gmra.mrb[0].mxu0 %v12143_v59  ;;  %5386 = vmatmul.mubr.f32.vlgmr.msra.gmra.mrb[0].mxu1 %v12143_v59  ;;  %v10314_v59 = vld [vmem:[%s11458_s3 + $0x1448] ss:$16 sps:$4 sm:$0xff]  }
 0x329   : > { %6702 = vmatpush1.bf16.msra.mxu0 %v10299_v63  ;;  %7726 = vmatpush1.bf16.msra.mxu1 %v10302_v0  ;;  %v10390_v63 = vld [vmem:[%s11458_s3 + $0x15ec] ss:$16 sps:$4 sm:$0xff]   ;;  %v3463_v0 = vcombine.high %v12209_v58, %v12209_v58  ;;  %v10398_v58 = vld [vmem:[%s11458_s3 + $0x1608] ss:$16 sps:$4 sm:$0xff]  }
 0x32a   : > { %6704 = vmatprep.subr.bf16.mxu0 %v10303_v1  ;;  %7728 = vmatprep.subr.bf16.mxu1 %v10306_v2  ;;  %v10389_v1 = vld [vmem:[%s11458_s3 + $0x15e0] ss:$16 sps:$4 sm:$0xff]   ;;  %v10392_v2 = vld [vmem:[%s11458_s3 + $0x15e8] ss:$16 sps:$4 sm:$0xff]  }
 0x32b   : > { %4320 = vmatprep.mubr.f32.mxu0 %v3478_v53  ;;  %5456 = vmatprep.mubr.f32.mxu1 %v3478_v53  ;;  %v10393_v53 = vld [vmem:[%s11458_s3 + $0x1604] ss:$16 sps:$4 sm:$0xff]  }
 0x32d   : > { %6706 = vmatpush1.bf16.msra.mxu0 %v10305_v3  ;;  %7730 = vmatpush1.bf16.msra.mxu1 %v10308_v4  ;;  %v10396_v3 = vld [vmem:[%s11458_s3 + $0x160c] ss:$16 sps:$4 sm:$0xff]   ;;  %v12290_v4 = vrot.slane %v3463_v0, %v11525_v50 }
 0x32e   : > { %6708 = vmatprep.subr.bf16.mxu0 %v10309_v5  ;;  %7732 = vmatprep.subr.bf16.mxu1 %v10312_v6  ;;  %v10395_v5 = vld [vmem:[%s11458_s3 + $0x1600] ss:$16 sps:$4 sm:$0xff]   ;;  %v10399_v6 = vld [vmem:[%s11458_s3 + $0x1624] ss:$16 sps:$4 sm:$0xff]   ;;  %v10480_v0 = vld [vmem:[%s11458_s3 + $0x17cc] ss:$16 sps:$4 sm:$0xff]  }
 0x331   : > { %6710 = vmatpush1.bf16.msra.mxu0 %v10311_v7  ;;  %7734 = vmatpush1.bf16.msra.mxu1 %v10314_v59  ;;  %v10402_v7 = vld [vmem:[%s11458_s3 + $0x162c] ss:$16 sps:$4 sm:$0xff]   ;;  %v3479_v59 = vcombine.high %v12290_v4, %v12290_v4 }
 0x332   : > { %6712 = vmatprep.subr.bf16.mxu0 %v10315_v8  ;;  %7736 = vmatprep.subr.bf16.mxu1 %v10318_v9  ;;  %v10401_v8 = vld [vmem:[%s11458_s3 + $0x1620] ss:$16 sps:$4 sm:$0xff]   ;;  %v10404_v9 = vld [vmem:[%s11458_s3 + $0x1628] ss:$16 sps:$4 sm:$0xff]  }
 0x335   : > { %6714 = vmatpush1.bf16.msra.mxu0 %v10317_v10  ;;  %7738 = vmatpush1.bf16.msra.mxu1 %v10320_v11  ;;  %v10405_v10 = vld [vmem:[%s11458_s3 + $0x1644] ss:$16 sps:$4 sm:$0xff]   ;;  %v10408_v11 = vld [vmem:[%s11458_s3 + $0x164c] ss:$16 sps:$4 sm:$0xff]  }
 0x336   : > { %6716 = vmatprep.subr.bf16.mxu0 %v10321_v12  ;;  %7740 = vmatprep.subr.bf16.mxu1 %v10324_v14  ;;  %v10407_v12 = vld [vmem:[%s11458_s3 + $0x1640] ss:$16 sps:$4 sm:$0xff]   ;;  %v10411_v14 = vld [vmem:[%s11458_s3 + $0x1664] ss:$16 sps:$4 sm:$0xff]  }
 0x339   : > { %6718 = vmatpush1.bf16.msra.mxu0 %v10323_v15  ;;  %7742 = vmatpush1.bf16.msra.mxu1 %v10326_v16  ;;  %v10414_v15 = vld [vmem:[%s11458_s3 + $0x166c] ss:$16 sps:$4 sm:$0xff]   ;;  %v10413_v16 = vld [vmem:[%s11458_s3 + $0x1660] ss:$16 sps:$4 sm:$0xff]  }
 0x33a   : > { %6720 = vmatprep.subr.bf16.mxu0 %v10327_v17  ;;  %7744 = vmatprep.subr.bf16.mxu1 %v10330_v18  ;;  %v10416_v17 = vld [vmem:[%s11458_s3 + $0x1668] ss:$16 sps:$4 sm:$0xff]   ;;  %v10417_v18 = vld [vmem:[%s11458_s3 + $0x1684] ss:$16 sps:$4 sm:$0xff]  }
 0x33d   : > { %6722 = vmatpush1.bf16.msra.mxu0 %v10329_v19  ;;  %7746 = vmatpush1.bf16.msra.mxu1 %v10332_v21  ;;  %v10420_v19 = vld [vmem:[%s11458_s3 + $0x168c] ss:$16 sps:$4 sm:$0xff]   ;;  %v10419_v21 = vld [vmem:[%s11458_s3 + $0x1680] ss:$16 sps:$4 sm:$0xff]  }
 0x33e   : > { %6724 = vmatprep.subr.bf16.mxu0 %v10333_v22  ;;  %7748 = vmatprep.subr.bf16.mxu1 %v10336_v24  ;;  %v10422_v22 = vld [vmem:[%s11458_s3 + $0x1688] ss:$16 sps:$4 sm:$0xff]   ;;  %v10423_v24 = vld [vmem:[%s11458_s3 + $0x16a4] ss:$16 sps:$4 sm:$0xff]  }
 0x341   : > { %6726 = vmatpush1.bf16.msra.mxu0 %v10335_v25  ;;  %7750 = vmatpush1.bf16.msra.mxu1 %v10338_v27  ;;  %v10426_v25 = vld [vmem:[%s11458_s3 + $0x16ac] ss:$16 sps:$4 sm:$0xff]   ;;  %v10425_v27 = vld [vmem:[%s11458_s3 + $0x16a0] ss:$16 sps:$4 sm:$0xff]  }
 0x342   : > { %6728 = vmatprep.subr.bf16.mxu0 %v10339_v28  ;;  %7752 = vmatprep.subr.bf16.mxu1 %v10342_v13  ;;  %v10428_v28 = vld [vmem:[%s11458_s3 + $0x16a8] ss:$16 sps:$4 sm:$0xff]   ;;  %v10429_v13 = vld [vmem:[%s11458_s3 + $0x16c4] ss:$16 sps:$4 sm:$0xff]  }
 0x345   : > { %6730 = vmatpush1.bf16.msra.mxu0 %v10341_v29  ;;  %7754 = vmatpush1.bf16.msra.mxu1 %v10344_v31  ;;  %v10432_v29 = vld [vmem:[%s11458_s3 + $0x16cc] ss:$16 sps:$4 sm:$0xff]   ;;  %v10431_v31 = vld [vmem:[%s11458_s3 + $0x16c0] ss:$16 sps:$4 sm:$0xff]  }
 0x346   : > { %6732 = vmatprep.subr.bf16.mxu0 %v10345_v32  ;;  %7756 = vmatprep.subr.bf16.mxu1 %v10348_v33  ;;  %v10434_v32 = vld [vmem:[%s11458_s3 + $0x16c8] ss:$16 sps:$4 sm:$0xff]   ;;  %v10435_v33 = vld [vmem:[%s11458_s3 + $0x16e4] ss:$16 sps:$4 sm:$0xff]  }
 0x349   : > { %6734 = vmatpush1.bf16.msra.mxu0 %v10347_v34  ;;  %7758 = vmatpush1.bf16.msra.mxu1 %v10350_v23  ;;  %v10438_v34 = vld [vmem:[%s11458_s3 + $0x16ec] ss:$16 sps:$4 sm:$0xff]   ;;  %v10437_v23 = vld [vmem:[%s11458_s3 + $0x16e0] ss:$16 sps:$4 sm:$0xff]  }
 0x34a   : > { %6736 = vmatprep.subr.bf16.mxu0 %v10351_v35  ;;  %7760 = vmatprep.subr.bf16.mxu1 %v10354_v38  ;;  %v10440_v35 = vld [vmem:[%s11458_s3 + $0x16e8] ss:$16 sps:$4 sm:$0xff]   ;;  %v10441_v38 = vld [vmem:[%s11458_s3 + $0x1704] ss:$16 sps:$4 sm:$0xff]  }
 0x34d   : > { %6738 = vmatpush1.bf16.msra.mxu0 %v10353_v20  ;;  %7762 = vmatpush1.bf16.msra.mxu1 %v10356_v39  ;;  %v10444_v20 = vld [vmem:[%s11458_s3 + $0x170c] ss:$16 sps:$4 sm:$0xff]   ;;  %v10443_v39 = vld [vmem:[%s11458_s3 + $0x1700] ss:$16 sps:$4 sm:$0xff]  }
 0x34e   : > { %6740 = vmatprep.subr.bf16.mxu0 %v10357_v26  ;;  %7764 = vmatprep.subr.bf16.mxu1 %v10360_v40  ;;  %v10446_v26 = vld [vmem:[%s11458_s3 + $0x1708] ss:$16 sps:$4 sm:$0xff]   ;;  %v10447_v40 = vld [vmem:[%s11458_s3 + $0x1724] ss:$16 sps:$4 sm:$0xff]  }
 0x351   : > { %6742 = vmatpush1.bf16.msra.mxu0 %v10359_v42  ;;  %7766 = vmatpush1.bf16.msra.mxu1 %v10362_v43  ;;  %v10450_v42 = vld [vmem:[%s11458_s3 + $0x172c] ss:$16 sps:$4 sm:$0xff]   ;;  %v10449_v43 = vld [vmem:[%s11458_s3 + $0x1720] ss:$16 sps:$4 sm:$0xff]  }
 0x352   : > { %6744 = vmatprep.subr.bf16.mxu0 %v10363_v45  ;;  %7768 = vmatprep.subr.bf16.mxu1 %v10366_v30  ;;  %v10452_v45 = vld [vmem:[%s11458_s3 + $0x1728] ss:$16 sps:$4 sm:$0xff]   ;;  %v10453_v30 = vld [vmem:[%s11458_s3 + $0x1744] ss:$16 sps:$4 sm:$0xff]  }
 0x355   : > { %6746 = vmatpush1.bf16.msra.mxu0 %v10365_v46  ;;  %7770 = vmatpush1.bf16.msra.mxu1 %v10368_v49  ;;  %v10456_v46 = vld [vmem:[%s11458_s3 + $0x174c] ss:$16 sps:$4 sm:$0xff]   ;;  %v10455_v49 = vld [vmem:[%s11458_s3 + $0x1740] ss:$16 sps:$4 sm:$0xff]  }
 0x356   : > { %6748 = vmatprep.subr.bf16.mxu0 %v10369_v36  ;;  %7772 = vmatprep.subr.bf16.mxu1 %v10372_v51  ;;  %v10458_v36 = vld [vmem:[%s11458_s3 + $0x1748] ss:$16 sps:$4 sm:$0xff]   ;;  %v10459_v51 = vld [vmem:[%s11458_s3 + $0x1764] ss:$16 sps:$4 sm:$0xff]  }
 0x359   : > { %6750 = vmatpush1.bf16.msra.mxu0 %v10371_v37  ;;  %7774 = vmatpush1.bf16.msra.mxu1 %v10374_v52  ;;  %v10462_v37 = vld [vmem:[%s11458_s3 + $0x176c] ss:$16 sps:$4 sm:$0xff]   ;;  %v10461_v52 = vld [vmem:[%s11458_s3 + $0x1760] ss:$16 sps:$4 sm:$0xff]  }
 0x35a   : > { %6752 = vmatprep.subr.bf16.mxu0 %v10375_v54  ;;  %7776 = vmatprep.subr.bf16.mxu1 %v10378_v55  ;;  %v10464_v54 = vld [vmem:[%s11458_s3 + $0x1768] ss:$16 sps:$4 sm:$0xff]   ;;  %v10465_v55 = vld [vmem:[%s11458_s3 + $0x1784] ss:$16 sps:$4 sm:$0xff]  }
 0x35d   : > { %6754 = vmatpush1.bf16.msra.mxu0 %v10377_v56  ;;  %7778 = vmatpush1.bf16.msra.mxu1 %v10380_v41  ;;  %v10468_v56 = vld [vmem:[%s11458_s3 + $0x178c] ss:$16 sps:$4 sm:$0xff]   ;;  %v10467_v41 = vld [vmem:[%s11458_s3 + $0x1780] ss:$16 sps:$4 sm:$0xff]  }
 0x35e   : > { %6756 = vmatprep.subr.bf16.mxu0 %v10381_v57  ;;  %7780 = vmatprep.subr.bf16.mxu1 %v10384_v60  ;;  %v10470_v57 = vld [vmem:[%s11458_s3 + $0x1788] ss:$16 sps:$4 sm:$0xff]   ;;  %v10471_v60 = vld [vmem:[%s11458_s3 + $0x17a4] ss:$16 sps:$4 sm:$0xff]  }
 0x361   : > { %6758 = vmatpush1.bf16.msra.mxu0 %v10383_v47  ;;  %7782 = vmatpush1.bf16.msra.mxu1 %v10386_v61  ;;  %v10474_v47 = vld [vmem:[%s11458_s3 + $0x17ac] ss:$16 sps:$4 sm:$0xff]   ;;  %v10473_v61 = vld [vmem:[%s11458_s3 + $0x17a0] ss:$16 sps:$4 sm:$0xff]  }
 0x362   : > { %6760 = vmatprep.subr.bf16.mxu0 %v10387_v48  ;;  %7784 = vmatprep.subr.bf16.mxu1 %v10390_v63  ;;  %v10476_v48 = vld [vmem:[%s11458_s3 + $0x17a8] ss:$16 sps:$4 sm:$0xff]   ;;  %v10477_v63 = vld [vmem:[%s11458_s3 + $0x17c4] ss:$16 sps:$4 sm:$0xff]  }
 0x365   : > { %6762 = vmatpush1.bf16.msra.mxu0 %v10389_v1  ;;  %7786 = vmatpush1.bf16.msra.mxu1 %v10392_v2  ;;  %v10479_v1 = vld [vmem:[%s11458_s3 + $0x17c0] ss:$16 sps:$4 sm:$0xff]   ;;  %v10482_v2 = vld [vmem:[%s11458_s3 + $0x17c8] ss:$16 sps:$4 sm:$0xff]  }
 0x366   : > { %6764 = vmatprep.subr.bf16.mxu0 %v10393_v53  ;;  %7788 = vmatprep.subr.bf16.mxu1 %v10396_v3  ;;  %v10483_v53 = vld [vmem:[%s11458_s3 + $0x17e4] ss:$16 sps:$4 sm:$0xff]   ;;  %v10486_v3 = vld [vmem:[%s11458_s3 + $0x17ec] ss:$16 sps:$4 sm:$0xff]  }
 0x368   : > { %4321 = vmatmul.mubr.f32.vlgmr.msra.gmra.mrb[0].mxu0 %v12217_v62  ;;  %5457 = vmatmul.mubr.f32.vlgmr.msra.gmra.mrb[0].mxu1 %v12217_v62  ;;  %v10410_v62 = vld [vmem:[%s11458_s3 + $0x1648] ss:$16 sps:$4 sm:$0xff]  }
 0x369   : > { %6766 = vmatpush1.bf16.msra.mxu0 %v10395_v5  ;;  %7790 = vmatpush1.bf16.msra.mxu1 %v10398_v58  ;;  %v12357_v5 = vld [vmem:[%s11450_s20 + $0x30] sm:$0xff] }
 0x36a   : > { %6768 = vmatprep.subr.bf16.mxu0 %v10399_v6  ;;  %7792 = vmatprep.subr.bf16.mxu1 %v10402_v7  ;;  %v10485_v58 = vld [vmem:[%s11458_s3 + $0x17e0] ss:$16 sps:$4 sm:$0xff]   ;;  %v10488_v6 = vld [vmem:[%s11458_s3 + $0x17e8] ss:$16 sps:$4 sm:$0xff]   ;;  %v10490_v7 = vld [vmem:[%s11458_s3 + $0x1804] ss:$16 sps:$4 sm:$0xff]  }
 0x36b   : > { %4391 = vmatprep.mubr.f32.mxu0 %v3479_v59  ;;  %5527 = vmatprep.mubr.f32.mxu1 %v3479_v59  ;;  %v10493_v59 = vld [vmem:[%s11458_s3 + $0x180c] ss:$16 sps:$4 sm:$0xff]  }
 0x36d   : > { %6770 = vmatpush1.bf16.msra.mxu0 %v10401_v8  ;;  %7794 = vmatpush1.bf16.msra.mxu1 %v10404_v9  ;;  %v12365_v8 = vrot.slane %v12357_v5, %v11525_v50  ;;  %v10492_v9 = vld [vmem:[%s11458_s3 + $0x1800] ss:$16 sps:$4 sm:$0xff]  }
 0x36e   : > { %6772 = vmatprep.subr.bf16.mxu0 %v10405_v10  ;;  %7796 = vmatprep.subr.bf16.mxu1 %v10408_v11  ;;  %v10495_v10 = vld [vmem:[%s11458_s3 + $0x1808] ss:$16 sps:$4 sm:$0xff]   ;;  %v10496_v11 = vld [vmem:[%s11458_s3 + $0x1824] ss:$16 sps:$4 sm:$0xff]  }
 0x371   : > { %6774 = vmatpush1.bf16.msra.mxu0 %v10407_v12  ;;  %7798 = vmatpush1.bf16.msra.mxu1 %v10410_v62  ;;  %v10499_v12 = vld [vmem:[%s11458_s3 + $0x182c] ss:$16 sps:$4 sm:$0xff]   ;;  %v3495_v62 = vcombine.high %v12365_v8, %v12365_v8 }
 0x372   : > { %6776 = vmatprep.subr.bf16.mxu0 %v10411_v14  ;;  %7800 = vmatprep.subr.bf16.mxu1 %v10414_v15  ;;  %v10498_v14 = vld [vmem:[%s11458_s3 + $0x1820] ss:$16 sps:$4 sm:$0xff]   ;;  %v10501_v15 = vld [vmem:[%s11458_s3 + $0x1828] ss:$16 sps:$4 sm:$0xff]  }
 0x375   : > { %6778 = vmatpush1.bf16.msra.mxu0 %v10413_v16  ;;  %7802 = vmatpush1.bf16.msra.mxu1 %v10416_v17  ;;  %v10502_v16 = vld [vmem:[%s11458_s3 + $0x1844] ss:$16 sps:$4 sm:$0xff]   ;;  %v10505_v17 = vld [vmem:[%s11458_s3 + $0x184c] ss:$16 sps:$4 sm:$0xff]  }
 0x376   : > { %6780 = vmatprep.subr.bf16.mxu0 %v10417_v18  ;;  %7804 = vmatprep.subr.bf16.mxu1 %v10420_v19  ;;  %v10504_v18 = vld [vmem:[%s11458_s3 + $0x1840] ss:$16 sps:$4 sm:$0xff]   ;;  %v10508_v19 = vld [vmem:[%s11458_s3 + $0x1864] ss:$16 sps:$4 sm:$0xff]  }
 0x379   : > { %6782 = vmatpush1.bf16.msra.mxu0 %v10419_v21  ;;  %7806 = vmatpush1.bf16.msra.mxu1 %v10422_v22  ;;  %v10511_v21 = vld [vmem:[%s11458_s3 + $0x186c] ss:$16 sps:$4 sm:$0xff]   ;;  %v10510_v22 = vld [vmem:[%s11458_s3 + $0x1860] ss:$16 sps:$4 sm:$0xff]  }
 0x37a   : > { %6784 = vmatprep.subr.bf16.mxu0 %v10423_v24  ;;  %7808 = vmatprep.subr.bf16.mxu1 %v10426_v25  ;;  %v10513_v24 = vld [vmem:[%s11458_s3 + $0x1868] ss:$16 sps:$4 sm:$0xff]   ;;  %v10514_v25 = vld [vmem:[%s11458_s3 + $0x1884] ss:$16 sps:$4 sm:$0xff]  }
 0x37d   : > { %6786 = vmatpush1.bf16.msra.mxu0 %v10425_v27  ;;  %7810 = vmatpush1.bf16.msra.mxu1 %v10428_v28  ;;  %v10517_v27 = vld [vmem:[%s11458_s3 + $0x188c] ss:$16 sps:$4 sm:$0xff]   ;;  %v10516_v28 = vld [vmem:[%s11458_s3 + $0x1880] ss:$16 sps:$4 sm:$0xff]  }
 0x37e   : > { %6788 = vmatprep.subr.bf16.mxu0 %v10429_v13  ;;  %7812 = vmatprep.subr.bf16.mxu1 %v10432_v29  ;;  %v10519_v13 = vld [vmem:[%s11458_s3 + $0x1888] ss:$16 sps:$4 sm:$0xff]   ;;  %v10520_v29 = vld [vmem:[%s11458_s3 + $0x18a4] ss:$16 sps:$4 sm:$0xff]  }
 0x381   : > { %6790 = vmatpush1.bf16.msra.mxu0 %v10431_v31  ;;  %7814 = vmatpush1.bf16.msra.mxu1 %v10434_v32  ;;  %v10523_v31 = vld [vmem:[%s11458_s3 + $0x18ac] ss:$16 sps:$4 sm:$0xff]   ;;  %v10522_v32 = vld [vmem:[%s11458_s3 + $0x18a0] ss:$16 sps:$4 sm:$0xff]  }
 0x382   : > { %6792 = vmatprep.subr.bf16.mxu0 %v10435_v33  ;;  %7816 = vmatprep.subr.bf16.mxu1 %v10438_v34  ;;  %v10525_v33 = vld [vmem:[%s11458_s3 + $0x18a8] ss:$16 sps:$4 sm:$0xff]   ;;  %v10526_v34 = vld [vmem:[%s11458_s3 + $0x18c4] ss:$16 sps:$4 sm:$0xff]  }
 0x385   : > { %6794 = vmatpush1.bf16.msra.mxu0 %v10437_v23  ;;  %7818 = vmatpush1.bf16.msra.mxu1 %v10440_v35  ;;  %v10529_v23 = vld [vmem:[%s11458_s3 + $0x18cc] ss:$16 sps:$4 sm:$0xff]   ;;  %v10528_v35 = vld [vmem:[%s11458_s3 + $0x18c0] ss:$16 sps:$4 sm:$0xff]  }
 0x386   : > { %6796 = vmatprep.subr.bf16.mxu0 %v10441_v38  ;;  %7820 = vmatprep.subr.bf16.mxu1 %v10444_v20  ;;  %v10531_v38 = vld [vmem:[%s11458_s3 + $0x18c8] ss:$16 sps:$4 sm:$0xff]   ;;  %v10532_v20 = vld [vmem:[%s11458_s3 + $0x18e4] ss:$16 sps:$4 sm:$0xff]  }
 0x389   : > { %6798 = vmatpush1.bf16.msra.mxu0 %v10443_v39  ;;  %7822 = vmatpush1.bf16.msra.mxu1 %v10446_v26  ;;  %v10535_v39 = vld [vmem:[%s11458_s3 + $0x18ec] ss:$16 sps:$4 sm:$0xff]   ;;  %v10534_v26 = vld [vmem:[%s11458_s3 + $0x18e0] ss:$16 sps:$4 sm:$0xff]  }
 0x38a   : > { %6800 = vmatprep.subr.bf16.mxu0 %v10447_v40  ;;  %7824 = vmatprep.subr.bf16.mxu1 %v10450_v42  ;;  %v10537_v40 = vld [vmem:[%s11458_s3 + $0x18e8] ss:$16 sps:$4 sm:$0xff]   ;;  %v10538_v42 = vld [vmem:[%s11458_s3 + $0x1904] ss:$16 sps:$4 sm:$0xff]  }
 0x38d   : > { %6802 = vmatpush1.bf16.msra.mxu0 %v10449_v43  ;;  %7826 = vmatpush1.bf16.msra.mxu1 %v10452_v45  ;;  %v10541_v43 = vld [vmem:[%s11458_s3 + $0x190c] ss:$16 sps:$4 sm:$0xff]   ;;  %v10540_v45 = vld [vmem:[%s11458_s3 + $0x1900] ss:$16 sps:$4 sm:$0xff]  }
 0x38e   : > { %6804 = vmatprep.subr.bf16.mxu0 %v10453_v30  ;;  %7828 = vmatprep.subr.bf16.mxu1 %v10456_v46  ;;  %v10543_v30 = vld [vmem:[%s11458_s3 + $0x1908] ss:$16 sps:$4 sm:$0xff]   ;;  %v10544_v46 = vld [vmem:[%s11458_s3 + $0x1924] ss:$16 sps:$4 sm:$0xff]  }
 0x391   : > { %6806 = vmatpush1.bf16.msra.mxu0 %v10455_v49  ;;  %7830 = vmatpush1.bf16.msra.mxu1 %v10458_v36  ;;  %v10547_v49 = vld [vmem:[%s11458_s3 + $0x192c] ss:$16 sps:$4 sm:$0xff]   ;;  %v10546_v36 = vld [vmem:[%s11458_s3 + $0x1920] ss:$16 sps:$4 sm:$0xff]  }
 0x392   : > { %6808 = vmatprep.subr.bf16.mxu0 %v10459_v51  ;;  %7832 = vmatprep.subr.bf16.mxu1 %v10462_v37  ;;  %v10549_v51 = vld [vmem:[%s11458_s3 + $0x1928] ss:$16 sps:$4 sm:$0xff]   ;;  %v10550_v37 = vld [vmem:[%s11458_s3 + $0x1944] ss:$16 sps:$4 sm:$0xff]  }
 0x395   : > { %6810 = vmatpush1.bf16.msra.mxu0 %v10461_v52  ;;  %7834 = vmatpush1.bf16.msra.mxu1 %v10464_v54  ;;  %v10553_v52 = vld [vmem:[%s11458_s3 + $0x194c] ss:$16 sps:$4 sm:$0xff]   ;;  %v10552_v54 = vld [vmem:[%s11458_s3 + $0x1940] ss:$16 sps:$4 sm:$0xff]  }
 0x396   : > { %6812 = vmatprep.subr.bf16.mxu0 %v10465_v55  ;;  %7836 = vmatprep.subr.bf16.mxu1 %v10468_v56  ;;  %v10555_v55 = vld [vmem:[%s11458_s3 + $0x1948] ss:$16 sps:$4 sm:$0xff]   ;;  %v10556_v56 = vld [vmem:[%s11458_s3 + $0x1964] ss:$16 sps:$4 sm:$0xff]  }
 0x399   : > { %6814 = vmatpush1.bf16.msra.mxu0 %v10467_v41  ;;  %7838 = vmatpush1.bf16.msra.mxu1 %v10470_v57  ;;  %v10559_v41 = vld [vmem:[%s11458_s3 + $0x196c] ss:$16 sps:$4 sm:$0xff]   ;;  %v10558_v57 = vld [vmem:[%s11458_s3 + $0x1960] ss:$16 sps:$4 sm:$0xff]  }
 0x39a   : > { %6816 = vmatprep.subr.bf16.mxu0 %v10471_v60  ;;  %7840 = vmatprep.subr.bf16.mxu1 %v10474_v47  ;;  %v10561_v60 = vld [vmem:[%s11458_s3 + $0x1968] ss:$16 sps:$4 sm:$0xff]   ;;  %v10562_v47 = vld [vmem:[%s11458_s3 + $0x1984] ss:$16 sps:$4 sm:$0xff]  }
 0x39d   : > { %6818 = vmatpush1.bf16.msra.mxu0 %v10473_v61  ;;  %7842 = vmatpush1.bf16.msra.mxu1 %v10476_v48  ;;  %v10565_v61 = vld [vmem:[%s11458_s3 + $0x198c] ss:$16 sps:$4 sm:$0xff]   ;;  %v10564_v48 = vld [vmem:[%s11458_s3 + $0x1980] ss:$16 sps:$4 sm:$0xff]  }
 0x39e   : > { %6820 = vmatprep.subr.bf16.mxu0 %v10477_v63  ;;  %7844 = vmatprep.subr.bf16.mxu1 %v10480_v0  ;;  %v10567_v63 = vld [vmem:[%s11458_s3 + $0x1988] ss:$16 sps:$4 sm:$0xff]   ;;  %v10568_v0 = vld [vmem:[%s11458_s3 + $0x19a4] ss:$16 sps:$4 sm:$0xff]  }
 0x3a1   : > { %6822 = vmatpush1.bf16.msra.mxu0 %v10479_v1  ;;  %7846 = vmatpush1.bf16.msra.mxu1 %v10482_v2  ;;  %v10571_v1 = vld [vmem:[%s11458_s3 + $0x19ac] ss:$16 sps:$4 sm:$0xff]   ;;  %v10570_v2 = vld [vmem:[%s11458_s3 + $0x19a0] ss:$16 sps:$4 sm:$0xff]  }
 0x3a2   : > { %6824 = vmatprep.subr.bf16.mxu0 %v10483_v53  ;;  %7848 = vmatprep.subr.bf16.mxu1 %v10486_v3  ;;  %v10573_v53 = vld [vmem:[%s11458_s3 + $0x19a8] ss:$16 sps:$4 sm:$0xff]   ;;  %v10574_v3 = vld [vmem:[%s11458_s3 + $0x19c4] ss:$16 sps:$4 sm:$0xff]  }
 0x3a5   : > { %6826 = vmatpush1.bf16.msra.mxu0 %v10485_v58  ;;  %7850 = vmatpush1.bf16.msra.mxu1 %v10488_v6  ;;  %v10577_v58 = vld [vmem:[%s11458_s3 + $0x19cc] ss:$16 sps:$4 sm:$0xff]   ;;  %v10576_v6 = vld [vmem:[%s11458_s3 + $0x19c0] ss:$16 sps:$4 sm:$0xff]  }
 0x3a6   : > { %6828 = vmatprep.subr.bf16.mxu0 %v10490_v7  ;;  %7852 = vmatprep.subr.bf16.mxu1 %v10493_v59  ;;  %v10579_v7 = vld [vmem:[%s11458_s3 + $0x19c8] ss:$16 sps:$4 sm:$0xff]   ;;  %v10580_v59 = vld [vmem:[%s11458_s3 + $0x19e4] ss:$16 sps:$4 sm:$0xff]  }
 0x3a8   : > { %4392 = vmatmul.mubr.f32.vlgmr.msra.gmra.mrb[0].mxu0 %v12290_v4  ;;  %5528 = vmatmul.mubr.f32.vlgmr.msra.gmra.mrb[0].mxu1 %v12290_v4  ;;  %v10507_v4 = vld [vmem:[%s11458_s3 + $0x1848] ss:$16 sps:$4 sm:$0xff]  }
 0x3a9   : > { %6830 = vmatpush1.bf16.msra.mxu0 %v10492_v9  ;;  %7854 = vmatpush1.bf16.msra.mxu1 %v10495_v10  ;;  %v10583_v9 = vld [vmem:[%s11458_s3 + $0x19ec] ss:$16 sps:$4 sm:$0xff]   ;;  %v3480_v10 = vcombine.high %v12357_v5, %v12357_v5  ;;  %v10591_v5 = vld [vmem:[%s11458_s3 + $0x1a08] ss:$16 sps:$4 sm:$0xff]  }
 0x3aa   : > { %6832 = vmatprep.subr.bf16.mxu0 %v10496_v11  ;;  %7856 = vmatprep.subr.bf16.mxu1 %v10499_v12  ;;  %v10582_v11 = vld [vmem:[%s11458_s3 + $0x19e0] ss:$16 sps:$4 sm:$0xff]   ;;  %v10585_v12 = vld [vmem:[%s11458_s3 + $0x19e8] ss:$16 sps:$4 sm:$0xff]  }
 0x3ab   : > { %4462 = vmatprep.mubr.f32.mxu0 %v3495_v62  ;;  %5598 = vmatprep.mubr.f32.mxu1 %v3495_v62  ;;  %v10586_v62 = vld [vmem:[%s11458_s3 + $0x1a04] ss:$16 sps:$4 sm:$0xff]  }
 0x3ad   : > { %6834 = vmatpush1.bf16.msra.mxu0 %v10498_v14  ;;  %7858 = vmatpush1.bf16.msra.mxu1 %v10501_v15  ;;  %v10589_v14 = vld [vmem:[%s11458_s3 + $0x1a0c] ss:$16 sps:$4 sm:$0xff]   ;;  %v12438_v15 = vrot.slane %v3480_v10, %v11525_v50 }
 0x3ae   : > { %6836 = vmatprep.subr.bf16.mxu0 %v10502_v16  ;;  %7860 = vmatprep.subr.bf16.mxu1 %v10505_v17  ;;  %v10588_v16 = vld [vmem:[%s11458_s3 + $0x1a00] ss:$16 sps:$4 sm:$0xff]   ;;  %v10592_v17 = vld [vmem:[%s11458_s3 + $0x1a24] ss:$16 sps:$4 sm:$0xff]   ;;  %v10673_v10 = vld [vmem:[%s11458_s3 + $0x1bcc] ss:$16 sps:$4 sm:$0xff]  }
 0x3b1   : > { %6838 = vmatpush1.bf16.msra.mxu0 %v10504_v18  ;;  %7862 = vmatpush1.bf16.msra.mxu1 %v10507_v4  ;;  %v10595_v18 = vld [vmem:[%s11458_s3 + $0x1a2c] ss:$16 sps:$4 sm:$0xff]   ;;  %v3496_v4 = vcombine.high %v12438_v15, %v12438_v15 }
 0x3b2   : > { %6840 = vmatprep.subr.bf16.mxu0 %v10508_v19  ;;  %7864 = vmatprep.subr.bf16.mxu1 %v10511_v21  ;;  %v10594_v19 = vld [vmem:[%s11458_s3 + $0x1a20] ss:$16 sps:$4 sm:$0xff]   ;;  %v10597_v21 = vld [vmem:[%s11458_s3 + $0x1a28] ss:$16 sps:$4 sm:$0xff]  }
 0x3b5   : > { %6842 = vmatpush1.bf16.msra.mxu0 %v10510_v22  ;;  %7866 = vmatpush1.bf16.msra.mxu1 %v10513_v24  ;;  %v10598_v22 = vld [vmem:[%s11458_s3 + $0x1a44] ss:$16 sps:$4 sm:$0xff]   ;;  %v10601_v24 = vld [vmem:[%s11458_s3 + $0x1a4c] ss:$16 sps:$4 sm:$0xff]  }
 0x3b6   : > { %6844 = vmatprep.subr.bf16.mxu0 %v10514_v25  ;;  %7868 = vmatprep.subr.bf16.mxu1 %v10517_v27  ;;  %v10600_v25 = vld [vmem:[%s11458_s3 + $0x1a40] ss:$16 sps:$4 sm:$0xff]   ;;  %v10604_v27 = vld [vmem:[%s11458_s3 + $0x1a64] ss:$16 sps:$4 sm:$0xff]  }
 0x3b9   : > { %6846 = vmatpush1.bf16.msra.mxu0 %v10516_v28  ;;  %7870 = vmatpush1.bf16.msra.mxu1 %v10519_v13  ;;  %v10607_v28 = vld [vmem:[%s11458_s3 + $0x1a6c] ss:$16 sps:$4 sm:$0xff]   ;;  %v10606_v13 = vld [vmem:[%s11458_s3 + $0x1a60] ss:$16 sps:$4 sm:$0xff]  }
 0x3ba   : > { %6848 = vmatprep.subr.bf16.mxu0 %v10520_v29  ;;  %7872 = vmatprep.subr.bf16.mxu1 %v10523_v31  ;;  %v10609_v29 = vld [vmem:[%s11458_s3 + $0x1a68] ss:$16 sps:$4 sm:$0xff]   ;;  %v10610_v31 = vld [vmem:[%s11458_s3 + $0x1a84] ss:$16 sps:$4 sm:$0xff]  }
 0x3bd   : > { %6850 = vmatpush1.bf16.msra.mxu0 %v10522_v32  ;;  %7874 = vmatpush1.bf16.msra.mxu1 %v10525_v33  ;;  %v10613_v32 = vld [vmem:[%s11458_s3 + $0x1a8c] ss:$16 sps:$4 sm:$0xff]   ;;  %v10612_v33 = vld [vmem:[%s11458_s3 + $0x1a80] ss:$16 sps:$4 sm:$0xff]  }
 0x3be   : > { %6852 = vmatprep.subr.bf16.mxu0 %v10526_v34  ;;  %7876 = vmatprep.subr.bf16.mxu1 %v10529_v23  ;;  %v10615_v34 = vld [vmem:[%s11458_s3 + $0x1a88] ss:$16 sps:$4 sm:$0xff]   ;;  %v10616_v23 = vld [vmem:[%s11458_s3 + $0x1aa4] ss:$16 sps:$4 sm:$0xff]  }
 0x3c1   : > { %6854 = vmatpush1.bf16.msra.mxu0 %v10528_v35  ;;  %7878 = vmatpush1.bf16.msra.mxu1 %v10531_v38  ;;  %v10619_v35 = vld [vmem:[%s11458_s3 + $0x1aac] ss:$16 sps:$4 sm:$0xff]   ;;  %v10618_v38 = vld [vmem:[%s11458_s3 + $0x1aa0] ss:$16 sps:$4 sm:$0xff]  }
 0x3c2   : > { %6856 = vmatprep.subr.bf16.mxu0 %v10532_v20  ;;  %7880 = vmatprep.subr.bf16.mxu1 %v10535_v39  ;;  %v10621_v20 = vld [vmem:[%s11458_s3 + $0x1aa8] ss:$16 sps:$4 sm:$0xff]   ;;  %v10622_v39 = vld [vmem:[%s11458_s3 + $0x1ac4] ss:$16 sps:$4 sm:$0xff]  }
 0x3c5   : > { %6858 = vmatpush1.bf16.msra.mxu0 %v10534_v26  ;;  %7882 = vmatpush1.bf16.msra.mxu1 %v10537_v40  ;;  %v10625_v26 = vld [vmem:[%s11458_s3 + $0x1acc] ss:$16 sps:$4 sm:$0xff]   ;;  %v10624_v40 = vld [vmem:[%s11458_s3 + $0x1ac0] ss:$16 sps:$4 sm:$0xff]  }
 0x3c6   : > { %6860 = vmatprep.subr.bf16.mxu0 %v10538_v42  ;;  %7884 = vmatprep.subr.bf16.mxu1 %v10541_v43  ;;  %v10627_v42 = vld [vmem:[%s11458_s3 + $0x1ac8] ss:$16 sps:$4 sm:$0xff]   ;;  %v10628_v43 = vld [vmem:[%s11458_s3 + $0x1ae4] ss:$16 sps:$4 sm:$0xff]  }
 0x3c9   : > { %6862 = vmatpush1.bf16.msra.mxu0 %v10540_v45  ;;  %7886 = vmatpush1.bf16.msra.mxu1 %v10543_v30  ;;  %v10631_v45 = vld [vmem:[%s11458_s3 + $0x1aec] ss:$16 sps:$4 sm:$0xff]   ;;  %v10630_v30 = vld [vmem:[%s11458_s3 + $0x1ae0] ss:$16 sps:$4 sm:$0xff]  }
 0x3ca   : > { %6864 = vmatprep.subr.bf16.mxu0 %v10544_v46  ;;  %7888 = vmatprep.subr.bf16.mxu1 %v10547_v49  ;;  %v10633_v46 = vld [vmem:[%s11458_s3 + $0x1ae8] ss:$16 sps:$4 sm:$0xff]   ;;  %v10634_v49 = vld [vmem:[%s11458_s3 + $0x1b04] ss:$16 sps:$4 sm:$0xff]  }
 0x3cd   : > { %6866 = vmatpush1.bf16.msra.mxu0 %v10546_v36  ;;  %7890 = vmatpush1.bf16.msra.mxu1 %v10549_v51  ;;  %v10637_v36 = vld [vmem:[%s11458_s3 + $0x1b0c] ss:$16 sps:$4 sm:$0xff]   ;;  %v10636_v51 = vld [vmem:[%s11458_s3 + $0x1b00] ss:$16 sps:$4 sm:$0xff]  }
 0x3ce   : > { %6868 = vmatprep.subr.bf16.mxu0 %v10550_v37  ;;  %7892 = vmatprep.subr.bf16.mxu1 %v10553_v52  ;;  %v10639_v37 = vld [vmem:[%s11458_s3 + $0x1b08] ss:$16 sps:$4 sm:$0xff]   ;;  %v10640_v52 = vld [vmem:[%s11458_s3 + $0x1b24] ss:$16 sps:$4 sm:$0xff]  }
 0x3d1   : > { %6870 = vmatpush1.bf16.msra.mxu0 %v10552_v54  ;;  %7894 = vmatpush1.bf16.msra.mxu1 %v10555_v55  ;;  %v10643_v54 = vld [vmem:[%s11458_s3 + $0x1b2c] ss:$16 sps:$4 sm:$0xff]   ;;  %v10642_v55 = vld [vmem:[%s11458_s3 + $0x1b20] ss:$16 sps:$4 sm:$0xff]  }
 0x3d2   : > { %6872 = vmatprep.subr.bf16.mxu0 %v10556_v56  ;;  %7896 = vmatprep.subr.bf16.mxu1 %v10559_v41  ;;  %v10645_v56 = vld [vmem:[%s11458_s3 + $0x1b28] ss:$16 sps:$4 sm:$0xff]   ;;  %v10646_v41 = vld [vmem:[%s11458_s3 + $0x1b44] ss:$16 sps:$4 sm:$0xff]  }
 0x3d5   : > { %6874 = vmatpush1.bf16.msra.mxu0 %v10558_v57  ;;  %7898 = vmatpush1.bf16.msra.mxu1 %v10561_v60  ;;  %v10649_v57 = vld [vmem:[%s11458_s3 + $0x1b4c] ss:$16 sps:$4 sm:$0xff]   ;;  %v10648_v60 = vld [vmem:[%s11458_s3 + $0x1b40] ss:$16 sps:$4 sm:$0xff]  }
 0x3d6   : > { %6876 = vmatprep.subr.bf16.mxu0 %v10562_v47  ;;  %7900 = vmatprep.subr.bf16.mxu1 %v10565_v61  ;;  %v10651_v47 = vld [vmem:[%s11458_s3 + $0x1b48] ss:$16 sps:$4 sm:$0xff]   ;;  %v10652_v61 = vld [vmem:[%s11458_s3 + $0x1b64] ss:$16 sps:$4 sm:$0xff]  }
 0x3d9   : > { %6878 = vmatpush1.bf16.msra.mxu0 %v10564_v48  ;;  %7902 = vmatpush1.bf16.msra.mxu1 %v10567_v63  ;;  %v10655_v48 = vld [vmem:[%s11458_s3 + $0x1b6c] ss:$16 sps:$4 sm:$0xff]   ;;  %v10654_v63 = vld [vmem:[%s11458_s3 + $0x1b60] ss:$16 sps:$4 sm:$0xff]  }
 0x3da   : > { %6880 = vmatprep.subr.bf16.mxu0 %v10568_v0  ;;  %7904 = vmatprep.subr.bf16.mxu1 %v10571_v1  ;;  %v10657_v0 = vld [vmem:[%s11458_s3 + $0x1b68] ss:$16 sps:$4 sm:$0xff]   ;;  %v10658_v1 = vld [vmem:[%s11458_s3 + $0x1b84] ss:$16 sps:$4 sm:$0xff]  }
 0x3dd   : > { %6882 = vmatpush1.bf16.msra.mxu0 %v10570_v2  ;;  %7906 = vmatpush1.bf16.msra.mxu1 %v10573_v53  ;;  %v10661_v2 = vld [vmem:[%s11458_s3 + $0x1b8c] ss:$16 sps:$4 sm:$0xff]   ;;  %v10660_v53 = vld [vmem:[%s11458_s3 + $0x1b80] ss:$16 sps:$4 sm:$0xff]  }
 0x3de   : > { %6884 = vmatprep.subr.bf16.mxu0 %v10574_v3  ;;  %7908 = vmatprep.subr.bf16.mxu1 %v10577_v58  ;;  %v10663_v3 = vld [vmem:[%s11458_s3 + $0x1b88] ss:$16 sps:$4 sm:$0xff]   ;;  %v10664_v58 = vld [vmem:[%s11458_s3 + $0x1ba4] ss:$16 sps:$4 sm:$0xff]  }
 0x3e1   : > { %6886 = vmatpush1.bf16.msra.mxu0 %v10576_v6  ;;  %7910 = vmatpush1.bf16.msra.mxu1 %v10579_v7  ;;  %v10667_v6 = vld [vmem:[%s11458_s3 + $0x1bac] ss:$16 sps:$4 sm:$0xff]   ;;  %v10666_v7 = vld [vmem:[%s11458_s3 + $0x1ba0] ss:$16 sps:$4 sm:$0xff]  }
 0x3e2   : > { %6888 = vmatprep.subr.bf16.mxu0 %v10580_v59  ;;  %7912 = vmatprep.subr.bf16.mxu1 %v10583_v9  ;;  %v10669_v59 = vld [vmem:[%s11458_s3 + $0x1ba8] ss:$16 sps:$4 sm:$0xff]   ;;  %v10670_v9 = vld [vmem:[%s11458_s3 + $0x1bc4] ss:$16 sps:$4 sm:$0xff]  }
 0x3e5   : > { %6890 = vmatpush1.bf16.msra.mxu0 %v10582_v11  ;;  %7914 = vmatpush1.bf16.msra.mxu1 %v10585_v12  ;;  %v10672_v11 = vld [vmem:[%s11458_s3 + $0x1bc0] ss:$16 sps:$4 sm:$0xff]   ;;  %v10675_v12 = vld [vmem:[%s11458_s3 + $0x1bc8] ss:$16 sps:$4 sm:$0xff]  }
 0x3e6   : > { %6892 = vmatprep.subr.bf16.mxu0 %v10586_v62  ;;  %7916 = vmatprep.subr.bf16.mxu1 %v10589_v14  ;;  %v10676_v62 = vld [vmem:[%s11458_s3 + $0x1be4] ss:$16 sps:$4 sm:$0xff]   ;;  %v10679_v14 = vld [vmem:[%s11458_s3 + $0x1bec] ss:$16 sps:$4 sm:$0xff]  }
 0x3e8   : > { %4463 = vmatmul.mubr.f32.vlgmr.msra.gmra.mrb[0].mxu0 %v12365_v8  ;;  %5599 = vmatmul.mubr.f32.vlgmr.msra.gmra.mrb[0].mxu1 %v12365_v8  ;;  %v10603_v8 = vld [vmem:[%s11458_s3 + $0x1a48] ss:$16 sps:$4 sm:$0xff]  }
 0x3e9   : > { %6894 = vmatpush1.bf16.msra.mxu0 %v10588_v16  ;;  %7918 = vmatpush1.bf16.msra.mxu1 %v10591_v5  ;;  %v12505_v16 = vld [vmem:[%s11450_s20 + $0x38] sm:$0xff]  ;;  %v10678_v5 = vld [vmem:[%s11458_s3 + $0x1be0] ss:$16 sps:$4 sm:$0xff]  }
 0x3ea   : > { %6896 = vmatprep.subr.bf16.mxu0 %v10592_v17  ;;  %7920 = vmatprep.subr.bf16.mxu1 %v10595_v18  ;;  %v10681_v17 = vld [vmem:[%s11458_s3 + $0x1be8] ss:$16 sps:$4 sm:$0xff]   ;;  %v10683_v18 = vld [vmem:[%s11458_s3 + $0x1c04] ss:$16 sps:$4 sm:$0xff]  }
 0x3eb   : > { %4533 = vmatprep.mubr.f32.mxu0 %v3496_v4  ;;  %5669 = vmatprep.mubr.f32.mxu1 %v3496_v4  ;;  %v10686_v4 = vld [vmem:[%s11458_s3 + $0x1c0c] ss:$16 sps:$4 sm:$0xff]  }
 0x3ed   : > { %6898 = vmatpush1.bf16.msra.mxu0 %v10594_v19  ;;  %7922 = vmatpush1.bf16.msra.mxu1 %v10597_v21  ;;  %v12513_v19 = vrot.slane %v12505_v16, %v11525_v50  ;;  %v10685_v21 = vld [vmem:[%s11458_s3 + $0x1c00] ss:$16 sps:$4 sm:$0xff]  }
 0x3ee   : > { %6900 = vmatprep.subr.bf16.mxu0 %v10598_v22  ;;  %7924 = vmatprep.subr.bf16.mxu1 %v10601_v24  ;;  %v10688_v22 = vld [vmem:[%s11458_s3 + $0x1c08] ss:$16 sps:$4 sm:$0xff]   ;;  %v10689_v24 = vld [vmem:[%s11458_s3 + $0x1c24] ss:$16 sps:$4 sm:$0xff]  }
 0x3f1   : > { %6902 = vmatpush1.bf16.msra.mxu0 %v10600_v25  ;;  %7926 = vmatpush1.bf16.msra.mxu1 %v10603_v8  ;;  %v10692_v25 = vld [vmem:[%s11458_s3 + $0x1c2c] ss:$16 sps:$4 sm:$0xff]   ;;  %v3512_v8 = vcombine.high %v12513_v19, %v12513_v19 }
 0x3f2   : > { %6904 = vmatprep.subr.bf16.mxu0 %v10604_v27  ;;  %7928 = vmatprep.subr.bf16.mxu1 %v10607_v28  ;;  %v10691_v27 = vld [vmem:[%s11458_s3 + $0x1c20] ss:$16 sps:$4 sm:$0xff]   ;;  %v10694_v28 = vld [vmem:[%s11458_s3 + $0x1c28] ss:$16 sps:$4 sm:$0xff]  }
 0x3f5   : > { %6906 = vmatpush1.bf16.msra.mxu0 %v10606_v13  ;;  %7930 = vmatpush1.bf16.msra.mxu1 %v10609_v29  ;;  %v10695_v13 = vld [vmem:[%s11458_s3 + $0x1c44] ss:$16 sps:$4 sm:$0xff]   ;;  %v10698_v29 = vld [vmem:[%s11458_s3 + $0x1c4c] ss:$16 sps:$4 sm:$0xff]  }
 0x3f6   : > { %6908 = vmatprep.subr.bf16.mxu0 %v10610_v31  ;;  %7932 = vmatprep.subr.bf16.mxu1 %v10613_v32  ;;  %v10697_v31 = vld [vmem:[%s11458_s3 + $0x1c40] ss:$16 sps:$4 sm:$0xff]   ;;  %v10701_v32 = vld [vmem:[%s11458_s3 + $0x1c64] ss:$16 sps:$4 sm:$0xff]  }
 0x3f9   : > { %6910 = vmatpush1.bf16.msra.mxu0 %v10612_v33  ;;  %7934 = vmatpush1.bf16.msra.mxu1 %v10615_v34  ;;  %v10704_v33 = vld [vmem:[%s11458_s3 + $0x1c6c] ss:$16 sps:$4 sm:$0xff]   ;;  %v10703_v34 = vld [vmem:[%s11458_s3 + $0x1c60] ss:$16 sps:$4 sm:$0xff]  }
 0x3fa   : > { %6912 = vmatprep.subr.bf16.mxu0 %v10616_v23  ;;  %7936 = vmatprep.subr.bf16.mxu1 %v10619_v35  ;;  %v10706_v23 = vld [vmem:[%s11458_s3 + $0x1c68] ss:$16 sps:$4 sm:$0xff]   ;;  %v10707_v35 = vld [vmem:[%s11458_s3 + $0x1c84] ss:$16 sps:$4 sm:$0xff]  }
 0x3fd   : > { %6914 = vmatpush1.bf16.msra.mxu0 %v10618_v38  ;;  %7938 = vmatpush1.bf16.msra.mxu1 %v10621_v20  ;;  %v10710_v38 = vld [vmem:[%s11458_s3 + $0x1c8c] ss:$16 sps:$4 sm:$0xff]   ;;  %v10709_v20 = vld [vmem:[%s11458_s3 + $0x1c80] ss:$16 sps:$4 sm:$0xff]  }
 0x3fe   : > { %6916 = vmatprep.subr.bf16.mxu0 %v10622_v39  ;;  %7940 = vmatprep.subr.bf16.mxu1 %v10625_v26  ;;  %v10712_v39 = vld [vmem:[%s11458_s3 + $0x1c88] ss:$16 sps:$4 sm:$0xff]   ;;  %v10713_v26 = vld [vmem:[%s11458_s3 + $0x1ca4] ss:$16 sps:$4 sm:$0xff]  }
 0x401   : > { %6918 = vmatpush1.bf16.msra.mxu0 %v10624_v40  ;;  %7942 = vmatpush1.bf16.msra.mxu1 %v10627_v42  ;;  %v10716_v40 = vld [vmem:[%s11458_s3 + $0x1cac] ss:$16 sps:$4 sm:$0xff]   ;;  %v10715_v42 = vld [vmem:[%s11458_s3 + $0x1ca0] ss:$16 sps:$4 sm:$0xff]  }
 0x402   : > { %6920 = vmatprep.subr.bf16.mxu0 %v10628_v43  ;;  %7944 = vmatprep.subr.bf16.mxu1 %v10631_v45  ;;  %v10718_v43 = vld [vmem:[%s11458_s3 + $0x1ca8] ss:$16 sps:$4 sm:$0xff]   ;;  %v10719_v45 = vld [vmem:[%s11458_s3 + $0x1cc4] ss:$16 sps:$4 sm:$0xff]  }
 0x405   : > { %6922 = vmatpush1.bf16.msra.mxu0 %v10630_v30  ;;  %7946 = vmatpush1.bf16.msra.mxu1 %v10633_v46  ;;  %v10722_v30 = vld [vmem:[%s11458_s3 + $0x1ccc] ss:$16 sps:$4 sm:$0xff]   ;;  %v10721_v46 = vld [vmem:[%s11458_s3 + $0x1cc0] ss:$16 sps:$4 sm:$0xff]  }
 0x406   : > { %6924 = vmatprep.subr.bf16.mxu0 %v10634_v49  ;;  %7948 = vmatprep.subr.bf16.mxu1 %v10637_v36  ;;  %v10724_v49 = vld [vmem:[%s11458_s3 + $0x1cc8] ss:$16 sps:$4 sm:$0xff]   ;;  %v10725_v36 = vld [vmem:[%s11458_s3 + $0x1ce4] ss:$16 sps:$4 sm:$0xff]  }
 0x409   : > { %6926 = vmatpush1.bf16.msra.mxu0 %v10636_v51  ;;  %7950 = vmatpush1.bf16.msra.mxu1 %v10639_v37  ;;  %v10728_v51 = vld [vmem:[%s11458_s3 + $0x1cec] ss:$16 sps:$4 sm:$0xff]   ;;  %v10727_v37 = vld [vmem:[%s11458_s3 + $0x1ce0] ss:$16 sps:$4 sm:$0xff]  }
 0x40a   : > { %6928 = vmatprep.subr.bf16.mxu0 %v10640_v52  ;;  %7952 = vmatprep.subr.bf16.mxu1 %v10643_v54  ;;  %v10730_v52 = vld [vmem:[%s11458_s3 + $0x1ce8] ss:$16 sps:$4 sm:$0xff]   ;;  %v10731_v54 = vld [vmem:[%s11458_s3 + $0x1d04] ss:$16 sps:$4 sm:$0xff]  }
 0x40d   : > { %6930 = vmatpush1.bf16.msra.mxu0 %v10642_v55  ;;  %7954 = vmatpush1.bf16.msra.mxu1 %v10645_v56  ;;  %v10734_v55 = vld [vmem:[%s11458_s3 + $0x1d0c] ss:$16 sps:$4 sm:$0xff]   ;;  %v10733_v56 = vld [vmem:[%s11458_s3 + $0x1d00] ss:$16 sps:$4 sm:$0xff]  }
 0x40e   : > { %6932 = vmatprep.subr.bf16.mxu0 %v10646_v41  ;;  %7956 = vmatprep.subr.bf16.mxu1 %v10649_v57  ;;  %v10736_v41 = vld [vmem:[%s11458_s3 + $0x1d08] ss:$16 sps:$4 sm:$0xff]   ;;  %v10737_v57 = vld [vmem:[%s11458_s3 + $0x1d24] ss:$16 sps:$4 sm:$0xff]  }
 0x411   : > { %6934 = vmatpush1.bf16.msra.mxu0 %v10648_v60  ;;  %7958 = vmatpush1.bf16.msra.mxu1 %v10651_v47  ;;  %v10740_v60 = vld [vmem:[%s11458_s3 + $0x1d2c] ss:$16 sps:$4 sm:$0xff]   ;;  %v10739_v47 = vld [vmem:[%s11458_s3 + $0x1d20] ss:$16 sps:$4 sm:$0xff]  }
 0x412   : > { %6936 = vmatprep.subr.bf16.mxu0 %v10652_v61  ;;  %7960 = vmatprep.subr.bf16.mxu1 %v10655_v48  ;;  %v10742_v61 = vld [vmem:[%s11458_s3 + $0x1d28] ss:$16 sps:$4 sm:$0xff]   ;;  %v10743_v48 = vld [vmem:[%s11458_s3 + $0x1d44] ss:$16 sps:$4 sm:$0xff]  }
 0x415   : > { %6938 = vmatpush1.bf16.msra.mxu0 %v10654_v63  ;;  %7962 = vmatpush1.bf16.msra.mxu1 %v10657_v0  ;;  %v10746_v63 = vld [vmem:[%s11458_s3 + $0x1d4c] ss:$16 sps:$4 sm:$0xff]   ;;  %v10745_v0 = vld [vmem:[%s11458_s3 + $0x1d40] ss:$16 sps:$4 sm:$0xff]  }
 0x416   : > { %6940 = vmatprep.subr.bf16.mxu0 %v10658_v1  ;;  %7964 = vmatprep.subr.bf16.mxu1 %v10661_v2  ;;  %v10748_v1 = vld [vmem:[%s11458_s3 + $0x1d48] ss:$16 sps:$4 sm:$0xff]   ;;  %v10749_v2 = vld [vmem:[%s11458_s3 + $0x1d64] ss:$16 sps:$4 sm:$0xff]  }
 0x419   : > { %6942 = vmatpush1.bf16.msra.mxu0 %v10660_v53  ;;  %7966 = vmatpush1.bf16.msra.mxu1 %v10663_v3  ;;  %v10752_v53 = vld [vmem:[%s11458_s3 + $0x1d6c] ss:$16 sps:$4 sm:$0xff]   ;;  %v10751_v3 = vld [vmem:[%s11458_s3 + $0x1d60] ss:$16 sps:$4 sm:$0xff]  }
 0x41a   : > { %6944 = vmatprep.subr.bf16.mxu0 %v10664_v58  ;;  %7968 = vmatprep.subr.bf16.mxu1 %v10667_v6  ;;  %v10754_v58 = vld [vmem:[%s11458_s3 + $0x1d68] ss:$16 sps:$4 sm:$0xff]   ;;  %v10755_v6 = vld [vmem:[%s11458_s3 + $0x1d84] ss:$16 sps:$4 sm:$0xff]  }
 0x41d   : > { %6946 = vmatpush1.bf16.msra.mxu0 %v10666_v7  ;;  %7970 = vmatpush1.bf16.msra.mxu1 %v10669_v59  ;;  %v10758_v7 = vld [vmem:[%s11458_s3 + $0x1d8c] ss:$16 sps:$4 sm:$0xff]   ;;  %v10757_v59 = vld [vmem:[%s11458_s3 + $0x1d80] ss:$16 sps:$4 sm:$0xff]  }
 0x41e   : > { %6948 = vmatprep.subr.bf16.mxu0 %v10670_v9  ;;  %7972 = vmatprep.subr.bf16.mxu1 %v10673_v10  ;;  %v10760_v9 = vld [vmem:[%s11458_s3 + $0x1d88] ss:$16 sps:$4 sm:$0xff]   ;;  %v10761_v10 = vld [vmem:[%s11458_s3 + $0x1da4] ss:$16 sps:$4 sm:$0xff]  }
 0x421   : > { %6950 = vmatpush1.bf16.msra.mxu0 %v10672_v11  ;;  %7974 = vmatpush1.bf16.msra.mxu1 %v10675_v12  ;;  %v10764_v11 = vld [vmem:[%s11458_s3 + $0x1dac] ss:$16 sps:$4 sm:$0xff]   ;;  %v10763_v12 = vld [vmem:[%s11458_s3 + $0x1da0] ss:$16 sps:$4 sm:$0xff]  }
 0x422   : > { %6952 = vmatprep.subr.bf16.mxu0 %v10676_v62  ;;  %7976 = vmatprep.subr.bf16.mxu1 %v10679_v14  ;;  %v10766_v62 = vld [vmem:[%s11458_s3 + $0x1da8] ss:$16 sps:$4 sm:$0xff]   ;;  %v10767_v14 = vld [vmem:[%s11458_s3 + $0x1dc4] ss:$16 sps:$4 sm:$0xff]  }
 0x425   : > { %6954 = vmatpush1.bf16.msra.mxu0 %v10678_v5  ;;  %7978 = vmatpush1.bf16.msra.mxu1 %v10681_v17  ;;  %v10770_v5 = vld [vmem:[%s11458_s3 + $0x1dcc] ss:$16 sps:$4 sm:$0xff]   ;;  %v10769_v17 = vld [vmem:[%s11458_s3 + $0x1dc0] ss:$16 sps:$4 sm:$0xff]  }
 0x426   : > { %6956 = vmatprep.subr.bf16.mxu0 %v10683_v18  ;;  %7980 = vmatprep.subr.bf16.mxu1 %v10686_v4  ;;  %v10772_v18 = vld [vmem:[%s11458_s3 + $0x1dc8] ss:$16 sps:$4 sm:$0xff]   ;;  %v10773_v4 = vld [vmem:[%s11458_s3 + $0x1de4] ss:$16 sps:$4 sm:$0xff]  }
 0x428   : > { %4534 = vmatmul.mubr.f32.vlgmr.msra.gmra.mrb[0].mxu0 %v12438_v15  ;;  %5670 = vmatmul.mubr.f32.vlgmr.msra.gmra.mrb[0].mxu1 %v12438_v15  ;;  %v10700_v15 = vld [vmem:[%s11458_s3 + $0x1c48] ss:$16 sps:$4 sm:$0xff]  }
 0x429   : > { %6958 = vmatpush1.bf16.msra.mxu0 %v10685_v21  ;;  %7982 = vmatpush1.bf16.msra.mxu1 %v10688_v22  ;;  %v10776_v21 = vld [vmem:[%s11458_s3 + $0x1dec] ss:$16 sps:$4 sm:$0xff]   ;;  %v3497_v22 = vcombine.high %v12505_v16, %v12505_v16  ;;  %v10784_v16 = vld [vmem:[%s11458_s3 + $0x1e08] ss:$16 sps:$4 sm:$0xff]  }
 0x42a   : > { %6960 = vmatprep.subr.bf16.mxu0 %v10689_v24  ;;  %7984 = vmatprep.subr.bf16.mxu1 %v10692_v25  ;;  %v10775_v24 = vld [vmem:[%s11458_s3 + $0x1de0] ss:$16 sps:$4 sm:$0xff]   ;;  %v10778_v25 = vld [vmem:[%s11458_s3 + $0x1de8] ss:$16 sps:$4 sm:$0xff]  }
 0x42b   : > { %4604 = vmatprep.mubr.f32.mxu0 %v3512_v8  ;;  %5740 = vmatprep.mubr.f32.mxu1 %v3512_v8  ;;  %v10779_v8 = vld [vmem:[%s11458_s3 + $0x1e04] ss:$16 sps:$4 sm:$0xff]  }
 0x42d   : > { %6962 = vmatpush1.bf16.msra.mxu0 %v10691_v27  ;;  %7986 = vmatpush1.bf16.msra.mxu1 %v10694_v28  ;;  %v10782_v27 = vld [vmem:[%s11458_s3 + $0x1e0c] ss:$16 sps:$4 sm:$0xff]   ;;  %v12586_v28 = vrot.slane %v3497_v22, %v11525_v50 }
 0x42e   : > { %6964 = vmatprep.subr.bf16.mxu0 %v10695_v13  ;;  %7988 = vmatprep.subr.bf16.mxu1 %v10698_v29  ;;  %v10781_v13 = vld [vmem:[%s11458_s3 + $0x1e00] ss:$16 sps:$4 sm:$0xff]   ;;  %v10785_v29 = vld [vmem:[%s11458_s3 + $0x1e24] ss:$16 sps:$4 sm:$0xff]   ;;  %v10866_v22 = vld [vmem:[%s11458_s3 + $0x1fcc] ss:$16 sps:$4 sm:$0xff]  }
 0x431   : > { %6966 = vmatpush1.bf16.msra.mxu0 %v10697_v31  ;;  %7990 = vmatpush1.bf16.msra.mxu1 %v10700_v15  ;;  %v10788_v31 = vld [vmem:[%s11458_s3 + $0x1e2c] ss:$16 sps:$4 sm:$0xff]   ;;  %v3513_v15 = vcombine.high %v12586_v28, %v12586_v28 }
 0x432   : > { %6968 = vmatprep.subr.bf16.mxu0 %v10701_v32  ;;  %7992 = vmatprep.subr.bf16.mxu1 %v10704_v33  ;;  %v10787_v32 = vld [vmem:[%s11458_s3 + $0x1e20] ss:$16 sps:$4 sm:$0xff]   ;;  %v10790_v33 = vld [vmem:[%s11458_s3 + $0x1e28] ss:$16 sps:$4 sm:$0xff]  }
 0x435   : > { %6970 = vmatpush1.bf16.msra.mxu0 %v10703_v34  ;;  %7994 = vmatpush1.bf16.msra.mxu1 %v10706_v23  ;;  %v10791_v34 = vld [vmem:[%s11458_s3 + $0x1e44] ss:$16 sps:$4 sm:$0xff]   ;;  %v10794_v23 = vld [vmem:[%s11458_s3 + $0x1e4c] ss:$16 sps:$4 sm:$0xff]  }
 0x436   : > { %6972 = vmatprep.subr.bf16.mxu0 %v10707_v35  ;;  %7996 = vmatprep.subr.bf16.mxu1 %v10710_v38  ;;  %v10793_v35 = vld [vmem:[%s11458_s3 + $0x1e40] ss:$16 sps:$4 sm:$0xff]   ;;  %v10797_v38 = vld [vmem:[%s11458_s3 + $0x1e64] ss:$16 sps:$4 sm:$0xff]  }
 0x439   : > { %6974 = vmatpush1.bf16.msra.mxu0 %v10709_v20  ;;  %7998 = vmatpush1.bf16.msra.mxu1 %v10712_v39  ;;  %v10800_v20 = vld [vmem:[%s11458_s3 + $0x1e6c] ss:$16 sps:$4 sm:$0xff]   ;;  %v10799_v39 = vld [vmem:[%s11458_s3 + $0x1e60] ss:$16 sps:$4 sm:$0xff]  }
 0x43a   : > { %6976 = vmatprep.subr.bf16.mxu0 %v10713_v26  ;;  %8000 = vmatprep.subr.bf16.mxu1 %v10716_v40  ;;  %v10802_v26 = vld [vmem:[%s11458_s3 + $0x1e68] ss:$16 sps:$4 sm:$0xff]   ;;  %v10803_v40 = vld [vmem:[%s11458_s3 + $0x1e84] ss:$16 sps:$4 sm:$0xff]  }
 0x43d   : > { %6978 = vmatpush1.bf16.msra.mxu0 %v10715_v42  ;;  %8002 = vmatpush1.bf16.msra.mxu1 %v10718_v43  ;;  %v10806_v42 = vld [vmem:[%s11458_s3 + $0x1e8c] ss:$16 sps:$4 sm:$0xff]   ;;  %v10805_v43 = vld [vmem:[%s11458_s3 + $0x1e80] ss:$16 sps:$4 sm:$0xff]  }
 0x43e   : > { %6980 = vmatprep.subr.bf16.mxu0 %v10719_v45  ;;  %8004 = vmatprep.subr.bf16.mxu1 %v10722_v30  ;;  %v10808_v45 = vld [vmem:[%s11458_s3 + $0x1e88] ss:$16 sps:$4 sm:$0xff]   ;;  %v10809_v30 = vld [vmem:[%s11458_s3 + $0x1ea4] ss:$16 sps:$4 sm:$0xff]  }
 0x441   : > { %6982 = vmatpush1.bf16.msra.mxu0 %v10721_v46  ;;  %8006 = vmatpush1.bf16.msra.mxu1 %v10724_v49  ;;  %v10812_v46 = vld [vmem:[%s11458_s3 + $0x1eac] ss:$16 sps:$4 sm:$0xff]   ;;  %v10811_v49 = vld [vmem:[%s11458_s3 + $0x1ea0] ss:$16 sps:$4 sm:$0xff]  }
 0x442   : > { %6984 = vmatprep.subr.bf16.mxu0 %v10725_v36  ;;  %8008 = vmatprep.subr.bf16.mxu1 %v10728_v51  ;;  %v10814_v36 = vld [vmem:[%s11458_s3 + $0x1ea8] ss:$16 sps:$4 sm:$0xff]   ;;  %v10815_v51 = vld [vmem:[%s11458_s3 + $0x1ec4] ss:$16 sps:$4 sm:$0xff]  }
 0x445   : > { %6986 = vmatpush1.bf16.msra.mxu0 %v10727_v37  ;;  %8010 = vmatpush1.bf16.msra.mxu1 %v10730_v52  ;;  %v10818_v37 = vld [vmem:[%s11458_s3 + $0x1ecc] ss:$16 sps:$4 sm:$0xff]   ;;  %v10817_v52 = vld [vmem:[%s11458_s3 + $0x1ec0] ss:$16 sps:$4 sm:$0xff]  }
 0x446   : > { %6988 = vmatprep.subr.bf16.mxu0 %v10731_v54  ;;  %8012 = vmatprep.subr.bf16.mxu1 %v10734_v55  ;;  %v10820_v54 = vld [vmem:[%s11458_s3 + $0x1ec8] ss:$16 sps:$4 sm:$0xff]   ;;  %v10821_v55 = vld [vmem:[%s11458_s3 + $0x1ee4] ss:$16 sps:$4 sm:$0xff]  }
 0x449   : > { %6990 = vmatpush1.bf16.msra.mxu0 %v10733_v56  ;;  %8014 = vmatpush1.bf16.msra.mxu1 %v10736_v41  ;;  %v10824_v56 = vld [vmem:[%s11458_s3 + $0x1eec] ss:$16 sps:$4 sm:$0xff]   ;;  %v10823_v41 = vld [vmem:[%s11458_s3 + $0x1ee0] ss:$16 sps:$4 sm:$0xff]  }
 0x44a   : > { %6992 = vmatprep.subr.bf16.mxu0 %v10737_v57  ;;  %8016 = vmatprep.subr.bf16.mxu1 %v10740_v60  ;;  %v10826_v57 = vld [vmem:[%s11458_s3 + $0x1ee8] ss:$16 sps:$4 sm:$0xff]   ;;  %v10827_v60 = vld [vmem:[%s11458_s3 + $0x1f04] ss:$16 sps:$4 sm:$0xff]  }
 0x44d   : > { %6994 = vmatpush1.bf16.msra.mxu0 %v10739_v47  ;;  %8018 = vmatpush1.bf16.msra.mxu1 %v10742_v61  ;;  %v10830_v47 = vld [vmem:[%s11458_s3 + $0x1f0c] ss:$16 sps:$4 sm:$0xff]   ;;  %v10829_v61 = vld [vmem:[%s11458_s3 + $0x1f00] ss:$16 sps:$4 sm:$0xff]  }
 0x44e   : > { %6996 = vmatprep.subr.bf16.mxu0 %v10743_v48  ;;  %8020 = vmatprep.subr.bf16.mxu1 %v10746_v63  ;;  %v10832_v48 = vld [vmem:[%s11458_s3 + $0x1f08] ss:$16 sps:$4 sm:$0xff]   ;;  %v10833_v63 = vld [vmem:[%s11458_s3 + $0x1f24] ss:$16 sps:$4 sm:$0xff]  }
 0x451   : > { %6998 = vmatpush1.bf16.msra.mxu0 %v10745_v0  ;;  %8022 = vmatpush1.bf16.msra.mxu1 %v10748_v1  ;;  %v10836_v0 = vld [vmem:[%s11458_s3 + $0x1f2c] ss:$16 sps:$4 sm:$0xff]   ;;  %v10835_v1 = vld [vmem:[%s11458_s3 + $0x1f20] ss:$16 sps:$4 sm:$0xff]  }
 0x452   : > { %7000 = vmatprep.subr.bf16.mxu0 %v10749_v2  ;;  %8024 = vmatprep.subr.bf16.mxu1 %v10752_v53  ;;  %v10838_v2 = vld [vmem:[%s11458_s3 + $0x1f28] ss:$16 sps:$4 sm:$0xff]   ;;  %v10839_v53 = vld [vmem:[%s11458_s3 + $0x1f44] ss:$16 sps:$4 sm:$0xff]  }
 0x455   : > { %7002 = vmatpush1.bf16.msra.mxu0 %v10751_v3  ;;  %8026 = vmatpush1.bf16.msra.mxu1 %v10754_v58  ;;  %v10842_v3 = vld [vmem:[%s11458_s3 + $0x1f4c] ss:$16 sps:$4 sm:$0xff]   ;;  %v10841_v58 = vld [vmem:[%s11458_s3 + $0x1f40] ss:$16 sps:$4 sm:$0xff]  }
 0x456   : > { %7004 = vmatprep.subr.bf16.mxu0 %v10755_v6  ;;  %8028 = vmatprep.subr.bf16.mxu1 %v10758_v7  ;;  %v10844_v6 = vld [vmem:[%s11458_s3 + $0x1f48] ss:$16 sps:$4 sm:$0xff]   ;;  %v10845_v7 = vld [vmem:[%s11458_s3 + $0x1f64] ss:$16 sps:$4 sm:$0xff]  }
 0x459   : > { %7006 = vmatpush1.bf16.msra.mxu0 %v10757_v59  ;;  %8030 = vmatpush1.bf16.msra.mxu1 %v10760_v9  ;;  %v10848_v59 = vld [vmem:[%s11458_s3 + $0x1f6c] ss:$16 sps:$4 sm:$0xff]   ;;  %v10847_v9 = vld [vmem:[%s11458_s3 + $0x1f60] ss:$16 sps:$4 sm:$0xff]  }
 0x45a   : > { %7008 = vmatprep.subr.bf16.mxu0 %v10761_v10  ;;  %8032 = vmatprep.subr.bf16.mxu1 %v10764_v11  ;;  %v10850_v10 = vld [vmem:[%s11458_s3 + $0x1f68] ss:$16 sps:$4 sm:$0xff]   ;;  %v10851_v11 = vld [vmem:[%s11458_s3 + $0x1f84] ss:$16 sps:$4 sm:$0xff]  }
 0x45d   : > { %7010 = vmatpush1.bf16.msra.mxu0 %v10763_v12  ;;  %8034 = vmatpush1.bf16.msra.mxu1 %v10766_v62  ;;  %v10854_v12 = vld [vmem:[%s11458_s3 + $0x1f8c] ss:$16 sps:$4 sm:$0xff]   ;;  %v10853_v62 = vld [vmem:[%s11458_s3 + $0x1f80] ss:$16 sps:$4 sm:$0xff]  }
 0x45e   : > { %7012 = vmatprep.subr.bf16.mxu0 %v10767_v14  ;;  %8036 = vmatprep.subr.bf16.mxu1 %v10770_v5  ;;  %v10856_v14 = vld [vmem:[%s11458_s3 + $0x1f88] ss:$16 sps:$4 sm:$0xff]   ;;  %v10857_v5 = vld [vmem:[%s11458_s3 + $0x1fa4] ss:$16 sps:$4 sm:$0xff]  }
 0x461   : > { %7014 = vmatpush1.bf16.msra.mxu0 %v10769_v17  ;;  %8038 = vmatpush1.bf16.msra.mxu1 %v10772_v18  ;;  %v10860_v17 = vld [vmem:[%s11458_s3 + $0x1fac] ss:$16 sps:$4 sm:$0xff]   ;;  %v10859_v18 = vld [vmem:[%s11458_s3 + $0x1fa0] ss:$16 sps:$4 sm:$0xff]  }
 0x462   : > { %7016 = vmatprep.subr.bf16.mxu0 %v10773_v4  ;;  %8040 = vmatprep.subr.bf16.mxu1 %v10776_v21  ;;  %v10862_v4 = vld [vmem:[%s11458_s3 + $0x1fa8] ss:$16 sps:$4 sm:$0xff]   ;;  %v10863_v21 = vld [vmem:[%s11458_s3 + $0x1fc4] ss:$16 sps:$4 sm:$0xff]  }
 0x465   : > { %7018 = vmatpush1.bf16.msra.mxu0 %v10775_v24  ;;  %8042 = vmatpush1.bf16.msra.mxu1 %v10778_v25  ;;  %v10865_v24 = vld [vmem:[%s11458_s3 + $0x1fc0] ss:$16 sps:$4 sm:$0xff]   ;;  %v10868_v25 = vld [vmem:[%s11458_s3 + $0x1fc8] ss:$16 sps:$4 sm:$0xff]  }
 0x466   : > { %7020 = vmatprep.subr.bf16.mxu0 %v10779_v8  ;;  %8044 = vmatprep.subr.bf16.mxu1 %v10782_v27  ;;  %v10869_v8 = vld [vmem:[%s11458_s3 + $0x1fe4] ss:$16 sps:$4 sm:$0xff]   ;;  %v10872_v27 = vld [vmem:[%s11458_s3 + $0x1fec] ss:$16 sps:$4 sm:$0xff]  }
 0x468   : > { %4605 = vmatmul.mubr.f32.vlgmr.msra.gmra.mrb[0].mxu0 %v12513_v19  ;;  %5741 = vmatmul.mubr.f32.vlgmr.msra.gmra.mrb[0].mxu1 %v12513_v19  ;;  %v10796_v19 = vld [vmem:[%s11458_s3 + $0x1e48] ss:$16 sps:$4 sm:$0xff]  }
 0x469   : > { %7022 = vmatpush1.bf16.msra.mxu0 %v10781_v13  ;;  %8046 = vmatpush1.bf16.msra.mxu1 %v10784_v16  ;;  %v10871_v13 = vld [vmem:[%s11458_s3 + $0x1fe0] ss:$16 sps:$4 sm:$0xff]   ;;  %v10874_v16 = vld [vmem:[%s11458_s3 + $0x1fe8] ss:$16 sps:$4 sm:$0xff]  }
 0x46a   : > { %7024 = vmatprep.subr.bf16.mxu0 %v10785_v29  ;;  %8048 = vmatprep.subr.bf16.mxu1 %v10788_v31 }
 0x46b   : > { %4675 = vmatprep.mubr.f32.mxu0 %v3513_v15  ;;  %5811 = vmatprep.mubr.f32.mxu1 %v3513_v15 }
 0x46d   : > { %7026 = vmatpush1.bf16.msra.mxu0 %v10787_v32  ;;  %8050 = vmatpush1.bf16.msra.mxu1 %v10790_v33 }
 0x46e   : > { %7028 = vmatprep.subr.bf16.mxu0 %v10791_v34  ;;  %8052 = vmatprep.subr.bf16.mxu1 %v10794_v23 }
 0x471   : > { %7030 = vmatpush1.bf16.msra.mxu0 %v10793_v35  ;;  %8054 = vmatpush1.bf16.msra.mxu1 %v10796_v19  ;;  %v3361_v19 = vld [vmem:[#allocation2] sm:$0xff] }
 0x472   : > { %7032 = vmatprep.subr.bf16.mxu0 %v10797_v38  ;;  %8056 = vmatprep.subr.bf16.mxu1 %v10800_v20 }
 0x475   : > { %7034 = vmatpush1.bf16.msra.mxu0 %v10799_v39  ;;  %8058 = vmatpush1.bf16.msra.mxu1 %v10802_v26  ;;  %v5847_v39 = vld [vmem:[%s11468_s28] sm:$0xf] (!%p6049_p9)  ;;  %v5855_v26 = vsub.s32 (!%p6049_p9), 1, %v11517_v44 }
 0x476   : > { %7036 = vmatprep.subr.bf16.mxu0 %v10803_v40  ;;  %8060 = vmatprep.subr.bf16.mxu1 %v10806_v42  ;;  %v5859_v40 = vsub.s32 (!%p6049_p9), 2, %v11517_v44  ;;  %v5863_v42 = vsub.s32 (!%p6049_p9), 3, %v11517_v44 }
 0x479   : > { %7038 = vmatpush1.bf16.msra.mxu0 %v10805_v43  ;;  %8062 = vmatpush1.bf16.msra.mxu1 %v10808_v45  ;;  %v5856_v45 = vrot.slane (!%p6049_p9), %v5847_v39, %v5855_v26 }
 0x47a   : > { %7040 = vmatprep.subr.bf16.mxu0 %v10809_v30  ;;  %8064 = vmatprep.subr.bf16.mxu1 %v10812_v46  ;;  %v5860_v30 = vrot.slane (!%p6049_p9), %v5847_v39, %v5859_v40  ;;  %v5864_v46 = vrot.slane (!%p6049_p9), %v5847_v39, %v5863_v42 }
 0x47d   : > { %7042 = vmatpush1.bf16.msra.mxu0 %v10811_v49  ;;  %8066 = vmatpush1.bf16.msra.mxu1 %v10814_v36  ;;  %v5866_v36 = vcombine.low (!%p6049_p9), %v5860_v30, %v5864_v46 }
 0x47e   : > { %7044 = vmatprep.subr.bf16.mxu0 %v10815_v51  ;;  %8068 = vmatprep.subr.bf16.mxu1 %v10818_v37 }
 0x47f   : > { %v5880_v37 = vrot.slane (!%p6049_p9), %v5866_v36, %v11525_v50 }
 0x481   : > { %7046 = vmatpush1.bf16.msra.mxu0 %v10817_v52  ;;  %8070 = vmatpush1.bf16.msra.mxu1 %v10820_v54 }
 0x482   : > { %7048 = vmatprep.subr.bf16.mxu0 %v10821_v55  ;;  %8072 = vmatprep.subr.bf16.mxu1 %v10824_v56 }
 0x485   : > { %7050 = vmatpush1.bf16.msra.mxu0 %v10823_v41  ;;  %8074 = vmatpush1.bf16.msra.mxu1 %v10826_v57 }
 0x486   : > { %7052 = vmatprep.subr.bf16.mxu0 %v10827_v60  ;;  %8076 = vmatprep.subr.bf16.mxu1 %v10830_v47 }
 0x489   : > { %7054 = vmatpush1.bf16.msra.mxu0 %v10829_v61  ;;  %8078 = vmatpush1.bf16.msra.mxu1 %v10832_v48 }
 0x48a   : > { %7056 = vmatprep.subr.bf16.mxu0 %v10833_v63  ;;  %8080 = vmatprep.subr.bf16.mxu1 %v10836_v0 }
 0x48d   : > { %7058 = vmatpush1.bf16.msra.mxu0 %v10835_v1  ;;  %8082 = vmatpush1.bf16.msra.mxu1 %v10838_v2 }
 0x48e   : > { %7060 = vmatprep.subr.bf16.mxu0 %v10839_v53  ;;  %8084 = vmatprep.subr.bf16.mxu1 %v10842_v3 }
 0x491   : > { %7062 = vmatpush1.bf16.msra.mxu0 %v10841_v58  ;;  %8086 = vmatpush1.bf16.msra.mxu1 %v10844_v6 }
 0x492   : > { %7064 = vmatprep.subr.bf16.mxu0 %v10845_v7  ;;  %8088 = vmatprep.subr.bf16.mxu1 %v10848_v59 }
 0x495   : > { %7066 = vmatpush1.bf16.msra.mxu0 %v10847_v9  ;;  %8090 = vmatpush1.bf16.msra.mxu1 %v10850_v10 }
 0x496   : > { %7068 = vmatprep.subr.bf16.mxu0 %v10851_v11  ;;  %8092 = vmatprep.subr.bf16.mxu1 %v10854_v12 }
 0x499   : > { %7070 = vmatpush1.bf16.msra.mxu0 %v10853_v62  ;;  %8094 = vmatpush1.bf16.msra.mxu1 %v10856_v14 }
 0x49a   : > { %7072 = vmatprep.subr.bf16.mxu0 %v10857_v5  ;;  %8096 = vmatprep.subr.bf16.mxu1 %v10860_v17 }
 0x49d   : > { %7074 = vmatpush1.bf16.msra.mxu0 %v10859_v18  ;;  %8098 = vmatpush1.bf16.msra.mxu1 %v10862_v4 }
 0x49e   : > { %7076 = vmatprep.subr.bf16.mxu0 %v10863_v21  ;;  %8100 = vmatprep.subr.bf16.mxu1 %v10866_v22 }
 0x4a1   : > { %7078 = vmatpush1.bf16.msra.mxu0 %v10865_v24  ;;  %8102 = vmatpush1.bf16.msra.mxu1 %v10868_v25 }
 0x4a2   : > { %7080 = vmatprep.subr.bf16.mxu0 %v10869_v8  ;;  %8104 = vmatprep.subr.bf16.mxu1 %v10872_v27 }
 0x4a5   : > { %7082 = vmatpush1.bf16.msra.mxu0 %v10871_v13  ;;  %8106 = vmatpush1.bf16.msra.mxu1 %v10874_v16 }
 0x4a8   : > { %4676 = vmatmul.mubr.f32.vlgmr.msra.gmra.mrb[0].mxu0 %v12586_v28  ;;  %5812 = vmatmul.mubr.f32.vlgmr.msra.gmra.mrb[0].mxu1 %v12586_v28  ;;  %v5851_v28 = vsub.s32 (!%p6049_p9), 0, %v11517_v44 }
 0x4aa   : > { %v5852_v43 = vrot.slane (!%p6049_p9), %v5847_v39, %v5851_v28 }
 0x4ac   : > { %v5865_v49 = vcombine.low (!%p6049_p9), %v5852_v43, %v5856_v45 }
 0x4ae   : > { %v5873_v51 = vrot.slane (!%p6049_p9), %v5865_v49, %v11525_v50 }
 0x4b0   : > { %v5881_v54 = vcombine.low (!%p6049_p9), %v5873_v51, %v5880_v37 }
 0x57b   : > { %v4677_v29 = vpop.f32.mrb[0].mxu0  ;;  %v5813_v31 = vpop.f32.mrb[0].mxu1 }
 0x57c   : > { %v4679_v15 = vpop.f32.mrb[1].mxu0  ;;  %v5815_v32 = vpop.f32.mrb[1].mxu1 }
 0x57d   : > { %v5822_v33 = vcombine.low %v4677_v29, %v4679_v15  ;;  %v5823_v34 = vcombine.low %v5813_v31, %v5815_v32 }
 0x57f   : > { %v5830_v23 = vrot.slane %v5822_v33, %v11525_v50  ;;  %v5837_v35 = vrot.slane %v5823_v34, %v11525_v50  ;;  %5845 = sbr.rel (%p6049_p9) target bundleno = 1426 (0x592), region = 52 }
 0x581   : > { %v5838_v38 = vcombine.low %v5830_v23, %v5837_v35 }
 0x583   : > { %v5840_v20 = vadd.f32 %v5838_v38, %v3361_v19 }
 0x585   : > { %5841 = vst [vmem:[#allocation2] sm:$0xff] %v5840_v20 }
 0x58c   : > { %v5846_v52 = vld [vmem:[#allocation2] sm:$0xff] }
 0x58d   : > { %v5883_v55 = vadd.f32 %v5881_v54, %v5846_v52 }
 0x58f   : > { %v5884_v56 = vmax.f32 %v5883_v55, 0.0 }
 0x591   : > { %5885 = vst [vmem:[%s11475_s1] sm:$0xff] %v5884_v56 }
 0x592 PF: > { %s12794_s21 = sld [smem:[#allocation15_spill]]  ;;  %s12795_s22 = sld [smem:[#allocation22_spill]] }
 0x593   : > { %s5901_s24 = sshll.u32 %s11475_s1, 4  ;;  %s5887_s20 = scalar_lea.sflag [#allocation5], %s11465_s10  ;;  %s5902_s24 = int_to_ptr.vmem [resolvable:$true] %s5901_s24 }
 0x594   : > { %s10966_s0 = scalar_lea.vmem %s5902_s24, 128  ;;  %p12797_p0 = scmp.ne.s32.totalorder %s12786_s30, 0 }
 0x595   : > { %p10967_p1 = scmp.ne.s32.totalorder %s5902_s24, %s10966_s0  ;;  %s11130_s29 = smov [#allocation9]  }
 0x596   : > { %s10970_s6 = sshll.u32 %s11130_s29, 4  ;;  %s10971_s6 = int_to_ptr.vmem [resolvable:$false] %s10970_s6 }
 0x597   : > { %p10968_p5 = pnand %p10967_p1, %p12797_p0  ;;  %s10972_s3 = scalar_lea.vmem %s10971_s6, 256 }
 0x598   : > { %s6058_s5 = sshll.u32 %s12794_s21, 7  ;;  %s12796_s26 = smov %s12795_s22 }
 0x599   : > { %s12671_s15 = scalar_lea.hbm %s12795_s22, %s6058_s5  ;;  %p10969_p3 = pneg %p10968_p5 }
 0x59a   : > { %p10973_p7 = scmp.lt.s32.totalorder %s5902_s24, %s10971_s6  ;;  %p10974_p12 = scmp.lt.s32.totalorder %s10972_s3, %s10966_s0 }
 0x59c   : > { %p10975_p8 = por %p10974_p12, %p10973_p7 }
 0x59e   : > { %p10976_p13 = pnand %p10975_p8, %p10969_p3 }
 0x5a0   : > { %10979 = shalt.err (!%p10976_p13)
}
 0x5a1   : > { %s10980_s10 = scalar_lea.hbm %s12671_s15, 128  ;;  %s10984_s8 = scalar_lea.hbm %s12796_s26, 256 }
 0x5a2   : > { %p10981_p10 = scmp.ne.s32.totalorder %s12671_s15, %s10980_s10  ;;  %p10985_p6 = scmp.lt.u32.totalorder %s12671_s15, %s12796_s26 }
 0x5a3   : > { %p10986_p11 = scmp.lt.u32.totalorder %s10984_s8, %s10980_s10  ;;  %p10988_p1 = scmp.lt.u32.totalorder %s10980_s10, %s12671_s15 }
 0x5a4   : > { %p10982_p4 = pnand %p10981_p10, %p12797_p0 }
 0x5a5   : > { %p10987_p9 = por %p10986_p11, %p10985_p6 }
 0x5a6   : > { %p10983_p2 = pneg %p10982_p4 }
 0x5a7   : > { %p10989_p5 = por %p10988_p1, %p10987_p9 }
 0x5a9   : > { %p10990_p3 = pnand %p10989_p5, %p10983_p2 }
 0x5ab   : > { %10993 = shalt.err (!%p10990_p3)
}
 0x5ac   : > { %9197 = dma.vmem_to_hbm [thread:$0]  (%p12797_p0), %s5902_s24, 128, %s12671_s15, %s5887_s20  }
 0x5ad PF: > { %p9214_p7 = scmp.ge.s32.totalorder %s11120_s25, 2  ;;  %s5913_s5 = sand.u32 1, %s11068_s12  }
 0x5ae   : > { %p12798_p12 = scmp.ne.s32.totalorder %s12787_s7, 0  ;;  %s5914_s18 = scalar_lea.sflag [#allocation5], %s5913_s5 }
 0x5b0   : > { %p9210_p8 = pnand %p9214_p7, %p12798_p12 }
 0x5b2   : > { %11063 = dma.done.wait (!%p9210_p8), %s5914_s18, 128  }
 0x5b3   : > { %11065 = vsyncadd (!%p9210_p8), %s5914_s18, 4294967168  ;;  %s22_s25 = sadd.s32 1, %s11120_s25   ;;  %s12800_s30 = sld [smem:[#allocation14_spill]] }
 0x5b4   : > { %p12697_p13 = scmp.ge.s32.totalorder %s22_s25, 34   ;;  %s12801_s20 = sld [smem:[#allocation19_spill]] }
 0x5b5   : > { %s12802_s22 = sld [smem:[#allocation16_spill]]  ;;  %s12803_s7 = sld [smem:[#allocation17_spill]] }
 0x5b6   : > { %s12804_s24 = sld [smem:[#allocation18_spill]]  ;;  %s12805_s12 = smov %s11072_s13 }
 0x5b7   : > { %s12806_s13 = smov %s11076_s14  ;;  %s12807_s14 = smov %s11385_s4 }
 0x5b8   : > { %s12808_s15 = smov %s11084_s16  ;;  %s12809_s16 = smov %s11088_s17 }
 0x5b9   : > { %s12810_s17 = smov %s11337_s11  ;;  %s12811_s18 = smov %s11096_s19 }
 0x5ba   : > { %s12812_s19 = smov %s12800_s30  ;;  %s12813_s21 = smov %s11112_s23 }
 0x5bb   : > { %s12814_s23 = smov %s12803_s7  ;;  %21 = sbr.rel (!%p12697_p13) target bundleno = 16 (0x10), region = 109 }
 0x5c2   :  { %5919 = vsyncpa [#allocation4], 1 }
 0x5c3   :  { %5921 = vsyncpa [#allocation4 + $0x1], 1 }
 0x5c4   :  { %5922 = vsyncpa [#allocation7], 1 }
 0x5c5   :  { %5924 = vsyncpa [#allocation7 + $0x1], 1 }
 0x5c6   :  { %5925 = vsyncpa [#allocation5], 1 }
 0x5c7   :  { %5927 = vsyncpa [#allocation5 + $0x1], 1 }

</bundles_post_ra>
